<compile_context>
chip_gen: v5e
topology: v5e:2x2
jax: 0.10.0
libtpu: 0.0.40
codegen_flags: <defaults>
</compile_context>

<pallas_src>
import math
import functools

import jax
import jax.numpy as jnp
from jax.experimental import pallas as pl
from jax.experimental.pallas import tpu as pltpu


# ----------------------------------------------------------------------------
# Config / synthetic parameters
# ----------------------------------------------------------------------------

class Cfg:
    vocab_size = 128
    block_size = 8
    n_embd = 64
    n_head = 4
    n_layer = 2
    checkpoint = None  # TODO(synk): torch checkpoint loading not translated; synthetic weights only.


ADAPTER_HIDDEN = 128

# Fixed ordering of per-block parameters; each is stacked over the layer axis
# and passed to the fused kernel as one input.
BLOCK_PARAM_ORDER = (
    "ln1_g", "ln1_b",
    "attn_w", "attn_b", "attn_proj_w", "attn_proj_b",
    "ad1_w1", "ad1_b1", "ad1_w2", "ad1_b2",
    "xq_w", "xq_b", "xk_w", "xk_b", "xv_w", "xv_b", "xproj_w", "xproj_b",
    "ln2_g", "ln2_b", "fc_w", "fc_b", "mproj_w", "mproj_b",
    "ad2_w1", "ad2_b1", "ad2_w2", "ad2_b2",
)

# Matrices that feed the MXU -> stored/loaded as bf16.  LN params & biases stay f32.
MATMUL_WEIGHTS = {
    "attn_w", "attn_proj_w", "ad1_w1", "ad1_w2",
    "xq_w", "xk_w", "xv_w", "xproj_w",
    "fc_w", "mproj_w", "ad2_w1", "ad2_w2",
}


def init_params(cfg, key):
    C, V, BS, H = cfg.n_embd, cfg.vocab_size, cfg.block_size, ADAPTER_HIDDEN
    ks = iter(jax.random.split(key, 256))

    def w(shape, scale=0.02):
        return (scale * jax.random.normal(next(ks), shape)).astype(jnp.float32)

    zeros = lambda s: jnp.zeros(s, jnp.float32)
    ones = lambda s: jnp.ones(s, jnp.float32)

    params = {
        "wte": w((V, C)),            # tied with lm_head
        "wpe": w((BS, C)),
        "ln_f_g": ones((C,)), "ln_f_b": zeros((C,)),
        "blocks": [],
    }
    for _ in range(cfg.n_layer):
        params["blocks"].append({
            "ln1_g": ones((C,)), "ln1_b": zeros((C,)),
            "ln2_g": ones((C,)), "ln2_b": zeros((C,)),
            # self-attention
            "attn_w": w((C, 3 * C)), "attn_b": zeros((3 * C,)),
            "attn_proj_w": w((C, C)), "attn_proj_b": zeros((C,)),
            # cross-attention
            "xq_w": w((C, C)), "xq_b": zeros((C,)),
            "xk_w": w((C, C)), "xk_b": zeros((C,)),
            "xv_w": w((C, C)), "xv_b": zeros((C,)),
            "xproj_w": w((C, C)), "xproj_b": zeros((C,)),
            # mlp
            "fc_w": w((C, 4 * C)), "fc_b": zeros((4 * C,)),
            "mproj_w": w((4 * C, C)), "mproj_b": zeros((C,)),
            # adapters (hidden = 128)
            "ad1_w1": w((C, H)), "ad1_b1": zeros((H,)),
            "ad1_w2": w((H, C)), "ad1_b2": zeros((C,)),
            "ad2_w1": w((C, H)), "ad2_b1": zeros((H,)),
            "ad2_w2": w((H, C)), "ad2_b2": zeros((C,)),
        })
    return params


def prepare_params(params):
    """One-time, outside-the-forward preparation of kernel-ready arrays."""
    stacked = []
    for name in BLOCK_PARAM_ORDER:
        a = jnp.stack([blk[name] for blk in params["blocks"]], axis=0)   # [L, ...]
        if a.ndim == 2:                  # 1-D per-layer params -> [L, 1, N] (keeps 2-D tiles in-kernel)
            a = a[:, None, :]
        if name in MATMUL_WEIGHTS:
            a = a.astype(jnp.bfloat16)   # bf16 MXU operands, half the DMA bytes
        stacked.append(a)
    return {
        "wte": params["wte"],                                   # f32, for the embedding gather
        "wpe": params["wpe"],
        "lnf_g": params["ln_f_g"][None, :],                     # [1, C] f32
        "lnf_b": params["ln_f_b"][None, :],
        "head_w": params["wte"].T.astype(jnp.bfloat16),         # tied lm_head, pre-transposed ONCE
        "blocks": stacked,
    }


# ----------------------------------------------------------------------------
# In-kernel math helpers (f32 elementwise, bf16 MXU operands, f32 accumulation)
# ----------------------------------------------------------------------------

_SQRT_2_OVER_PI = math.sqrt(2.0 / math.pi)


def _gelu_tanh(x):
    # GELU(approximate='tanh') exactly as PyTorch defines it (f32 VPU/EUP math).
    return 0.5 * x * (1.0 + jnp.tanh(_SQRT_2_OVER_PI * (x + 0.044715 * x * x * x)))


def _layernorm(x, g, b, eps=1e-5):
    # x: [M, C] f32; g/b: [1, C] f32
    mu = jnp.mean(x, axis=-1, keepdims=True)
    var = jnp.mean((x - mu) ** 2, axis=-1, keepdims=True)
    return (x - mu) * jax.lax.rsqrt(var + eps) * g + b


def _matmul(x, w, b=None):
    # Cast activations to the weight dtype (bf16) for the MXU; accumulate in f32.
    y = jnp.dot(x.astype(w.dtype), w, preferred_element_type=jnp.float32)
    if b is not None:          # bias-free variant skips the add entirely (lm_head)
        y = y + b
    return y


def _mha(q, k, v, n_head, causal):
    """q: [T, C], k/v: [S, C] (f32) -> [T, C].  All heads processed at once."""
    T, C = q.shape
    S = k.shape[0]
    hd = C // n_head
    scale = 1.0 / math.sqrt(hd)

    # Head split happens on the VMEM tile (no HBM round trip / host transpose).
    qh = jnp.transpose(q.reshape(T, n_head, hd), (1, 0, 2))   # [nh, T, hd]
    kh = jnp.transpose(k.reshape(S, n_head, hd), (1, 0, 2))   # [nh, S, hd]
    vh = jnp.transpose(v.reshape(S, n_head, hd), (1, 0, 2))   # [nh, S, hd]

    s = jnp.einsum(
        "htd,hsd->hts",
        qh.astype(jnp.bfloat16), kh.astype(jnp.bfloat16),
        preferred_element_type=jnp.float32) * scale            # [nh, T, S] f32

    if causal:
        row = jax.lax.broadcasted_iota(jnp.int32, (n_head, T, S), 1)
        col = jax.lax.broadcasted_iota(jnp.int32, (n_head, T, S), 2)
        # Large finite negative instead of -inf: safe even for fully-masked rows.
        s = jnp.where(col <= row, s, jnp.float32(-1e30))

    m = jnp.max(s, axis=-1, keepdims=True)
    p = jnp.exp(s - m)
    denom = jnp.sum(p, axis=-1, keepdims=True)
    p = p * pl.reciprocal(denom, approx=True)                  # divide on the EUP slot

    o = jnp.einsum(
        "hts,hsd->htd",
        p.astype(jnp.bfloat16), vh.astype(jnp.bfloat16),
        preferred_element_type=jnp.float32)                    # [nh, T, hd] f32

    return jnp.transpose(o, (1, 0, 2)).reshape(T, C)           # merge heads in-kernel


# ----------------------------------------------------------------------------
# Fused decoder kernel: one grid step == one batch element, all layers inside.
# ----------------------------------------------------------------------------

def _decoder_kernel(*refs, n_head, n_layer):
    x_ref, enc_ref, lnf_g_ref, lnf_b_ref, head_w_ref, *rest = refs
    blk_refs = rest[:-1]
    out_ref = rest[-1]

    x = x_ref[0].astype(jnp.float32)       # [T, C] residual stream (f32)
    enc = enc_ref[0].astype(jnp.float32)   # [S, C] encoder features
    C = x.shape[-1]

    for l in range(n_layer):               # static unroll over layers
        p = {name: blk_refs[i][l] for i, name in enumerate(BLOCK_PARAM_ORDER)}

        # x = x + attn(ln_1(x))            (causal self-attention)
        h = _layernorm(x, p["ln1_g"], p["ln1_b"])
        qkv = _matmul(h, p["attn_w"], p["attn_b"])                       # [T, 3C]
        q, k, v = qkv[:, :C], qkv[:, C:2 * C], qkv[:, 2 * C:]
        a = _mha(q, k, v, n_head, causal=True)
        x = x + _matmul(a, p["attn_proj_w"], p["attn_proj_b"])

        # x = x + adapter_layer1(x)
        a = _gelu_tanh(_matmul(x, p["ad1_w1"], p["ad1_b1"]))
        x = x + _matmul(a, p["ad1_w2"], p["ad1_b2"])

        # x = x + crossattn(x, encoder_output)
        q = _matmul(x, p["xq_w"], p["xq_b"])
        k = _matmul(enc, p["xk_w"], p["xk_b"])
        v = _matmul(enc, p["xv_w"], p["xv_b"])
        a = _mha(q, k, v, n_head, causal=False)
        x = x + _matmul(a, p["xproj_w"], p["xproj_b"])

        # x = x + mlp(ln_2(x))
        h = _layernorm(x, p["ln2_g"], p["ln2_b"])
        h = _gelu_tanh(_matmul(h, p["fc_w"], p["fc_b"]))
        x = x + _matmul(h, p["mproj_w"], p["mproj_b"])

        # x = x + adapter_layer2(x)
        a = _gelu_tanh(_matmul(x, p["ad2_w1"], p["ad2_b1"]))
        x = x + _matmul(a, p["ad2_w2"], p["ad2_b2"])

    # final LN + tied lm_head (weight pre-transposed, no bias)
    h = _layernorm(x, lnf_g_ref[...], lnf_b_ref[...])
    logits = _matmul(h, head_w_ref[...], None)                            # [T, V]
    out_ref[0] = logits.astype(out_ref.dtype)


def make_decoder_forward(cfg):
    C, V, nh, L = cfg.n_embd, cfg.vocab_size, cfg.n_head, cfg.n_layer

    def forward(prep, tokens, encoder_feature):
        B, T_in = tokens.shape
        T = min(T_in, cfg.block_size)          # torch.narrow(x, 1, 0, min(T, block_size))
        tokens = tokens[:, :T]
        S = encoder_feature.shape[1]

        # Embedding gather + positional embedding (data-dependent gather: plain JAX glue).
        x_emb = prep["wte"][tokens] + prep["wpe"][:T][None, :, :]         # [B, T, C] f32

        blk_stacked = list(prep["blocks"])
        inputs = [x_emb, encoder_feature, prep["lnf_g"], prep["lnf_b"], prep["head_w"]] + blk_stacked

        in_specs = [
            pl.BlockSpec((1, T, C), lambda b: (b, 0, 0)),      # x (per batch element)
            pl.BlockSpec((1, S, C), lambda b: (b, 0, 0)),      # encoder features
            pl.BlockSpec((1, C), lambda b: (0, 0)),            # ln_f gamma
            pl.BlockSpec((1, C), lambda b: (0, 0)),            # ln_f beta
            pl.BlockSpec((C, V), lambda b: (0, 0)),            # tied lm_head (pre-transposed)
        ] + [
            # Stacked per-layer params: whole array resident, same block every step.
            pl.BlockSpec(a.shape, (lambda b, nd=a.ndim: (0,) * nd))
            for a in blk_stacked
        ]

        return pl.pallas_call(
            functools.partial(_decoder_kernel, n_head=nh, n_layer=L),
            out_shape=jax.ShapeDtypeStruct((B, T, V), jnp.float32),
            grid=(B,),
            in_specs=in_specs,
            out_specs=pl.BlockSpec((1, T, V), lambda b: (b, 0, 0)),
            compiler_params=pltpu.CompilerParams(
                dimension_semantics=("parallel",),             # shard batch over v7x's 2 TCs
            ),
        )(*inputs)

    return forward


# ----------------------------------------------------------------------------
# Pure-JAX f32 reference (mirrors the PyTorch module) for correctness checking
# ----------------------------------------------------------------------------

def reference_forward(params, tokens, enc, cfg):
    B, T_in = tokens.shape
    T = min(T_in, cfg.block_size)
    tokens = tokens[:, :T]
    C, nh = cfg.n_embd, cfg.n_head
    hd = C // nh
    x = params["wte"][tokens] + params["wpe"][:T][None]

    def ln(x, g, b, eps=1e-5):
        mu = x.mean(-1, keepdims=True)
        var = ((x - mu) ** 2).mean(-1, keepdims=True)
        return (x - mu) / jnp.sqrt(var + eps) * g + b

    def gelu(x):
        return 0.5 * x * (1.0 + jnp.tanh(_SQRT_2_OVER_PI * (x + 0.044715 * x ** 3)))

    def mha(q, k, v, causal):
        Bq, Tq, _ = q.shape
        Sk = k.shape[1]
        qh = q.reshape(Bq, Tq, nh, hd).transpose(0, 2, 1, 3)
        kh = k.reshape(Bq, Sk, nh, hd).transpose(0, 2, 1, 3)
        vh = v.reshape(Bq, Sk, nh, hd).transpose(0, 2, 1, 3)
        s = jnp.einsum("bhtd,bhsd->bhts", qh, kh) / math.sqrt(hd)
        if causal:
            mask = jnp.tril(jnp.ones((Tq, Sk), bool))
            s = jnp.where(mask[None, None], s, -jnp.inf)
        p = jax.nn.softmax(s, axis=-1)
        o = jnp.einsum("bhts,bhsd->bhtd", p, vh)
        return o.transpose(0, 2, 1, 3).reshape(Bq, Tq, C)

    for p in params["blocks"]:
        h = ln(x, p["ln1_g"], p["ln1_b"])
        qkv = h @ p["attn_w"] + p["attn_b"]
        q, k, v = jnp.split(qkv, 3, axis=-1)
        x = x + (mha(q, k, v, True) @ p["attn_proj_w"] + p["attn_proj_b"])
        x = x + (gelu(x @ p["ad1_w1"] + p["ad1_b1"]) @ p["ad1_w2"] + p["ad1_b2"])
        q = x @ p["xq_w"] + p["xq_b"]
        k = enc @ p["xk_w"] + p["xk_b"]
        v = enc @ p["xv_w"] + p["xv_b"]
        x = x + (mha(q, k, v, False) @ p["xproj_w"] + p["xproj_b"])
        h = ln(x, p["ln2_g"], p["ln2_b"])
        x = x + (gelu(h @ p["fc_w"] + p["fc_b"]) @ p["mproj_w"] + p["mproj_b"])
        x = x + (gelu(x @ p["ad2_w1"] + p["ad2_b1"]) @ p["ad2_w2"] + p["ad2_b2"])

    x = ln(x, params["ln_f_g"], params["ln_f_b"])
    return x @ params["wte"].T


# ----------------------------------------------------------------------------
# main
# ----------------------------------------------------------------------------

if __name__ == "__main__":
    cfg = Cfg()
    key = jax.random.PRNGKey(0)
    k_params, k_tok, k_enc = jax.random.split(key, 3)

    params = init_params(cfg, k_params)

    B, T, S = 2, 8, 8
    tokens = jax.random.randint(k_tok, (B, T), 0, cfg.vocab_size, dtype=jnp.int32)
    encoder_feature = jax.random.normal(k_enc, (B, S, cfg.n_embd), dtype=jnp.float32)

    prep = prepare_params(params)                 # one-time: bf16 weights, stacked layers, wte.T
    forward = jax.jit(make_decoder_forward(cfg))

    logits = jax.block_until_ready(forward(prep, tokens, encoder_feature))

    assert logits.shape == (B, T, cfg.vocab_size)
    assert bool(jnp.all(jnp.isfinite(logits)))

    # Numerical check against the f32 pure-JAX reference (bf16 MXU operands +
    # approx reciprocal => loose-ish tolerance, values are O(0.1)).
    ref = reference_forward(params, tokens, encoder_feature, cfg)
    assert bool(jnp.allclose(logits, ref, atol=5e-2)), float(jnp.max(jnp.abs(logits - ref)))

    print("KERNEL_OK")
</pallas_src>

<mosaic_0001>
module attributes {stable_mosaic.version = 11 : i64} {
  func.func @_decoder_kernel(%arg0: i32, %arg1: memref<1x8x64xf32, #tpu.memory_space<vmem>>, %arg2: memref<1x8x64xf32, #tpu.memory_space<vmem>>, %arg3: memref<1x64xf32, #tpu.memory_space<vmem>>, %arg4: memref<1x64xf32, #tpu.memory_space<vmem>>, %arg5: memref<64x128xbf16, #tpu.memory_space<vmem>>, %arg6: memref<2x1x64xf32, #tpu.memory_space<vmem>>, %arg7: memref<2x1x64xf32, #tpu.memory_space<vmem>>, %arg8: memref<2x64x192xbf16, #tpu.memory_space<vmem>>, %arg9: memref<2x1x192xf32, #tpu.memory_space<vmem>>, %arg10: memref<2x64x64xbf16, #tpu.memory_space<vmem>>, %arg11: memref<2x1x64xf32, #tpu.memory_space<vmem>>, %arg12: memref<2x64x128xbf16, #tpu.memory_space<vmem>>, %arg13: memref<2x1x128xf32, #tpu.memory_space<vmem>>, %arg14: memref<2x128x64xbf16, #tpu.memory_space<vmem>>, %arg15: memref<2x1x64xf32, #tpu.memory_space<vmem>>, %arg16: memref<2x64x64xbf16, #tpu.memory_space<vmem>>, %arg17: memref<2x1x64xf32, #tpu.memory_space<vmem>>, %arg18: memref<2x64x64xbf16, #tpu.memory_space<vmem>>, %arg19: memref<2x1x64xf32, #tpu.memory_space<vmem>>, %arg20: memref<2x64x64xbf16, #tpu.memory_space<vmem>>, %arg21: memref<2x1x64xf32, #tpu.memory_space<vmem>>, %arg22: memref<2x64x64xbf16, #tpu.memory_space<vmem>>, %arg23: memref<2x1x64xf32, #tpu.memory_space<vmem>>, %arg24: memref<2x1x64xf32, #tpu.memory_space<vmem>>, %arg25: memref<2x1x64xf32, #tpu.memory_space<vmem>>, %arg26: memref<2x64x256xbf16, #tpu.memory_space<vmem>>, %arg27: memref<2x1x256xf32, #tpu.memory_space<vmem>>, %arg28: memref<2x256x64xbf16, #tpu.memory_space<vmem>>, %arg29: memref<2x1x64xf32, #tpu.memory_space<vmem>>, %arg30: memref<2x64x128xbf16, #tpu.memory_space<vmem>>, %arg31: memref<2x1x128xf32, #tpu.memory_space<vmem>>, %arg32: memref<2x128x64xbf16, #tpu.memory_space<vmem>>, %arg33: memref<2x1x64xf32, #tpu.memory_space<vmem>>, %arg34: memref<1x8x128xf32, #tpu.memory_space<vmem>>) attributes {dimension_semantics = [#tpu.dimension_semantics<parallel>], iteration_bounds = array<i64: 2>, scalar_prefetch = 0 : i64, scratch_operands = 0 : i64, tpu.core_type = #tpu.core_type<tc>, window_params = [{transform_indices = @transform_0, window_bounds = array<i64: 1, 8, 64>}, {transform_indices = @transform_1, window_bounds = array<i64: 1, 8, 64>}, {pipeline_mode = #tpu.pipeline_mode<synchronous>, transform_indices = @transform_2, window_bounds = array<i64: 1, 64>}, {pipeline_mode = #tpu.pipeline_mode<synchronous>, transform_indices = @transform_3, window_bounds = array<i64: 1, 64>}, {pipeline_mode = #tpu.pipeline_mode<synchronous>, transform_indices = @transform_4, window_bounds = array<i64: 64, 128>}, {pipeline_mode = #tpu.pipeline_mode<synchronous>, transform_indices = @transform_5, window_bounds = array<i64: 2, 1, 64>}, {pipeline_mode = #tpu.pipeline_mode<synchronous>, transform_indices = @transform_6, window_bounds = array<i64: 2, 1, 64>}, {pipeline_mode = #tpu.pipeline_mode<synchronous>, transform_indices = @transform_7, window_bounds = array<i64: 2, 64, 192>}, {pipeline_mode = #tpu.pipeline_mode<synchronous>, transform_indices = @transform_8, window_bounds = array<i64: 2, 1, 192>}, {pipeline_mode = #tpu.pipeline_mode<synchronous>, transform_indices = @transform_9, window_bounds = array<i64: 2, 64, 64>}, {pipeline_mode = #tpu.pipeline_mode<synchronous>, transform_indices = @transform_10, window_bounds = array<i64: 2, 1, 64>}, {pipeline_mode = #tpu.pipeline_mode<synchronous>, transform_indices = @transform_11, window_bounds = array<i64: 2, 64, 128>}, {pipeline_mode = #tpu.pipeline_mode<synchronous>, transform_indices = @transform_12, window_bounds = array<i64: 2, 1, 128>}, {pipeline_mode = #tpu.pipeline_mode<synchronous>, transform_indices = @transform_13, window_bounds = array<i64: 2, 128, 64>}, {pipeline_mode = #tpu.pipeline_mode<synchronous>, transform_indices = @transform_14, window_bounds = array<i64: 2, 1, 64>}, {pipeline_mode = #tpu.pipeline_mode<synchronous>, transform_indices = @transform_15, window_bounds = array<i64: 2, 64, 64>}, {pipeline_mode = #tpu.pipeline_mode<synchronous>, transform_indices = @transform_16, window_bounds = array<i64: 2, 1, 64>}, {pipeline_mode = #tpu.pipeline_mode<synchronous>, transform_indices = @transform_17, window_bounds = array<i64: 2, 64, 64>}, {pipeline_mode = #tpu.pipeline_mode<synchronous>, transform_indices = @transform_18, window_bounds = array<i64: 2, 1, 64>}, {pipeline_mode = #tpu.pipeline_mode<synchronous>, transform_indices = @transform_19, window_bounds = array<i64: 2, 64, 64>}, {pipeline_mode = #tpu.pipeline_mode<synchronous>, transform_indices = @transform_20, window_bounds = array<i64: 2, 1, 64>}, {pipeline_mode = #tpu.pipeline_mode<synchronous>, transform_indices = @transform_21, window_bounds = array<i64: 2, 64, 64>}, {pipeline_mode = #tpu.pipeline_mode<synchronous>, transform_indices = @transform_22, window_bounds = array<i64: 2, 1, 64>}, {pipeline_mode = #tpu.pipeline_mode<synchronous>, transform_indices = @transform_23, window_bounds = array<i64: 2, 1, 64>}, {pipeline_mode = #tpu.pipeline_mode<synchronous>, transform_indices = @transform_24, window_bounds = array<i64: 2, 1, 64>}, {pipeline_mode = #tpu.pipeline_mode<synchronous>, transform_indices = @transform_25, window_bounds = array<i64: 2, 64, 256>}, {pipeline_mode = #tpu.pipeline_mode<synchronous>, transform_indices = @transform_26, window_bounds = array<i64: 2, 1, 256>}, {pipeline_mode = #tpu.pipeline_mode<synchronous>, transform_indices = @transform_27, window_bounds = array<i64: 2, 256, 64>}, {pipeline_mode = #tpu.pipeline_mode<synchronous>, transform_indices = @transform_28, window_bounds = array<i64: 2, 1, 64>}, {pipeline_mode = #tpu.pipeline_mode<synchronous>, transform_indices = @transform_29, window_bounds = array<i64: 2, 64, 128>}, {pipeline_mode = #tpu.pipeline_mode<synchronous>, transform_indices = @transform_30, window_bounds = array<i64: 2, 1, 128>}, {pipeline_mode = #tpu.pipeline_mode<synchronous>, transform_indices = @transform_31, window_bounds = array<i64: 2, 128, 64>}, {pipeline_mode = #tpu.pipeline_mode<synchronous>, transform_indices = @transform_32, window_bounds = array<i64: 2, 1, 64>}, {transform_indices = @transform_33, window_bounds = array<i64: 1, 8, 128>}]} {
    %c0 = arith.constant 0 : index
    %c0_0 = arith.constant 0 : index
    %c0_1 = arith.constant 0 : index
    %0 = vector.load %arg1[%c0, %c0_0, %c0_1] : memref<1x8x64xf32, #tpu.memory_space<vmem>>, vector<1x8x64xf32>
    %1 = vector.shape_cast %0 : vector<1x8x64xf32> to vector<8x64xf32>
    %c0_2 = arith.constant 0 : index
    %c0_3 = arith.constant 0 : index
    %c0_4 = arith.constant 0 : index
    %2 = vector.load %arg2[%c0_2, %c0_3, %c0_4] : memref<1x8x64xf32, #tpu.memory_space<vmem>>, vector<1x8x64xf32>
    %3 = vector.shape_cast %2 : vector<1x8x64xf32> to vector<8x64xf32>
    %c0_5 = arith.constant 0 : index
    %c0_6 = arith.constant 0 : index
    %c0_7 = arith.constant 0 : index
    %4 = vector.load %arg6[%c0_5, %c0_6, %c0_7] : memref<2x1x64xf32, #tpu.memory_space<vmem>>, vector<1x1x64xf32>
    %5 = vector.shape_cast %4 : vector<1x1x64xf32> to vector<1x64xf32>
    %c0_8 = arith.constant 0 : index
    %c0_9 = arith.constant 0 : index
    %c0_10 = arith.constant 0 : index
    %6 = vector.load %arg7[%c0_8, %c0_9, %c0_10] : memref<2x1x64xf32, #tpu.memory_space<vmem>>, vector<1x1x64xf32>
    %7 = vector.shape_cast %6 : vector<1x1x64xf32> to vector<1x64xf32>
    %c0_11 = arith.constant 0 : index
    %c0_12 = arith.constant 0 : index
    %c0_13 = arith.constant 0 : index
    %8 = vector.load %arg8[%c0_11, %c0_12, %c0_13] : memref<2x64x192xbf16, #tpu.memory_space<vmem>>, vector<1x64x192xbf16>
    %9 = vector.shape_cast %8 : vector<1x64x192xbf16> to vector<64x192xbf16>
    %c0_14 = arith.constant 0 : index
    %c0_15 = arith.constant 0 : index
    %c0_16 = arith.constant 0 : index
    %10 = vector.load %arg9[%c0_14, %c0_15, %c0_16] : memref<2x1x192xf32, #tpu.memory_space<vmem>>, vector<1x1x192xf32>
    %11 = vector.shape_cast %10 : vector<1x1x192xf32> to vector<1x192xf32>
    %c0_17 = arith.constant 0 : index
    %c0_18 = arith.constant 0 : index
    %c0_19 = arith.constant 0 : index
    %12 = vector.load %arg10[%c0_17, %c0_18, %c0_19] : memref<2x64x64xbf16, #tpu.memory_space<vmem>>, vector<1x64x64xbf16>
    %13 = vector.shape_cast %12 : vector<1x64x64xbf16> to vector<64x64xbf16>
    %c0_20 = arith.constant 0 : index
    %c0_21 = arith.constant 0 : index
    %c0_22 = arith.constant 0 : index
    %14 = vector.load %arg11[%c0_20, %c0_21, %c0_22] : memref<2x1x64xf32, #tpu.memory_space<vmem>>, vector<1x1x64xf32>
    %15 = vector.shape_cast %14 : vector<1x1x64xf32> to vector<1x64xf32>
    %c0_23 = arith.constant 0 : index
    %c0_24 = arith.constant 0 : index
    %c0_25 = arith.constant 0 : index
    %16 = vector.load %arg12[%c0_23, %c0_24, %c0_25] : memref<2x64x128xbf16, #tpu.memory_space<vmem>>, vector<1x64x128xbf16>
    %17 = vector.shape_cast %16 : vector<1x64x128xbf16> to vector<64x128xbf16>
    %c0_26 = arith.constant 0 : index
    %c0_27 = arith.constant 0 : index
    %c0_28 = arith.constant 0 : index
    %18 = vector.load %arg13[%c0_26, %c0_27, %c0_28] : memref<2x1x128xf32, #tpu.memory_space<vmem>>, vector<1x1x128xf32>
    %19 = vector.shape_cast %18 : vector<1x1x128xf32> to vector<1x128xf32>
    %c0_29 = arith.constant 0 : index
    %c0_30 = arith.constant 0 : index
    %c0_31 = arith.constant 0 : index
    %20 = vector.load %arg14[%c0_29, %c0_30, %c0_31] : memref<2x128x64xbf16, #tpu.memory_space<vmem>>, vector<1x128x64xbf16>
    %21 = vector.shape_cast %20 : vector<1x128x64xbf16> to vector<128x64xbf16>
    %c0_32 = arith.constant 0 : index
    %c0_33 = arith.constant 0 : index
    %c0_34 = arith.constant 0 : index
    %22 = vector.load %arg15[%c0_32, %c0_33, %c0_34] : memref<2x1x64xf32, #tpu.memory_space<vmem>>, vector<1x1x64xf32>
    %23 = vector.shape_cast %22 : vector<1x1x64xf32> to vector<1x64xf32>
    %c0_35 = arith.constant 0 : index
    %c0_36 = arith.constant 0 : index
    %c0_37 = arith.constant 0 : index
    %24 = vector.load %arg16[%c0_35, %c0_36, %c0_37] : memref<2x64x64xbf16, #tpu.memory_space<vmem>>, vector<1x64x64xbf16>
    %25 = vector.shape_cast %24 : vector<1x64x64xbf16> to vector<64x64xbf16>
    %c0_38 = arith.constant 0 : index
    %c0_39 = arith.constant 0 : index
    %c0_40 = arith.constant 0 : index
    %26 = vector.load %arg17[%c0_38, %c0_39, %c0_40] : memref<2x1x64xf32, #tpu.memory_space<vmem>>, vector<1x1x64xf32>
    %27 = vector.shape_cast %26 : vector<1x1x64xf32> to vector<1x64xf32>
    %c0_41 = arith.constant 0 : index
    %c0_42 = arith.constant 0 : index
    %c0_43 = arith.constant 0 : index
    %28 = vector.load %arg18[%c0_41, %c0_42, %c0_43] : memref<2x64x64xbf16, #tpu.memory_space<vmem>>, vector<1x64x64xbf16>
    %29 = vector.shape_cast %28 : vector<1x64x64xbf16> to vector<64x64xbf16>
    %c0_44 = arith.constant 0 : index
    %c0_45 = arith.constant 0 : index
    %c0_46 = arith.constant 0 : index
    %30 = vector.load %arg19[%c0_44, %c0_45, %c0_46] : memref<2x1x64xf32, #tpu.memory_space<vmem>>, vector<1x1x64xf32>
    %31 = vector.shape_cast %30 : vector<1x1x64xf32> to vector<1x64xf32>
    %c0_47 = arith.constant 0 : index
    %c0_48 = arith.constant 0 : index
    %c0_49 = arith.constant 0 : index
    %32 = vector.load %arg20[%c0_47, %c0_48, %c0_49] : memref<2x64x64xbf16, #tpu.memory_space<vmem>>, vector<1x64x64xbf16>
    %33 = vector.shape_cast %32 : vector<1x64x64xbf16> to vector<64x64xbf16>
    %c0_50 = arith.constant 0 : index
    %c0_51 = arith.constant 0 : index
    %c0_52 = arith.constant 0 : index
    %34 = vector.load %arg21[%c0_50, %c0_51, %c0_52] : memref<2x1x64xf32, #tpu.memory_space<vmem>>, vector<1x1x64xf32>
    %35 = vector.shape_cast %34 : vector<1x1x64xf32> to vector<1x64xf32>
    %c0_53 = arith.constant 0 : index
    %c0_54 = arith.constant 0 : index
    %c0_55 = arith.constant 0 : index
    %36 = vector.load %arg22[%c0_53, %c0_54, %c0_55] : memref<2x64x64xbf16, #tpu.memory_space<vmem>>, vector<1x64x64xbf16>
    %37 = vector.shape_cast %36 : vector<1x64x64xbf16> to vector<64x64xbf16>
    %c0_56 = arith.constant 0 : index
    %c0_57 = arith.constant 0 : index
    %c0_58 = arith.constant 0 : index
    %38 = vector.load %arg23[%c0_56, %c0_57, %c0_58] : memref<2x1x64xf32, #tpu.memory_space<vmem>>, vector<1x1x64xf32>
    %39 = vector.shape_cast %38 : vector<1x1x64xf32> to vector<1x64xf32>
    %c0_59 = arith.constant 0 : index
    %c0_60 = arith.constant 0 : index
    %c0_61 = arith.constant 0 : index
    %40 = vector.load %arg24[%c0_59, %c0_60, %c0_61] : memref<2x1x64xf32, #tpu.memory_space<vmem>>, vector<1x1x64xf32>
    %41 = vector.shape_cast %40 : vector<1x1x64xf32> to vector<1x64xf32>
    %c0_62 = arith.constant 0 : index
    %c0_63 = arith.constant 0 : index
    %c0_64 = arith.constant 0 : index
    %42 = vector.load %arg25[%c0_62, %c0_63, %c0_64] : memref<2x1x64xf32, #tpu.memory_space<vmem>>, vector<1x1x64xf32>
    %43 = vector.shape_cast %42 : vector<1x1x64xf32> to vector<1x64xf32>
    %c0_65 = arith.constant 0 : index
    %c0_66 = arith.constant 0 : index
    %c0_67 = arith.constant 0 : index
    %44 = vector.load %arg26[%c0_65, %c0_66, %c0_67] : memref<2x64x256xbf16, #tpu.memory_space<vmem>>, vector<1x64x256xbf16>
    %45 = vector.shape_cast %44 : vector<1x64x256xbf16> to vector<64x256xbf16>
    %c0_68 = arith.constant 0 : index
    %c0_69 = arith.constant 0 : index
    %c0_70 = arith.constant 0 : index
    %46 = vector.load %arg27[%c0_68, %c0_69, %c0_70] : memref<2x1x256xf32, #tpu.memory_space<vmem>>, vector<1x1x256xf32>
    %47 = vector.shape_cast %46 : vector<1x1x256xf32> to vector<1x256xf32>
    %c0_71 = arith.constant 0 : index
    %c0_72 = arith.constant 0 : index
    %c0_73 = arith.constant 0 : index
    %48 = vector.load %arg28[%c0_71, %c0_72, %c0_73] : memref<2x256x64xbf16, #tpu.memory_space<vmem>>, vector<1x256x64xbf16>
    %49 = vector.shape_cast %48 : vector<1x256x64xbf16> to vector<256x64xbf16>
    %c0_74 = arith.constant 0 : index
    %c0_75 = arith.constant 0 : index
    %c0_76 = arith.constant 0 : index
    %50 = vector.load %arg29[%c0_74, %c0_75, %c0_76] : memref<2x1x64xf32, #tpu.memory_space<vmem>>, vector<1x1x64xf32>
    %51 = vector.shape_cast %50 : vector<1x1x64xf32> to vector<1x64xf32>
    %c0_77 = arith.constant 0 : index
    %c0_78 = arith.constant 0 : index
    %c0_79 = arith.constant 0 : index
    %52 = vector.load %arg30[%c0_77, %c0_78, %c0_79] : memref<2x64x128xbf16, #tpu.memory_space<vmem>>, vector<1x64x128xbf16>
    %53 = vector.shape_cast %52 : vector<1x64x128xbf16> to vector<64x128xbf16>
    %c0_80 = arith.constant 0 : index
    %c0_81 = arith.constant 0 : index
    %c0_82 = arith.constant 0 : index
    %54 = vector.load %arg31[%c0_80, %c0_81, %c0_82] : memref<2x1x128xf32, #tpu.memory_space<vmem>>, vector<1x1x128xf32>
    %55 = vector.shape_cast %54 : vector<1x1x128xf32> to vector<1x128xf32>
    %c0_83 = arith.constant 0 : index
    %c0_84 = arith.constant 0 : index
    %c0_85 = arith.constant 0 : index
    %56 = vector.load %arg32[%c0_83, %c0_84, %c0_85] : memref<2x128x64xbf16, #tpu.memory_space<vmem>>, vector<1x128x64xbf16>
    %57 = vector.shape_cast %56 : vector<1x128x64xbf16> to vector<128x64xbf16>
    %c0_86 = arith.constant 0 : index
    %c0_87 = arith.constant 0 : index
    %c0_88 = arith.constant 0 : index
    %58 = vector.load %arg33[%c0_86, %c0_87, %c0_88] : memref<2x1x64xf32, #tpu.memory_space<vmem>>, vector<1x1x64xf32>
    %59 = vector.shape_cast %58 : vector<1x1x64xf32> to vector<1x64xf32>
    %cst = arith.constant dense<0.000000e+00> : vector<8xf32>
    %60 = vector.multi_reduction <add>, %1, %cst [1] : vector<8x64xf32> to vector<8xf32>
    %61 = vector.shape_cast %60 : vector<8xf32> to vector<8x1xf32>
    %cst_89 = arith.constant 6.400000e+01 : f32
    %62 = vector.broadcast %cst_89 : f32 to vector<8x1xf32>
    %63 = arith.divf %61, %62 : vector<8x1xf32>
    %64 = vector.broadcast %63 : vector<8x1xf32> to vector<8x64xf32>
    %65 = arith.subf %1, %64 : vector<8x64xf32>
    %66 = arith.mulf %65, %65 : vector<8x64xf32>
    %cst_90 = arith.constant dense<0.000000e+00> : vector<8xf32>
    %67 = vector.multi_reduction <add>, %66, %cst_90 [1] : vector<8x64xf32> to vector<8xf32>
    %68 = vector.shape_cast %67 : vector<8xf32> to vector<8x1xf32>
    %cst_91 = arith.constant 6.400000e+01 : f32
    %69 = vector.broadcast %cst_91 : f32 to vector<8x1xf32>
    %70 = arith.divf %68, %69 : vector<8x1xf32>
    %71 = vector.broadcast %63 : vector<8x1xf32> to vector<8x64xf32>
    %72 = arith.subf %1, %71 : vector<8x64xf32>
    %cst_92 = arith.constant 9.99999974E-6 : f32
    %73 = vector.broadcast %cst_92 : f32 to vector<8x1xf32>
    %74 = arith.addf %70, %73 : vector<8x1xf32>
    %75 = math.rsqrt %74 : vector<8x1xf32>
    %76 = vector.broadcast %75 : vector<8x1xf32> to vector<8x64xf32>
    %77 = arith.mulf %72, %76 : vector<8x64xf32>
    %78 = vector.broadcast %5 : vector<1x64xf32> to vector<8x64xf32>
    %79 = arith.mulf %77, %78 : vector<8x64xf32>
    %80 = vector.broadcast %7 : vector<1x64xf32> to vector<8x64xf32>
    %81 = arith.addf %79, %80 : vector<8x64xf32>
    %82 = arith.truncf %81 : vector<8x64xf32> to vector<8x64xbf16>
    %cst_93 = arith.constant dense<0.000000e+00> : vector<8x192xf32>
    %83 = tpu.matmul %82, %9, %cst_93 {dimension_numbers = #tpu.dot_dimension_numbers<[1], [0], [0], [1], [0, 0, 1, 1], [], []>} : vector<8x64xbf16>, vector<64x192xbf16>, vector<8x192xf32> -> vector<8x192xf32>
    %84 = vector.broadcast %11 : vector<1x192xf32> to vector<8x192xf32>
    %85 = arith.addf %83, %84 : vector<8x192xf32>
    %86 = vector.extract_strided_slice %85 {offsets = [0, 0], sizes = [8, 64], strides = [1, 1]} : vector<8x192xf32> to vector<8x64xf32>
    %87 = vector.extract_strided_slice %85 {offsets = [0, 64], sizes = [8, 64], strides = [1, 1]} : vector<8x192xf32> to vector<8x64xf32>
    %88 = vector.extract_strided_slice %85 {offsets = [0, 128], sizes = [8, 64], strides = [1, 1]} : vector<8x192xf32> to vector<8x64xf32>
    %89 = vector.shape_cast %86 : vector<8x64xf32> to vector<8x4x16xf32>
    %90 = tpu.transpose %89, [1, 0, 2] : vector<8x4x16xf32> -> vector<4x8x16xf32>
    %91 = vector.shape_cast %87 : vector<8x64xf32> to vector<8x4x16xf32>
    %92 = tpu.transpose %91, [1, 0, 2] : vector<8x4x16xf32> -> vector<4x8x16xf32>
    %93 = vector.shape_cast %88 : vector<8x64xf32> to vector<8x4x16xf32>
    %94 = tpu.transpose %93, [1, 0, 2] : vector<8x4x16xf32> -> vector<4x8x16xf32>
    %95 = arith.truncf %90 : vector<4x8x16xf32> to vector<4x8x16xbf16>
    %96 = arith.truncf %92 : vector<4x8x16xf32> to vector<4x8x16xbf16>
    "tpu.trace_start"() <{level = 10 : i32, message = "htd,hsd->hts"}> : () -> ()
    %cst_94 = arith.constant dense<0.000000e+00> : vector<4x8x8xf32>
    %97 = tpu.matmul %95, %96, %cst_94 {dimension_numbers = #tpu.dot_dimension_numbers<[2], [2], [1], [1], [0, 0, 0, 1, 1, 1], [0], [0]>} : vector<4x8x16xbf16>, vector<4x8x16xbf16>, vector<4x8x8xf32> -> vector<4x8x8xf32>
    "tpu.trace_stop"() : () -> ()
    %cst_95 = arith.constant 2.500000e-01 : f32
    %98 = vector.broadcast %cst_95 : f32 to vector<4x8x8xf32>
    %99 = arith.mulf %97, %98 : vector<4x8x8xf32>
    %100 = tpu.iota {dimensions = array<i32: 1>} : vector<4x8x8xi32>
    %101 = tpu.iota {dimensions = array<i32: 2>} : vector<4x8x8xi32>
    %102 = arith.cmpi sle, %101, %100 : vector<4x8x8xi32>
    %cst_96 = arith.constant -1.000000e+30 : f32
    %103 = vector.broadcast %cst_96 : f32 to vector<4x8x8xf32>
    %104 = arith.select %102, %99, %103 : vector<4x8x8xi1>, vector<4x8x8xf32>
    %cst_97 = arith.constant dense<0xFF800000> : vector<4x8xf32>
    %105 = vector.multi_reduction <maximumf>, %104, %cst_97 [2] : vector<4x8x8xf32> to vector<4x8xf32>
    %106 = vector.shape_cast %105 : vector<4x8xf32> to vector<4x8x1xf32>
    %107 = vector.broadcast %106 : vector<4x8x1xf32> to vector<4x8x8xf32>
    %108 = arith.subf %104, %107 : vector<4x8x8xf32>
    %109 = math.exp %108 : vector<4x8x8xf32>
    %cst_98 = arith.constant dense<0.000000e+00> : vector<4x8xf32>
    %110 = vector.multi_reduction <add>, %109, %cst_98 [2] : vector<4x8x8xf32> to vector<4x8xf32>
    %111 = vector.shape_cast %110 : vector<4x8xf32> to vector<4x8x1xf32>
    %112 = tpu.reciprocal %111 {approx = true} : vector<4x8x1xf32> -> vector<4x8x1xf32>
    %113 = vector.broadcast %112 : vector<4x8x1xf32> to vector<4x8x8xf32>
    %114 = arith.mulf %109, %113 : vector<4x8x8xf32>
    %115 = arith.truncf %114 : vector<4x8x8xf32> to vector<4x8x8xbf16>
    %116 = arith.truncf %94 : vector<4x8x16xf32> to vector<4x8x16xbf16>
    "tpu.trace_start"() <{level = 10 : i32, message = "hts,hsd->htd"}> : () -> ()
    %cst_99 = arith.constant dense<0.000000e+00> : vector<4x8x16xf32>
    %117 = tpu.matmul %115, %116, %cst_99 {dimension_numbers = #tpu.dot_dimension_numbers<[2], [1], [1], [2], [0, 0, 0, 1, 1, 2], [0], [0]>} : vector<4x8x8xbf16>, vector<4x8x16xbf16>, vector<4x8x16xf32> -> vector<4x8x16xf32>
    "tpu.trace_stop"() : () -> ()
    %118 = tpu.transpose %117, [1, 0, 2] : vector<4x8x16xf32> -> vector<8x4x16xf32>
    %119 = vector.shape_cast %118 : vector<8x4x16xf32> to vector<8x64xf32>
    %120 = arith.truncf %119 : vector<8x64xf32> to vector<8x64xbf16>
    %cst_100 = arith.constant dense<0.000000e+00> : vector<8x64xf32>
    %121 = tpu.matmul %120, %13, %cst_100 {dimension_numbers = #tpu.dot_dimension_numbers<[1], [0], [0], [1], [0, 0, 1, 1], [], []>} : vector<8x64xbf16>, vector<64x64xbf16>, vector<8x64xf32> -> vector<8x64xf32>
    %122 = vector.broadcast %15 : vector<1x64xf32> to vector<8x64xf32>
    %123 = arith.addf %121, %122 : vector<8x64xf32>
    %124 = arith.addf %1, %123 : vector<8x64xf32>
    %125 = arith.truncf %124 : vector<8x64xf32> to vector<8x64xbf16>
    %cst_101 = arith.constant dense<0.000000e+00> : vector<8x128xf32>
    %126 = tpu.matmul %125, %17, %cst_101 {dimension_numbers = #tpu.dot_dimension_numbers<[1], [0], [0], [1], [0, 0, 1, 1], [], []>} : vector<8x64xbf16>, vector<64x128xbf16>, vector<8x128xf32> -> vector<8x128xf32>
    %127 = vector.broadcast %19 : vector<1x128xf32> to vector<8x128xf32>
    %128 = arith.addf %126, %127 : vector<8x128xf32>
    %cst_102 = arith.constant 5.000000e-01 : f32
    %129 = vector.broadcast %cst_102 : f32 to vector<8x128xf32>
    %130 = arith.mulf %129, %128 : vector<8x128xf32>
    %cst_103 = arith.constant 4.471500e-02 : f32
    %131 = vector.broadcast %cst_103 : f32 to vector<8x128xf32>
    %132 = arith.mulf %131, %128 : vector<8x128xf32>
    %133 = arith.mulf %132, %128 : vector<8x128xf32>
    %134 = arith.mulf %133, %128 : vector<8x128xf32>
    %135 = arith.addf %128, %134 : vector<8x128xf32>
    %cst_104 = arith.constant 0.797884583 : f32
    %136 = vector.broadcast %cst_104 : f32 to vector<8x128xf32>
    %137 = arith.mulf %136, %135 : vector<8x128xf32>
    %138 = math.tanh %137 : vector<8x128xf32>
    %cst_105 = arith.constant 1.000000e+00 : f32
    %139 = vector.broadcast %cst_105 : f32 to vector<8x128xf32>
    %140 = arith.addf %139, %138 : vector<8x128xf32>
    %141 = arith.mulf %130, %140 : vector<8x128xf32>
    %142 = arith.truncf %141 : vector<8x128xf32> to vector<8x128xbf16>
    %cst_106 = arith.constant dense<0.000000e+00> : vector<8x64xf32>
    %143 = tpu.matmul %142, %21, %cst_106 {dimension_numbers = #tpu.dot_dimension_numbers<[1], [0], [0], [1], [0, 0, 1, 1], [], []>} : vector<8x128xbf16>, vector<128x64xbf16>, vector<8x64xf32> -> vector<8x64xf32>
    %144 = vector.broadcast %23 : vector<1x64xf32> to vector<8x64xf32>
    %145 = arith.addf %143, %144 : vector<8x64xf32>
    %146 = arith.addf %124, %145 : vector<8x64xf32>
    %147 = arith.truncf %146 : vector<8x64xf32> to vector<8x64xbf16>
    %cst_107 = arith.constant dense<0.000000e+00> : vector<8x64xf32>
    %148 = tpu.matmul %147, %25, %cst_107 {dimension_numbers = #tpu.dot_dimension_numbers<[1], [0], [0], [1], [0, 0, 1, 1], [], []>} : vector<8x64xbf16>, vector<64x64xbf16>, vector<8x64xf32> -> vector<8x64xf32>
    %149 = vector.broadcast %27 : vector<1x64xf32> to vector<8x64xf32>
    %150 = arith.addf %148, %149 : vector<8x64xf32>
    %151 = arith.truncf %3 : vector<8x64xf32> to vector<8x64xbf16>
    %cst_108 = arith.constant dense<0.000000e+00> : vector<8x64xf32>
    %152 = tpu.matmul %151, %29, %cst_108 {dimension_numbers = #tpu.dot_dimension_numbers<[1], [0], [0], [1], [0, 0, 1, 1], [], []>} : vector<8x64xbf16>, vector<64x64xbf16>, vector<8x64xf32> -> vector<8x64xf32>
    %153 = vector.broadcast %31 : vector<1x64xf32> to vector<8x64xf32>
    %154 = arith.addf %152, %153 : vector<8x64xf32>
    %155 = arith.truncf %3 : vector<8x64xf32> to vector<8x64xbf16>
    %cst_109 = arith.constant dense<0.000000e+00> : vector<8x64xf32>
    %156 = tpu.matmul %155, %33, %cst_109 {dimension_numbers = #tpu.dot_dimension_numbers<[1], [0], [0], [1], [0, 0, 1, 1], [], []>} : vector<8x64xbf16>, vector<64x64xbf16>, vector<8x64xf32> -> vector<8x64xf32>
    %157 = vector.broadcast %35 : vector<1x64xf32> to vector<8x64xf32>
    %158 = arith.addf %156, %157 : vector<8x64xf32>
    %159 = vector.shape_cast %150 : vector<8x64xf32> to vector<8x4x16xf32>
    %160 = tpu.transpose %159, [1, 0, 2] : vector<8x4x16xf32> -> vector<4x8x16xf32>
    %161 = vector.shape_cast %154 : vector<8x64xf32> to vector<8x4x16xf32>
    %162 = tpu.transpose %161, [1, 0, 2] : vector<8x4x16xf32> -> vector<4x8x16xf32>
    %163 = vector.shape_cast %158 : vector<8x64xf32> to vector<8x4x16xf32>
    %164 = tpu.transpose %163, [1, 0, 2] : vector<8x4x16xf32> -> vector<4x8x16xf32>
    %165 = arith.truncf %160 : vector<4x8x16xf32> to vector<4x8x16xbf16>
    %166 = arith.truncf %162 : vector<4x8x16xf32> to vector<4x8x16xbf16>
    "tpu.trace_start"() <{level = 10 : i32, message = "htd,hsd->hts"}> : () -> ()
    %cst_110 = arith.constant dense<0.000000e+00> : vector<4x8x8xf32>
    %167 = tpu.matmul %165, %166, %cst_110 {dimension_numbers = #tpu.dot_dimension_numbers<[2], [2], [1], [1], [0, 0, 0, 1, 1, 1], [0], [0]>} : vector<4x8x16xbf16>, vector<4x8x16xbf16>, vector<4x8x8xf32> -> vector<4x8x8xf32>
    "tpu.trace_stop"() : () -> ()
    %cst_111 = arith.constant 2.500000e-01 : f32
    %168 = vector.broadcast %cst_111 : f32 to vector<4x8x8xf32>
    %169 = arith.mulf %167, %168 : vector<4x8x8xf32>
    %cst_112 = arith.constant dense<0xFF800000> : vector<4x8xf32>
    %170 = vector.multi_reduction <maximumf>, %169, %cst_112 [2] : vector<4x8x8xf32> to vector<4x8xf32>
    %171 = vector.shape_cast %170 : vector<4x8xf32> to vector<4x8x1xf32>
    %172 = vector.broadcast %171 : vector<4x8x1xf32> to vector<4x8x8xf32>
    %173 = arith.subf %169, %172 : vector<4x8x8xf32>
    %174 = math.exp %173 : vector<4x8x8xf32>
    %cst_113 = arith.constant dense<0.000000e+00> : vector<4x8xf32>
    %175 = vector.multi_reduction <add>, %174, %cst_113 [2] : vector<4x8x8xf32> to vector<4x8xf32>
    %176 = vector.shape_cast %175 : vector<4x8xf32> to vector<4x8x1xf32>
    %177 = tpu.reciprocal %176 {approx = true} : vector<4x8x1xf32> -> vector<4x8x1xf32>
    %178 = vector.broadcast %177 : vector<4x8x1xf32> to vector<4x8x8xf32>
    %179 = arith.mulf %174, %178 : vector<4x8x8xf32>
    %180 = arith.truncf %179 : vector<4x8x8xf32> to vector<4x8x8xbf16>
    %181 = arith.truncf %164 : vector<4x8x16xf32> to vector<4x8x16xbf16>
    "tpu.trace_start"() <{level = 10 : i32, message = "hts,hsd->htd"}> : () -> ()
    %cst_114 = arith.constant dense<0.000000e+00> : vector<4x8x16xf32>
    %182 = tpu.matmul %180, %181, %cst_114 {dimension_numbers = #tpu.dot_dimension_numbers<[2], [1], [1], [2], [0, 0, 0, 1, 1, 2], [0], [0]>} : vector<4x8x8xbf16>, vector<4x8x16xbf16>, vector<4x8x16xf32> -> vector<4x8x16xf32>
    "tpu.trace_stop"() : () -> ()
    %183 = tpu.transpose %182, [1, 0, 2] : vector<4x8x16xf32> -> vector<8x4x16xf32>
    %184 = vector.shape_cast %183 : vector<8x4x16xf32> to vector<8x64xf32>
    %185 = arith.truncf %184 : vector<8x64xf32> to vector<8x64xbf16>
    %cst_115 = arith.constant dense<0.000000e+00> : vector<8x64xf32>
    %186 = tpu.matmul %185, %37, %cst_115 {dimension_numbers = #tpu.dot_dimension_numbers<[1], [0], [0], [1], [0, 0, 1, 1], [], []>} : vector<8x64xbf16>, vector<64x64xbf16>, vector<8x64xf32> -> vector<8x64xf32>
    %187 = vector.broadcast %39 : vector<1x64xf32> to vector<8x64xf32>
    %188 = arith.addf %186, %187 : vector<8x64xf32>
    %189 = arith.addf %146, %188 : vector<8x64xf32>
    %cst_116 = arith.constant dense<0.000000e+00> : vector<8xf32>
    %190 = vector.multi_reduction <add>, %189, %cst_116 [1] : vector<8x64xf32> to vector<8xf32>
    %191 = vector.shape_cast %190 : vector<8xf32> to vector<8x1xf32>
    %cst_117 = arith.constant 6.400000e+01 : f32
    %192 = vector.broadcast %cst_117 : f32 to vector<8x1xf32>
    %193 = arith.divf %191, %192 : vector<8x1xf32>
    %194 = vector.broadcast %193 : vector<8x1xf32> to vector<8x64xf32>
    %195 = arith.subf %189, %194 : vector<8x64xf32>
    %196 = arith.mulf %195, %195 : vector<8x64xf32>
    %cst_118 = arith.constant dense<0.000000e+00> : vector<8xf32>
    %197 = vector.multi_reduction <add>, %196, %cst_118 [1] : vector<8x64xf32> to vector<8xf32>
    %198 = vector.shape_cast %197 : vector<8xf32> to vector<8x1xf32>
    %cst_119 = arith.constant 6.400000e+01 : f32
    %199 = vector.broadcast %cst_119 : f32 to vector<8x1xf32>
    %200 = arith.divf %198, %199 : vector<8x1xf32>
    %201 = vector.broadcast %193 : vector<8x1xf32> to vector<8x64xf32>
    %202 = arith.subf %189, %201 : vector<8x64xf32>
    %cst_120 = arith.constant 9.99999974E-6 : f32
    %203 = vector.broadcast %cst_120 : f32 to vector<8x1xf32>
    %204 = arith.addf %200, %203 : vector<8x1xf32>
    %205 = math.rsqrt %204 : vector<8x1xf32>
    %206 = vector.broadcast %205 : vector<8x1xf32> to vector<8x64xf32>
    %207 = arith.mulf %202, %206 : vector<8x64xf32>
    %208 = vector.broadcast %41 : vector<1x64xf32> to vector<8x64xf32>
    %209 = arith.mulf %207, %208 : vector<8x64xf32>
    %210 = vector.broadcast %43 : vector<1x64xf32> to vector<8x64xf32>
    %211 = arith.addf %209, %210 : vector<8x64xf32>
    %212 = arith.truncf %211 : vector<8x64xf32> to vector<8x64xbf16>
    %cst_121 = arith.constant dense<0.000000e+00> : vector<8x256xf32>
    %213 = tpu.matmul %212, %45, %cst_121 {dimension_numbers = #tpu.dot_dimension_numbers<[1], [0], [0], [1], [0, 0, 1, 1], [], []>} : vector<8x64xbf16>, vector<64x256xbf16>, vector<8x256xf32> -> vector<8x256xf32>
    %214 = vector.broadcast %47 : vector<1x256xf32> to vector<8x256xf32>
    %215 = arith.addf %213, %214 : vector<8x256xf32>
    %cst_122 = arith.constant 5.000000e-01 : f32
    %216 = vector.broadcast %cst_122 : f32 to vector<8x256xf32>
    %217 = arith.mulf %216, %215 : vector<8x256xf32>
    %cst_123 = arith.constant 4.471500e-02 : f32
    %218 = vector.broadcast %cst_123 : f32 to vector<8x256xf32>
    %219 = arith.mulf %218, %215 : vector<8x256xf32>
    %220 = arith.mulf %219, %215 : vector<8x256xf32>
    %221 = arith.mulf %220, %215 : vector<8x256xf32>
    %222 = arith.addf %215, %221 : vector<8x256xf32>
    %cst_124 = arith.constant 0.797884583 : f32
    %223 = vector.broadcast %cst_124 : f32 to vector<8x256xf32>
    %224 = arith.mulf %223, %222 : vector<8x256xf32>
    %225 = math.tanh %224 : vector<8x256xf32>
    %cst_125 = arith.constant 1.000000e+00 : f32
    %226 = vector.broadcast %cst_125 : f32 to vector<8x256xf32>
    %227 = arith.addf %226, %225 : vector<8x256xf32>
    %228 = arith.mulf %217, %227 : vector<8x256xf32>
    %229 = arith.truncf %228 : vector<8x256xf32> to vector<8x256xbf16>
    %cst_126 = arith.constant dense<0.000000e+00> : vector<8x64xf32>
    %230 = tpu.matmul %229, %49, %cst_126 {dimension_numbers = #tpu.dot_dimension_numbers<[1], [0], [0], [1], [0, 0, 1, 1], [], []>} : vector<8x256xbf16>, vector<256x64xbf16>, vector<8x64xf32> -> vector<8x64xf32>
    %231 = vector.broadcast %51 : vector<1x64xf32> to vector<8x64xf32>
    %232 = arith.addf %230, %231 : vector<8x64xf32>
    %233 = arith.addf %189, %232 : vector<8x64xf32>
    %234 = arith.truncf %233 : vector<8x64xf32> to vector<8x64xbf16>
    %cst_127 = arith.constant dense<0.000000e+00> : vector<8x128xf32>
    %235 = tpu.matmul %234, %53, %cst_127 {dimension_numbers = #tpu.dot_dimension_numbers<[1], [0], [0], [1], [0, 0, 1, 1], [], []>} : vector<8x64xbf16>, vector<64x128xbf16>, vector<8x128xf32> -> vector<8x128xf32>
    %236 = vector.broadcast %55 : vector<1x128xf32> to vector<8x128xf32>
    %237 = arith.addf %235, %236 : vector<8x128xf32>
    %cst_128 = arith.constant 5.000000e-01 : f32
    %238 = vector.broadcast %cst_128 : f32 to vector<8x128xf32>
    %239 = arith.mulf %238, %237 : vector<8x128xf32>
    %cst_129 = arith.constant 4.471500e-02 : f32
    %240 = vector.broadcast %cst_129 : f32 to vector<8x128xf32>
    %241 = arith.mulf %240, %237 : vector<8x128xf32>
    %242 = arith.mulf %241, %237 : vector<8x128xf32>
    %243 = arith.mulf %242, %237 : vector<8x128xf32>
    %244 = arith.addf %237, %243 : vector<8x128xf32>
    %cst_130 = arith.constant 0.797884583 : f32
    %245 = vector.broadcast %cst_130 : f32 to vector<8x128xf32>
    %246 = arith.mulf %245, %244 : vector<8x128xf32>
    %247 = math.tanh %246 : vector<8x128xf32>
    %cst_131 = arith.constant 1.000000e+00 : f32
    %248 = vector.broadcast %cst_131 : f32 to vector<8x128xf32>
    %249 = arith.addf %248, %247 : vector<8x128xf32>
    %250 = arith.mulf %239, %249 : vector<8x128xf32>
    %251 = arith.truncf %250 : vector<8x128xf32> to vector<8x128xbf16>
    %cst_132 = arith.constant dense<0.000000e+00> : vector<8x64xf32>
    %252 = tpu.matmul %251, %57, %cst_132 {dimension_numbers = #tpu.dot_dimension_numbers<[1], [0], [0], [1], [0, 0, 1, 1], [], []>} : vector<8x128xbf16>, vector<128x64xbf16>, vector<8x64xf32> -> vector<8x64xf32>
    %253 = vector.broadcast %59 : vector<1x64xf32> to vector<8x64xf32>
    %254 = arith.addf %252, %253 : vector<8x64xf32>
    %255 = arith.addf %233, %254 : vector<8x64xf32>
    %c1 = arith.constant 1 : index
    %c0_133 = arith.constant 0 : index
    %c0_134 = arith.constant 0 : index
    %256 = vector.load %arg6[%c1, %c0_133, %c0_134] : memref<2x1x64xf32, #tpu.memory_space<vmem>>, vector<1x1x64xf32>
    %257 = vector.shape_cast %256 : vector<1x1x64xf32> to vector<1x64xf32>
    %c1_135 = arith.constant 1 : index
    %c0_136 = arith.constant 0 : index
    %c0_137 = arith.constant 0 : index
    %258 = vector.load %arg7[%c1_135, %c0_136, %c0_137] : memref<2x1x64xf32, #tpu.memory_space<vmem>>, vector<1x1x64xf32>
    %259 = vector.shape_cast %258 : vector<1x1x64xf32> to vector<1x64xf32>
    %c1_138 = arith.constant 1 : index
    %c0_139 = arith.constant 0 : index
    %c0_140 = arith.constant 0 : index
    %260 = vector.load %arg8[%c1_138, %c0_139, %c0_140] : memref<2x64x192xbf16, #tpu.memory_space<vmem>>, vector<1x64x192xbf16>
    %261 = vector.shape_cast %260 : vector<1x64x192xbf16> to vector<64x192xbf16>
    %c1_141 = arith.constant 1 : index
    %c0_142 = arith.constant 0 : index
    %c0_143 = arith.constant 0 : index
    %262 = vector.load %arg9[%c1_141, %c0_142, %c0_143] : memref<2x1x192xf32, #tpu.memory_space<vmem>>, vector<1x1x192xf32>
    %263 = vector.shape_cast %262 : vector<1x1x192xf32> to vector<1x192xf32>
    %c1_144 = arith.constant 1 : index
    %c0_145 = arith.constant 0 : index
    %c0_146 = arith.constant 0 : index
    %264 = vector.load %arg10[%c1_144, %c0_145, %c0_146] : memref<2x64x64xbf16, #tpu.memory_space<vmem>>, vector<1x64x64xbf16>
    %265 = vector.shape_cast %264 : vector<1x64x64xbf16> to vector<64x64xbf16>
    %c1_147 = arith.constant 1 : index
    %c0_148 = arith.constant 0 : index
    %c0_149 = arith.constant 0 : index
    %266 = vector.load %arg11[%c1_147, %c0_148, %c0_149] : memref<2x1x64xf32, #tpu.memory_space<vmem>>, vector<1x1x64xf32>
    %267 = vector.shape_cast %266 : vector<1x1x64xf32> to vector<1x64xf32>
    %c1_150 = arith.constant 1 : index
    %c0_151 = arith.constant 0 : index
    %c0_152 = arith.constant 0 : index
    %268 = vector.load %arg12[%c1_150, %c0_151, %c0_152] : memref<2x64x128xbf16, #tpu.memory_space<vmem>>, vector<1x64x128xbf16>
    %269 = vector.shape_cast %268 : vector<1x64x128xbf16> to vector<64x128xbf16>
    %c1_153 = arith.constant 1 : index
    %c0_154 = arith.constant 0 : index
    %c0_155 = arith.constant 0 : index
    %270 = vector.load %arg13[%c1_153, %c0_154, %c0_155] : memref<2x1x128xf32, #tpu.memory_space<vmem>>, vector<1x1x128xf32>
    %271 = vector.shape_cast %270 : vector<1x1x128xf32> to vector<1x128xf32>
    %c1_156 = arith.constant 1 : index
    %c0_157 = arith.constant 0 : index
    %c0_158 = arith.constant 0 : index
    %272 = vector.load %arg14[%c1_156, %c0_157, %c0_158] : memref<2x128x64xbf16, #tpu.memory_space<vmem>>, vector<1x128x64xbf16>
    %273 = vector.shape_cast %272 : vector<1x128x64xbf16> to vector<128x64xbf16>
    %c1_159 = arith.constant 1 : index
    %c0_160 = arith.constant 0 : index
    %c0_161 = arith.constant 0 : index
    %274 = vector.load %arg15[%c1_159, %c0_160, %c0_161] : memref<2x1x64xf32, #tpu.memory_space<vmem>>, vector<1x1x64xf32>
    %275 = vector.shape_cast %274 : vector<1x1x64xf32> to vector<1x64xf32>
    %c1_162 = arith.constant 1 : index
    %c0_163 = arith.constant 0 : index
    %c0_164 = arith.constant 0 : index
    %276 = vector.load %arg16[%c1_162, %c0_163, %c0_164] : memref<2x64x64xbf16, #tpu.memory_space<vmem>>, vector<1x64x64xbf16>
    %277 = vector.shape_cast %276 : vector<1x64x64xbf16> to vector<64x64xbf16>
    %c1_165 = arith.constant 1 : index
    %c0_166 = arith.constant 0 : index
    %c0_167 = arith.constant 0 : index
    %278 = vector.load %arg17[%c1_165, %c0_166, %c0_167] : memref<2x1x64xf32, #tpu.memory_space<vmem>>, vector<1x1x64xf32>
    %279 = vector.shape_cast %278 : vector<1x1x64xf32> to vector<1x64xf32>
    %c1_168 = arith.constant 1 : index
    %c0_169 = arith.constant 0 : index
    %c0_170 = arith.constant 0 : index
    %280 = vector.load %arg18[%c1_168, %c0_169, %c0_170] : memref<2x64x64xbf16, #tpu.memory_space<vmem>>, vector<1x64x64xbf16>
    %281 = vector.shape_cast %280 : vector<1x64x64xbf16> to vector<64x64xbf16>
    %c1_171 = arith.constant 1 : index
    %c0_172 = arith.constant 0 : index
    %c0_173 = arith.constant 0 : index
    %282 = vector.load %arg19[%c1_171, %c0_172, %c0_173] : memref<2x1x64xf32, #tpu.memory_space<vmem>>, vector<1x1x64xf32>
    %283 = vector.shape_cast %282 : vector<1x1x64xf32> to vector<1x64xf32>
    %c1_174 = arith.constant 1 : index
    %c0_175 = arith.constant 0 : index
    %c0_176 = arith.constant 0 : index
    %284 = vector.load %arg20[%c1_174, %c0_175, %c0_176] : memref<2x64x64xbf16, #tpu.memory_space<vmem>>, vector<1x64x64xbf16>
    %285 = vector.shape_cast %284 : vector<1x64x64xbf16> to vector<64x64xbf16>
    %c1_177 = arith.constant 1 : index
    %c0_178 = arith.constant 0 : index
    %c0_179 = arith.constant 0 : index
    %286 = vector.load %arg21[%c1_177, %c0_178, %c0_179] : memref<2x1x64xf32, #tpu.memory_space<vmem>>, vector<1x1x64xf32>
    %287 = vector.shape_cast %286 : vector<1x1x64xf32> to vector<1x64xf32>
    %c1_180 = arith.constant 1 : index
    %c0_181 = arith.constant 0 : index
    %c0_182 = arith.constant 0 : index
    %288 = vector.load %arg22[%c1_180, %c0_181, %c0_182] : memref<2x64x64xbf16, #tpu.memory_space<vmem>>, vector<1x64x64xbf16>
    %289 = vector.shape_cast %288 : vector<1x64x64xbf16> to vector<64x64xbf16>
    %c1_183 = arith.constant 1 : index
    %c0_184 = arith.constant 0 : index
    %c0_185 = arith.constant 0 : index
    %290 = vector.load %arg23[%c1_183, %c0_184, %c0_185] : memref<2x1x64xf32, #tpu.memory_space<vmem>>, vector<1x1x64xf32>
    %291 = vector.shape_cast %290 : vector<1x1x64xf32> to vector<1x64xf32>
    %c1_186 = arith.constant 1 : index
    %c0_187 = arith.constant 0 : index
    %c0_188 = arith.constant 0 : index
    %292 = vector.load %arg24[%c1_186, %c0_187, %c0_188] : memref<2x1x64xf32, #tpu.memory_space<vmem>>, vector<1x1x64xf32>
    %293 = vector.shape_cast %292 : vector<1x1x64xf32> to vector<1x64xf32>
    %c1_189 = arith.constant 1 : index
    %c0_190 = arith.constant 0 : index
    %c0_191 = arith.constant 0 : index
    %294 = vector.load %arg25[%c1_189, %c0_190, %c0_191] : memref<2x1x64xf32, #tpu.memory_space<vmem>>, vector<1x1x64xf32>
    %295 = vector.shape_cast %294 : vector<1x1x64xf32> to vector<1x64xf32>
    %c1_192 = arith.constant 1 : index
    %c0_193 = arith.constant 0 : index
    %c0_194 = arith.constant 0 : index
    %296 = vector.load %arg26[%c1_192, %c0_193, %c0_194] : memref<2x64x256xbf16, #tpu.memory_space<vmem>>, vector<1x64x256xbf16>
    %297 = vector.shape_cast %296 : vector<1x64x256xbf16> to vector<64x256xbf16>
    %c1_195 = arith.constant 1 : index
    %c0_196 = arith.constant 0 : index
    %c0_197 = arith.constant 0 : index
    %298 = vector.load %arg27[%c1_195, %c0_196, %c0_197] : memref<2x1x256xf32, #tpu.memory_space<vmem>>, vector<1x1x256xf32>
    %299 = vector.shape_cast %298 : vector<1x1x256xf32> to vector<1x256xf32>
    %c1_198 = arith.constant 1 : index
    %c0_199 = arith.constant 0 : index
    %c0_200 = arith.constant 0 : index
    %300 = vector.load %arg28[%c1_198, %c0_199, %c0_200] : memref<2x256x64xbf16, #tpu.memory_space<vmem>>, vector<1x256x64xbf16>
    %301 = vector.shape_cast %300 : vector<1x256x64xbf16> to vector<256x64xbf16>
    %c1_201 = arith.constant 1 : index
    %c0_202 = arith.constant 0 : index
    %c0_203 = arith.constant 0 : index
    %302 = vector.load %arg29[%c1_201, %c0_202, %c0_203] : memref<2x1x64xf32, #tpu.memory_space<vmem>>, vector<1x1x64xf32>
    %303 = vector.shape_cast %302 : vector<1x1x64xf32> to vector<1x64xf32>
    %c1_204 = arith.constant 1 : index
    %c0_205 = arith.constant 0 : index
    %c0_206 = arith.constant 0 : index
    %304 = vector.load %arg30[%c1_204, %c0_205, %c0_206] : memref<2x64x128xbf16, #tpu.memory_space<vmem>>, vector<1x64x128xbf16>
    %305 = vector.shape_cast %304 : vector<1x64x128xbf16> to vector<64x128xbf16>
    %c1_207 = arith.constant 1 : index
    %c0_208 = arith.constant 0 : index
    %c0_209 = arith.constant 0 : index
    %306 = vector.load %arg31[%c1_207, %c0_208, %c0_209] : memref<2x1x128xf32, #tpu.memory_space<vmem>>, vector<1x1x128xf32>
    %307 = vector.shape_cast %306 : vector<1x1x128xf32> to vector<1x128xf32>
    %c1_210 = arith.constant 1 : index
    %c0_211 = arith.constant 0 : index
    %c0_212 = arith.constant 0 : index
    %308 = vector.load %arg32[%c1_210, %c0_211, %c0_212] : memref<2x128x64xbf16, #tpu.memory_space<vmem>>, vector<1x128x64xbf16>
    %309 = vector.shape_cast %308 : vector<1x128x64xbf16> to vector<128x64xbf16>
    %c1_213 = arith.constant 1 : index
    %c0_214 = arith.constant 0 : index
    %c0_215 = arith.constant 0 : index
    %310 = vector.load %arg33[%c1_213, %c0_214, %c0_215] : memref<2x1x64xf32, #tpu.memory_space<vmem>>, vector<1x1x64xf32>
    %311 = vector.shape_cast %310 : vector<1x1x64xf32> to vector<1x64xf32>
    %cst_216 = arith.constant dense<0.000000e+00> : vector<8xf32>
    %312 = vector.multi_reduction <add>, %255, %cst_216 [1] : vector<8x64xf32> to vector<8xf32>
    %313 = vector.shape_cast %312 : vector<8xf32> to vector<8x1xf32>
    %cst_217 = arith.constant 6.400000e+01 : f32
    %314 = vector.broadcast %cst_217 : f32 to vector<8x1xf32>
    %315 = arith.divf %313, %314 : vector<8x1xf32>
    %316 = vector.broadcast %315 : vector<8x1xf32> to vector<8x64xf32>
    %317 = arith.subf %255, %316 : vector<8x64xf32>
    %318 = arith.mulf %317, %317 : vector<8x64xf32>
    %cst_218 = arith.constant dense<0.000000e+00> : vector<8xf32>
    %319 = vector.multi_reduction <add>, %318, %cst_218 [1] : vector<8x64xf32> to vector<8xf32>
    %320 = vector.shape_cast %319 : vector<8xf32> to vector<8x1xf32>
    %cst_219 = arith.constant 6.400000e+01 : f32
    %321 = vector.broadcast %cst_219 : f32 to vector<8x1xf32>
    %322 = arith.divf %320, %321 : vector<8x1xf32>
    %323 = vector.broadcast %315 : vector<8x1xf32> to vector<8x64xf32>
    %324 = arith.subf %255, %323 : vector<8x64xf32>
    %cst_220 = arith.constant 9.99999974E-6 : f32
    %325 = vector.broadcast %cst_220 : f32 to vector<8x1xf32>
    %326 = arith.addf %322, %325 : vector<8x1xf32>
    %327 = math.rsqrt %326 : vector<8x1xf32>
    %328 = vector.broadcast %327 : vector<8x1xf32> to vector<8x64xf32>
    %329 = arith.mulf %324, %328 : vector<8x64xf32>
    %330 = vector.broadcast %257 : vector<1x64xf32> to vector<8x64xf32>
    %331 = arith.mulf %329, %330 : vector<8x64xf32>
    %332 = vector.broadcast %259 : vector<1x64xf32> to vector<8x64xf32>
    %333 = arith.addf %331, %332 : vector<8x64xf32>
    %334 = arith.truncf %333 : vector<8x64xf32> to vector<8x64xbf16>
    %cst_221 = arith.constant dense<0.000000e+00> : vector<8x192xf32>
    %335 = tpu.matmul %334, %261, %cst_221 {dimension_numbers = #tpu.dot_dimension_numbers<[1], [0], [0], [1], [0, 0, 1, 1], [], []>} : vector<8x64xbf16>, vector<64x192xbf16>, vector<8x192xf32> -> vector<8x192xf32>
    %336 = vector.broadcast %263 : vector<1x192xf32> to vector<8x192xf32>
    %337 = arith.addf %335, %336 : vector<8x192xf32>
    %338 = vector.extract_strided_slice %337 {offsets = [0, 0], sizes = [8, 64], strides = [1, 1]} : vector<8x192xf32> to vector<8x64xf32>
    %339 = vector.extract_strided_slice %337 {offsets = [0, 64], sizes = [8, 64], strides = [1, 1]} : vector<8x192xf32> to vector<8x64xf32>
    %340 = vector.extract_strided_slice %337 {offsets = [0, 128], sizes = [8, 64], strides = [1, 1]} : vector<8x192xf32> to vector<8x64xf32>
    %341 = vector.shape_cast %338 : vector<8x64xf32> to vector<8x4x16xf32>
    %342 = tpu.transpose %341, [1, 0, 2] : vector<8x4x16xf32> -> vector<4x8x16xf32>
    %343 = vector.shape_cast %339 : vector<8x64xf32> to vector<8x4x16xf32>
    %344 = tpu.transpose %343, [1, 0, 2] : vector<8x4x16xf32> -> vector<4x8x16xf32>
    %345 = vector.shape_cast %340 : vector<8x64xf32> to vector<8x4x16xf32>
    %346 = tpu.transpose %345, [1, 0, 2] : vector<8x4x16xf32> -> vector<4x8x16xf32>
    %347 = arith.truncf %342 : vector<4x8x16xf32> to vector<4x8x16xbf16>
    %348 = arith.truncf %344 : vector<4x8x16xf32> to vector<4x8x16xbf16>
    "tpu.trace_start"() <{level = 10 : i32, message = "htd,hsd->hts"}> : () -> ()
    %cst_222 = arith.constant dense<0.000000e+00> : vector<4x8x8xf32>
    %349 = tpu.matmul %347, %348, %cst_222 {dimension_numbers = #tpu.dot_dimension_numbers<[2], [2], [1], [1], [0, 0, 0, 1, 1, 1], [0], [0]>} : vector<4x8x16xbf16>, vector<4x8x16xbf16>, vector<4x8x8xf32> -> vector<4x8x8xf32>
    "tpu.trace_stop"() : () -> ()
    %cst_223 = arith.constant 2.500000e-01 : f32
    %350 = vector.broadcast %cst_223 : f32 to vector<4x8x8xf32>
    %351 = arith.mulf %349, %350 : vector<4x8x8xf32>
    %352 = tpu.iota {dimensions = array<i32: 1>} : vector<4x8x8xi32>
    %353 = tpu.iota {dimensions = array<i32: 2>} : vector<4x8x8xi32>
    %354 = arith.cmpi sle, %353, %352 : vector<4x8x8xi32>
    %cst_224 = arith.constant -1.000000e+30 : f32
    %355 = vector.broadcast %cst_224 : f32 to vector<4x8x8xf32>
    %356 = arith.select %354, %351, %355 : vector<4x8x8xi1>, vector<4x8x8xf32>
    %cst_225 = arith.constant dense<0xFF800000> : vector<4x8xf32>
    %357 = vector.multi_reduction <maximumf>, %356, %cst_225 [2] : vector<4x8x8xf32> to vector<4x8xf32>
    %358 = vector.shape_cast %357 : vector<4x8xf32> to vector<4x8x1xf32>
    %359 = vector.broadcast %358 : vector<4x8x1xf32> to vector<4x8x8xf32>
    %360 = arith.subf %356, %359 : vector<4x8x8xf32>
    %361 = math.exp %360 : vector<4x8x8xf32>
    %cst_226 = arith.constant dense<0.000000e+00> : vector<4x8xf32>
    %362 = vector.multi_reduction <add>, %361, %cst_226 [2] : vector<4x8x8xf32> to vector<4x8xf32>
    %363 = vector.shape_cast %362 : vector<4x8xf32> to vector<4x8x1xf32>
    %364 = tpu.reciprocal %363 {approx = true} : vector<4x8x1xf32> -> vector<4x8x1xf32>
    %365 = vector.broadcast %364 : vector<4x8x1xf32> to vector<4x8x8xf32>
    %366 = arith.mulf %361, %365 : vector<4x8x8xf32>
    %367 = arith.truncf %366 : vector<4x8x8xf32> to vector<4x8x8xbf16>
    %368 = arith.truncf %346 : vector<4x8x16xf32> to vector<4x8x16xbf16>
    "tpu.trace_start"() <{level = 10 : i32, message = "hts,hsd->htd"}> : () -> ()
    %cst_227 = arith.constant dense<0.000000e+00> : vector<4x8x16xf32>
    %369 = tpu.matmul %367, %368, %cst_227 {dimension_numbers = #tpu.dot_dimension_numbers<[2], [1], [1], [2], [0, 0, 0, 1, 1, 2], [0], [0]>} : vector<4x8x8xbf16>, vector<4x8x16xbf16>, vector<4x8x16xf32> -> vector<4x8x16xf32>
    "tpu.trace_stop"() : () -> ()
    %370 = tpu.transpose %369, [1, 0, 2] : vector<4x8x16xf32> -> vector<8x4x16xf32>
    %371 = vector.shape_cast %370 : vector<8x4x16xf32> to vector<8x64xf32>
    %372 = arith.truncf %371 : vector<8x64xf32> to vector<8x64xbf16>
    %cst_228 = arith.constant dense<0.000000e+00> : vector<8x64xf32>
    %373 = tpu.matmul %372, %265, %cst_228 {dimension_numbers = #tpu.dot_dimension_numbers<[1], [0], [0], [1], [0, 0, 1, 1], [], []>} : vector<8x64xbf16>, vector<64x64xbf16>, vector<8x64xf32> -> vector<8x64xf32>
    %374 = vector.broadcast %267 : vector<1x64xf32> to vector<8x64xf32>
    %375 = arith.addf %373, %374 : vector<8x64xf32>
    %376 = arith.addf %255, %375 : vector<8x64xf32>
    %377 = arith.truncf %376 : vector<8x64xf32> to vector<8x64xbf16>
    %cst_229 = arith.constant dense<0.000000e+00> : vector<8x128xf32>
    %378 = tpu.matmul %377, %269, %cst_229 {dimension_numbers = #tpu.dot_dimension_numbers<[1], [0], [0], [1], [0, 0, 1, 1], [], []>} : vector<8x64xbf16>, vector<64x128xbf16>, vector<8x128xf32> -> vector<8x128xf32>
    %379 = vector.broadcast %271 : vector<1x128xf32> to vector<8x128xf32>
    %380 = arith.addf %378, %379 : vector<8x128xf32>
    %cst_230 = arith.constant 5.000000e-01 : f32
    %381 = vector.broadcast %cst_230 : f32 to vector<8x128xf32>
    %382 = arith.mulf %381, %380 : vector<8x128xf32>
    %cst_231 = arith.constant 4.471500e-02 : f32
    %383 = vector.broadcast %cst_231 : f32 to vector<8x128xf32>
    %384 = arith.mulf %383, %380 : vector<8x128xf32>
    %385 = arith.mulf %384, %380 : vector<8x128xf32>
    %386 = arith.mulf %385, %380 : vector<8x128xf32>
    %387 = arith.addf %380, %386 : vector<8x128xf32>
    %cst_232 = arith.constant 0.797884583 : f32
    %388 = vector.broadcast %cst_232 : f32 to vector<8x128xf32>
    %389 = arith.mulf %388, %387 : vector<8x128xf32>
    %390 = math.tanh %389 : vector<8x128xf32>
    %cst_233 = arith.constant 1.000000e+00 : f32
    %391 = vector.broadcast %cst_233 : f32 to vector<8x128xf32>
    %392 = arith.addf %391, %390 : vector<8x128xf32>
    %393 = arith.mulf %382, %392 : vector<8x128xf32>
    %394 = arith.truncf %393 : vector<8x128xf32> to vector<8x128xbf16>
    %cst_234 = arith.constant dense<0.000000e+00> : vector<8x64xf32>
    %395 = tpu.matmul %394, %273, %cst_234 {dimension_numbers = #tpu.dot_dimension_numbers<[1], [0], [0], [1], [0, 0, 1, 1], [], []>} : vector<8x128xbf16>, vector<128x64xbf16>, vector<8x64xf32> -> vector<8x64xf32>
    %396 = vector.broadcast %275 : vector<1x64xf32> to vector<8x64xf32>
    %397 = arith.addf %395, %396 : vector<8x64xf32>
    %398 = arith.addf %376, %397 : vector<8x64xf32>
    %399 = arith.truncf %398 : vector<8x64xf32> to vector<8x64xbf16>
    %cst_235 = arith.constant dense<0.000000e+00> : vector<8x64xf32>
    %400 = tpu.matmul %399, %277, %cst_235 {dimension_numbers = #tpu.dot_dimension_numbers<[1], [0], [0], [1], [0, 0, 1, 1], [], []>} : vector<8x64xbf16>, vector<64x64xbf16>, vector<8x64xf32> -> vector<8x64xf32>
    %401 = vector.broadcast %279 : vector<1x64xf32> to vector<8x64xf32>
    %402 = arith.addf %400, %401 : vector<8x64xf32>
    %403 = arith.truncf %3 : vector<8x64xf32> to vector<8x64xbf16>
    %cst_236 = arith.constant dense<0.000000e+00> : vector<8x64xf32>
    %404 = tpu.matmul %403, %281, %cst_236 {dimension_numbers = #tpu.dot_dimension_numbers<[1], [0], [0], [1], [0, 0, 1, 1], [], []>} : vector<8x64xbf16>, vector<64x64xbf16>, vector<8x64xf32> -> vector<8x64xf32>
    %405 = vector.broadcast %283 : vector<1x64xf32> to vector<8x64xf32>
    %406 = arith.addf %404, %405 : vector<8x64xf32>
    %407 = arith.truncf %3 : vector<8x64xf32> to vector<8x64xbf16>
    %cst_237 = arith.constant dense<0.000000e+00> : vector<8x64xf32>
    %408 = tpu.matmul %407, %285, %cst_237 {dimension_numbers = #tpu.dot_dimension_numbers<[1], [0], [0], [1], [0, 0, 1, 1], [], []>} : vector<8x64xbf16>, vector<64x64xbf16>, vector<8x64xf32> -> vector<8x64xf32>
    %409 = vector.broadcast %287 : vector<1x64xf32> to vector<8x64xf32>
    %410 = arith.addf %408, %409 : vector<8x64xf32>
    %411 = vector.shape_cast %402 : vector<8x64xf32> to vector<8x4x16xf32>
    %412 = tpu.transpose %411, [1, 0, 2] : vector<8x4x16xf32> -> vector<4x8x16xf32>
    %413 = vector.shape_cast %406 : vector<8x64xf32> to vector<8x4x16xf32>
    %414 = tpu.transpose %413, [1, 0, 2] : vector<8x4x16xf32> -> vector<4x8x16xf32>
    %415 = vector.shape_cast %410 : vector<8x64xf32> to vector<8x4x16xf32>
    %416 = tpu.transpose %415, [1, 0, 2] : vector<8x4x16xf32> -> vector<4x8x16xf32>
    %417 = arith.truncf %412 : vector<4x8x16xf32> to vector<4x8x16xbf16>
    %418 = arith.truncf %414 : vector<4x8x16xf32> to vector<4x8x16xbf16>
    "tpu.trace_start"() <{level = 10 : i32, message = "htd,hsd->hts"}> : () -> ()
    %cst_238 = arith.constant dense<0.000000e+00> : vector<4x8x8xf32>
    %419 = tpu.matmul %417, %418, %cst_238 {dimension_numbers = #tpu.dot_dimension_numbers<[2], [2], [1], [1], [0, 0, 0, 1, 1, 1], [0], [0]>} : vector<4x8x16xbf16>, vector<4x8x16xbf16>, vector<4x8x8xf32> -> vector<4x8x8xf32>
    "tpu.trace_stop"() : () -> ()
    %cst_239 = arith.constant 2.500000e-01 : f32
    %420 = vector.broadcast %cst_239 : f32 to vector<4x8x8xf32>
    %421 = arith.mulf %419, %420 : vector<4x8x8xf32>
    %cst_240 = arith.constant dense<0xFF800000> : vector<4x8xf32>
    %422 = vector.multi_reduction <maximumf>, %421, %cst_240 [2] : vector<4x8x8xf32> to vector<4x8xf32>
    %423 = vector.shape_cast %422 : vector<4x8xf32> to vector<4x8x1xf32>
    %424 = vector.broadcast %423 : vector<4x8x1xf32> to vector<4x8x8xf32>
    %425 = arith.subf %421, %424 : vector<4x8x8xf32>
    %426 = math.exp %425 : vector<4x8x8xf32>
    %cst_241 = arith.constant dense<0.000000e+00> : vector<4x8xf32>
    %427 = vector.multi_reduction <add>, %426, %cst_241 [2] : vector<4x8x8xf32> to vector<4x8xf32>
    %428 = vector.shape_cast %427 : vector<4x8xf32> to vector<4x8x1xf32>
    %429 = tpu.reciprocal %428 {approx = true} : vector<4x8x1xf32> -> vector<4x8x1xf32>
    %430 = vector.broadcast %429 : vector<4x8x1xf32> to vector<4x8x8xf32>
    %431 = arith.mulf %426, %430 : vector<4x8x8xf32>
    %432 = arith.truncf %431 : vector<4x8x8xf32> to vector<4x8x8xbf16>
    %433 = arith.truncf %416 : vector<4x8x16xf32> to vector<4x8x16xbf16>
    "tpu.trace_start"() <{level = 10 : i32, message = "hts,hsd->htd"}> : () -> ()
    %cst_242 = arith.constant dense<0.000000e+00> : vector<4x8x16xf32>
    %434 = tpu.matmul %432, %433, %cst_242 {dimension_numbers = #tpu.dot_dimension_numbers<[2], [1], [1], [2], [0, 0, 0, 1, 1, 2], [0], [0]>} : vector<4x8x8xbf16>, vector<4x8x16xbf16>, vector<4x8x16xf32> -> vector<4x8x16xf32>
    "tpu.trace_stop"() : () -> ()
    %435 = tpu.transpose %434, [1, 0, 2] : vector<4x8x16xf32> -> vector<8x4x16xf32>
    %436 = vector.shape_cast %435 : vector<8x4x16xf32> to vector<8x64xf32>
    %437 = arith.truncf %436 : vector<8x64xf32> to vector<8x64xbf16>
    %cst_243 = arith.constant dense<0.000000e+00> : vector<8x64xf32>
    %438 = tpu.matmul %437, %289, %cst_243 {dimension_numbers = #tpu.dot_dimension_numbers<[1], [0], [0], [1], [0, 0, 1, 1], [], []>} : vector<8x64xbf16>, vector<64x64xbf16>, vector<8x64xf32> -> vector<8x64xf32>
    %439 = vector.broadcast %291 : vector<1x64xf32> to vector<8x64xf32>
    %440 = arith.addf %438, %439 : vector<8x64xf32>
    %441 = arith.addf %398, %440 : vector<8x64xf32>
    %cst_244 = arith.constant dense<0.000000e+00> : vector<8xf32>
    %442 = vector.multi_reduction <add>, %441, %cst_244 [1] : vector<8x64xf32> to vector<8xf32>
    %443 = vector.shape_cast %442 : vector<8xf32> to vector<8x1xf32>
    %cst_245 = arith.constant 6.400000e+01 : f32
    %444 = vector.broadcast %cst_245 : f32 to vector<8x1xf32>
    %445 = arith.divf %443, %444 : vector<8x1xf32>
    %446 = vector.broadcast %445 : vector<8x1xf32> to vector<8x64xf32>
    %447 = arith.subf %441, %446 : vector<8x64xf32>
    %448 = arith.mulf %447, %447 : vector<8x64xf32>
    %cst_246 = arith.constant dense<0.000000e+00> : vector<8xf32>
    %449 = vector.multi_reduction <add>, %448, %cst_246 [1] : vector<8x64xf32> to vector<8xf32>
    %450 = vector.shape_cast %449 : vector<8xf32> to vector<8x1xf32>
    %cst_247 = arith.constant 6.400000e+01 : f32
    %451 = vector.broadcast %cst_247 : f32 to vector<8x1xf32>
    %452 = arith.divf %450, %451 : vector<8x1xf32>
    %453 = vector.broadcast %445 : vector<8x1xf32> to vector<8x64xf32>
    %454 = arith.subf %441, %453 : vector<8x64xf32>
    %cst_248 = arith.constant 9.99999974E-6 : f32
    %455 = vector.broadcast %cst_248 : f32 to vector<8x1xf32>
    %456 = arith.addf %452, %455 : vector<8x1xf32>
    %457 = math.rsqrt %456 : vector<8x1xf32>
    %458 = vector.broadcast %457 : vector<8x1xf32> to vector<8x64xf32>
    %459 = arith.mulf %454, %458 : vector<8x64xf32>
    %460 = vector.broadcast %293 : vector<1x64xf32> to vector<8x64xf32>
    %461 = arith.mulf %459, %460 : vector<8x64xf32>
    %462 = vector.broadcast %295 : vector<1x64xf32> to vector<8x64xf32>
    %463 = arith.addf %461, %462 : vector<8x64xf32>
    %464 = arith.truncf %463 : vector<8x64xf32> to vector<8x64xbf16>
    %cst_249 = arith.constant dense<0.000000e+00> : vector<8x256xf32>
    %465 = tpu.matmul %464, %297, %cst_249 {dimension_numbers = #tpu.dot_dimension_numbers<[1], [0], [0], [1], [0, 0, 1, 1], [], []>} : vector<8x64xbf16>, vector<64x256xbf16>, vector<8x256xf32> -> vector<8x256xf32>
    %466 = vector.broadcast %299 : vector<1x256xf32> to vector<8x256xf32>
    %467 = arith.addf %465, %466 : vector<8x256xf32>
    %cst_250 = arith.constant 5.000000e-01 : f32
    %468 = vector.broadcast %cst_250 : f32 to vector<8x256xf32>
    %469 = arith.mulf %468, %467 : vector<8x256xf32>
    %cst_251 = arith.constant 4.471500e-02 : f32
    %470 = vector.broadcast %cst_251 : f32 to vector<8x256xf32>
    %471 = arith.mulf %470, %467 : vector<8x256xf32>
    %472 = arith.mulf %471, %467 : vector<8x256xf32>
    %473 = arith.mulf %472, %467 : vector<8x256xf32>
    %474 = arith.addf %467, %473 : vector<8x256xf32>
    %cst_252 = arith.constant 0.797884583 : f32
    %475 = vector.broadcast %cst_252 : f32 to vector<8x256xf32>
    %476 = arith.mulf %475, %474 : vector<8x256xf32>
    %477 = math.tanh %476 : vector<8x256xf32>
    %cst_253 = arith.constant 1.000000e+00 : f32
    %478 = vector.broadcast %cst_253 : f32 to vector<8x256xf32>
    %479 = arith.addf %478, %477 : vector<8x256xf32>
    %480 = arith.mulf %469, %479 : vector<8x256xf32>
    %481 = arith.truncf %480 : vector<8x256xf32> to vector<8x256xbf16>
    %cst_254 = arith.constant dense<0.000000e+00> : vector<8x64xf32>
    %482 = tpu.matmul %481, %301, %cst_254 {dimension_numbers = #tpu.dot_dimension_numbers<[1], [0], [0], [1], [0, 0, 1, 1], [], []>} : vector<8x256xbf16>, vector<256x64xbf16>, vector<8x64xf32> -> vector<8x64xf32>
    %483 = vector.broadcast %303 : vector<1x64xf32> to vector<8x64xf32>
    %484 = arith.addf %482, %483 : vector<8x64xf32>
    %485 = arith.addf %441, %484 : vector<8x64xf32>
    %486 = arith.truncf %485 : vector<8x64xf32> to vector<8x64xbf16>
    %cst_255 = arith.constant dense<0.000000e+00> : vector<8x128xf32>
    %487 = tpu.matmul %486, %305, %cst_255 {dimension_numbers = #tpu.dot_dimension_numbers<[1], [0], [0], [1], [0, 0, 1, 1], [], []>} : vector<8x64xbf16>, vector<64x128xbf16>, vector<8x128xf32> -> vector<8x128xf32>
    %488 = vector.broadcast %307 : vector<1x128xf32> to vector<8x128xf32>
    %489 = arith.addf %487, %488 : vector<8x128xf32>
    %cst_256 = arith.constant 5.000000e-01 : f32
    %490 = vector.broadcast %cst_256 : f32 to vector<8x128xf32>
    %491 = arith.mulf %490, %489 : vector<8x128xf32>
    %cst_257 = arith.constant 4.471500e-02 : f32
    %492 = vector.broadcast %cst_257 : f32 to vector<8x128xf32>
    %493 = arith.mulf %492, %489 : vector<8x128xf32>
    %494 = arith.mulf %493, %489 : vector<8x128xf32>
    %495 = arith.mulf %494, %489 : vector<8x128xf32>
    %496 = arith.addf %489, %495 : vector<8x128xf32>
    %cst_258 = arith.constant 0.797884583 : f32
    %497 = vector.broadcast %cst_258 : f32 to vector<8x128xf32>
    %498 = arith.mulf %497, %496 : vector<8x128xf32>
    %499 = math.tanh %498 : vector<8x128xf32>
    %cst_259 = arith.constant 1.000000e+00 : f32
    %500 = vector.broadcast %cst_259 : f32 to vector<8x128xf32>
    %501 = arith.addf %500, %499 : vector<8x128xf32>
    %502 = arith.mulf %491, %501 : vector<8x128xf32>
    %503 = arith.truncf %502 : vector<8x128xf32> to vector<8x128xbf16>
    %cst_260 = arith.constant dense<0.000000e+00> : vector<8x64xf32>
    %504 = tpu.matmul %503, %309, %cst_260 {dimension_numbers = #tpu.dot_dimension_numbers<[1], [0], [0], [1], [0, 0, 1, 1], [], []>} : vector<8x128xbf16>, vector<128x64xbf16>, vector<8x64xf32> -> vector<8x64xf32>
    %505 = vector.broadcast %311 : vector<1x64xf32> to vector<8x64xf32>
    %506 = arith.addf %504, %505 : vector<8x64xf32>
    %507 = arith.addf %485, %506 : vector<8x64xf32>
    %c0_261 = arith.constant 0 : index
    %c0_262 = arith.constant 0 : index
    %508 = vector.load %arg3[%c0_261, %c0_262] : memref<1x64xf32, #tpu.memory_space<vmem>>, vector<1x64xf32>
    %c0_263 = arith.constant 0 : index
    %c0_264 = arith.constant 0 : index
    %509 = vector.load %arg4[%c0_263, %c0_264] : memref<1x64xf32, #tpu.memory_space<vmem>>, vector<1x64xf32>
    %cst_265 = arith.constant dense<0.000000e+00> : vector<8xf32>
    %510 = vector.multi_reduction <add>, %507, %cst_265 [1] : vector<8x64xf32> to vector<8xf32>
    %511 = vector.shape_cast %510 : vector<8xf32> to vector<8x1xf32>
    %cst_266 = arith.constant 6.400000e+01 : f32
    %512 = vector.broadcast %cst_266 : f32 to vector<8x1xf32>
    %513 = arith.divf %511, %512 : vector<8x1xf32>
    %514 = vector.broadcast %513 : vector<8x1xf32> to vector<8x64xf32>
    %515 = arith.subf %507, %514 : vector<8x64xf32>
    %516 = arith.mulf %515, %515 : vector<8x64xf32>
    %cst_267 = arith.constant dense<0.000000e+00> : vector<8xf32>
    %517 = vector.multi_reduction <add>, %516, %cst_267 [1] : vector<8x64xf32> to vector<8xf32>
    %518 = vector.shape_cast %517 : vector<8xf32> to vector<8x1xf32>
    %cst_268 = arith.constant 6.400000e+01 : f32
    %519 = vector.broadcast %cst_268 : f32 to vector<8x1xf32>
    %520 = arith.divf %518, %519 : vector<8x1xf32>
    %521 = vector.broadcast %513 : vector<8x1xf32> to vector<8x64xf32>
    %522 = arith.subf %507, %521 : vector<8x64xf32>
    %cst_269 = arith.constant 9.99999974E-6 : f32
    %523 = vector.broadcast %cst_269 : f32 to vector<8x1xf32>
    %524 = arith.addf %520, %523 : vector<8x1xf32>
    %525 = math.rsqrt %524 : vector<8x1xf32>
    %526 = vector.broadcast %525 : vector<8x1xf32> to vector<8x64xf32>
    %527 = arith.mulf %522, %526 : vector<8x64xf32>
    %528 = vector.broadcast %508 : vector<1x64xf32> to vector<8x64xf32>
    %529 = arith.mulf %527, %528 : vector<8x64xf32>
    %530 = vector.broadcast %509 : vector<1x64xf32> to vector<8x64xf32>
    %531 = arith.addf %529, %530 : vector<8x64xf32>
    %c0_270 = arith.constant 0 : index
    %c0_271 = arith.constant 0 : index
    %532 = vector.load %arg5[%c0_270, %c0_271] : memref<64x128xbf16, #tpu.memory_space<vmem>>, vector<64x128xbf16>
    %533 = arith.truncf %531 : vector<8x64xf32> to vector<8x64xbf16>
    %cst_272 = arith.constant dense<0.000000e+00> : vector<8x128xf32>
    %534 = tpu.matmul %533, %532, %cst_272 {dimension_numbers = #tpu.dot_dimension_numbers<[1], [0], [0], [1], [0, 0, 1, 1], [], []>} : vector<8x64xbf16>, vector<64x128xbf16>, vector<8x128xf32> -> vector<8x128xf32>
    %c0_273 = arith.constant 0 : index
    %c0_274 = arith.constant 0 : index
    %c0_275 = arith.constant 0 : index
    %535 = vector.load %arg34[%c0_273, %c0_274, %c0_275] : memref<1x8x128xf32, #tpu.memory_space<vmem>>, vector<1x8x128xf32>
    %536 = vector.shape_cast %535 : vector<1x8x128xf32> to vector<8x128xf32>
    %537 = vector.shape_cast %534 : vector<8x128xf32> to vector<1x8x128xf32>
    tpu.vector_store %arg34[%c0_273, %c0_274, %c0_275], %537 {strides = array<i32>} : memref<1x8x128xf32, #tpu.memory_space<vmem>>, vector<1x8x128xf32>,
    return
  }
  func.func @transform_0(%arg0: i32) -> (i32, i32, i32) {
    %c0_i32 = arith.constant 0 : i32
    %c0_i32_0 = arith.constant 0 : i32
    %c0_i32_1 = arith.constant 0 : i32
    return %arg0, %c0_i32, %c0_i32_0 : i32, i32, i32
  }
  func.func @transform_1(%arg0: i32) -> (i32, i32, i32) {
    %c0_i32 = arith.constant 0 : i32
    %c0_i32_0 = arith.constant 0 : i32
    %c0_i32_1 = arith.constant 0 : i32
    return %arg0, %c0_i32, %c0_i32_0 : i32, i32, i32
  }
  func.func @transform_2(%arg0: i32) -> (i32, i32) {
    %c0_i32 = arith.constant 0 : i32
    %c0_i32_0 = arith.constant 0 : i32
    %c0_i32_1 = arith.constant 0 : i32
    return %c0_i32, %c0_i32_0 : i32, i32
  }
  func.func @transform_3(%arg0: i32) -> (i32, i32) {
    %c0_i32 = arith.constant 0 : i32
    %c0_i32_0 = arith.constant 0 : i32
    %c0_i32_1 = arith.constant 0 : i32
    return %c0_i32, %c0_i32_0 : i32, i32
  }
  func.func @transform_4(%arg0: i32) -> (i32, i32) {
    %c0_i32 = arith.constant 0 : i32
    %c0_i32_0 = arith.constant 0 : i32
    %c0_i32_1 = arith.constant 0 : i32
    return %c0_i32, %c0_i32_0 : i32, i32
  }
  func.func @transform_5(%arg0: i32) -> (i32, i32, i32) {
    %c0_i32 = arith.constant 0 : i32
    %c0_i32_0 = arith.constant 0 : i32
    %c0_i32_1 = arith.constant 0 : i32
    %c0_i32_2 = arith.constant 0 : i32
    return %c0_i32, %c0_i32_0, %c0_i32_1 : i32, i32, i32
  }
  func.func @transform_6(%arg0: i32) -> (i32, i32, i32) {
    %c0_i32 = arith.constant 0 : i32
    %c0_i32_0 = arith.constant 0 : i32
    %c0_i32_1 = arith.constant 0 : i32
    %c0_i32_2 = arith.constant 0 : i32
    return %c0_i32, %c0_i32_0, %c0_i32_1 : i32, i32, i32
  }
  func.func @transform_7(%arg0: i32) -> (i32, i32, i32) {
    %c0_i32 = arith.constant 0 : i32
    %c0_i32_0 = arith.constant 0 : i32
    %c0_i32_1 = arith.constant 0 : i32
    %c0_i32_2 = arith.constant 0 : i32
    return %c0_i32, %c0_i32_0, %c0_i32_1 : i32, i32, i32
  }
  func.func @transform_8(%arg0: i32) -> (i32, i32, i32) {
    %c0_i32 = arith.constant 0 : i32
    %c0_i32_0 = arith.constant 0 : i32
    %c0_i32_1 = arith.constant 0 : i32
    %c0_i32_2 = arith.constant 0 : i32
    return %c0_i32, %c0_i32_0, %c0_i32_1 : i32, i32, i32
  }
  func.func @transform_9(%arg0: i32) -> (i32, i32, i32) {
    %c0_i32 = arith.constant 0 : i32
    %c0_i32_0 = arith.constant 0 : i32
    %c0_i32_1 = arith.constant 0 : i32
    %c0_i32_2 = arith.constant 0 : i32
    return %c0_i32, %c0_i32_0, %c0_i32_1 : i32, i32, i32
  }
  func.func @transform_10(%arg0: i32) -> (i32, i32, i32) {
    %c0_i32 = arith.constant 0 : i32
    %c0_i32_0 = arith.constant 0 : i32
    %c0_i32_1 = arith.constant 0 : i32
    %c0_i32_2 = arith.constant 0 : i32
    return %c0_i32, %c0_i32_0, %c0_i32_1 : i32, i32, i32
  }
  func.func @transform_11(%arg0: i32) -> (i32, i32, i32) {
    %c0_i32 = arith.constant 0 : i32
    %c0_i32_0 = arith.constant 0 : i32
    %c0_i32_1 = arith.constant 0 : i32
    %c0_i32_2 = arith.constant 0 : i32
    return %c0_i32, %c0_i32_0, %c0_i32_1 : i32, i32, i32
  }
  func.func @transform_12(%arg0: i32) -> (i32, i32, i32) {
    %c0_i32 = arith.constant 0 : i32
    %c0_i32_0 = arith.constant 0 : i32
    %c0_i32_1 = arith.constant 0 : i32
    %c0_i32_2 = arith.constant 0 : i32
    return %c0_i32, %c0_i32_0, %c0_i32_1 : i32, i32, i32
  }
  func.func @transform_13(%arg0: i32) -> (i32, i32, i32) {
    %c0_i32 = arith.constant 0 : i32
    %c0_i32_0 = arith.constant 0 : i32
    %c0_i32_1 = arith.constant 0 : i32
    %c0_i32_2 = arith.constant 0 : i32
    return %c0_i32, %c0_i32_0, %c0_i32_1 : i32, i32, i32
  }
  func.func @transform_14(%arg0: i32) -> (i32, i32, i32) {
    %c0_i32 = arith.constant 0 : i32
    %c0_i32_0 = arith.constant 0 : i32
    %c0_i32_1 = arith.constant 0 : i32
    %c0_i32_2 = arith.constant 0 : i32
    return %c0_i32, %c0_i32_0, %c0_i32_1 : i32, i32, i32
  }
  func.func @transform_15(%arg0: i32) -> (i32, i32, i32) {
    %c0_i32 = arith.constant 0 : i32
    %c0_i32_0 = arith.constant 0 : i32
    %c0_i32_1 = arith.constant 0 : i32
    %c0_i32_2 = arith.constant 0 : i32
    return %c0_i32, %c0_i32_0, %c0_i32_1 : i32, i32, i32
  }
  func.func @transform_16(%arg0: i32) -> (i32, i32, i32) {
    %c0_i32 = arith.constant 0 : i32
    %c0_i32_0 = arith.constant 0 : i32
    %c0_i32_1 = arith.constant 0 : i32
    %c0_i32_2 = arith.constant 0 : i32
    return %c0_i32, %c0_i32_0, %c0_i32_1 : i32, i32, i32
  }
  func.func @transform_17(%arg0: i32) -> (i32, i32, i32) {
    %c0_i32 = arith.constant 0 : i32
    %c0_i32_0 = arith.constant 0 : i32
    %c0_i32_1 = arith.constant 0 : i32
    %c0_i32_2 = arith.constant 0 : i32
    return %c0_i32, %c0_i32_0, %c0_i32_1 : i32, i32, i32
  }
  func.func @transform_18(%arg0: i32) -> (i32, i32, i32) {
    %c0_i32 = arith.constant 0 : i32
    %c0_i32_0 = arith.constant 0 : i32
    %c0_i32_1 = arith.constant 0 : i32
    %c0_i32_2 = arith.constant 0 : i32
    return %c0_i32, %c0_i32_0, %c0_i32_1 : i32, i32, i32
  }
  func.func @transform_19(%arg0: i32) -> (i32, i32, i32) {
    %c0_i32 = arith.constant 0 : i32
    %c0_i32_0 = arith.constant 0 : i32
    %c0_i32_1 = arith.constant 0 : i32
    %c0_i32_2 = arith.constant 0 : i32
    return %c0_i32, %c0_i32_0, %c0_i32_1 : i32, i32, i32
  }
  func.func @transform_20(%arg0: i32) -> (i32, i32, i32) {
    %c0_i32 = arith.constant 0 : i32
    %c0_i32_0 = arith.constant 0 : i32
    %c0_i32_1 = arith.constant 0 : i32
    %c0_i32_2 = arith.constant 0 : i32
    return %c0_i32, %c0_i32_0, %c0_i32_1 : i32, i32, i32
  }
  func.func @transform_21(%arg0: i32) -> (i32, i32, i32) {
    %c0_i32 = arith.constant 0 : i32
    %c0_i32_0 = arith.constant 0 : i32
    %c0_i32_1 = arith.constant 0 : i32
    %c0_i32_2 = arith.constant 0 : i32
    return %c0_i32, %c0_i32_0, %c0_i32_1 : i32, i32, i32
  }
  func.func @transform_22(%arg0: i32) -> (i32, i32, i32) {
    %c0_i32 = arith.constant 0 : i32
    %c0_i32_0 = arith.constant 0 : i32
    %c0_i32_1 = arith.constant 0 : i32
    %c0_i32_2 = arith.constant 0 : i32
    return %c0_i32, %c0_i32_0, %c0_i32_1 : i32, i32, i32
  }
  func.func @transform_23(%arg0: i32) -> (i32, i32, i32) {
    %c0_i32 = arith.constant 0 : i32
    %c0_i32_0 = arith.constant 0 : i32
    %c0_i32_1 = arith.constant 0 : i32
    %c0_i32_2 = arith.constant 0 : i32
    return %c0_i32, %c0_i32_0, %c0_i32_1 : i32, i32, i32
  }
  func.func @transform_24(%arg0: i32) -> (i32, i32, i32) {
    %c0_i32 = arith.constant 0 : i32
    %c0_i32_0 = arith.constant 0 : i32
    %c0_i32_1 = arith.constant 0 : i32
    %c0_i32_2 = arith.constant 0 : i32
    return %c0_i32, %c0_i32_0, %c0_i32_1 : i32, i32, i32
  }
  func.func @transform_25(%arg0: i32) -> (i32, i32, i32) {
    %c0_i32 = arith.constant 0 : i32
    %c0_i32_0 = arith.constant 0 : i32
    %c0_i32_1 = arith.constant 0 : i32
    %c0_i32_2 = arith.constant 0 : i32
    return %c0_i32, %c0_i32_0, %c0_i32_1 : i32, i32, i32
  }
  func.func @transform_26(%arg0: i32) -> (i32, i32, i32) {
    %c0_i32 = arith.constant 0 : i32
    %c0_i32_0 = arith.constant 0 : i32
    %c0_i32_1 = arith.constant 0 : i32
    %c0_i32_2 = arith.constant 0 : i32
    return %c0_i32, %c0_i32_0, %c0_i32_1 : i32, i32, i32
  }
  func.func @transform_27(%arg0: i32) -> (i32, i32, i32) {
    %c0_i32 = arith.constant 0 : i32
    %c0_i32_0 = arith.constant 0 : i32
    %c0_i32_1 = arith.constant 0 : i32
    %c0_i32_2 = arith.constant 0 : i32
    return %c0_i32, %c0_i32_0, %c0_i32_1 : i32, i32, i32
  }
  func.func @transform_28(%arg0: i32) -> (i32, i32, i32) {
    %c0_i32 = arith.constant 0 : i32
    %c0_i32_0 = arith.constant 0 : i32
    %c0_i32_1 = arith.constant 0 : i32
    %c0_i32_2 = arith.constant 0 : i32
    return %c0_i32, %c0_i32_0, %c0_i32_1 : i32, i32, i32
  }
  func.func @transform_29(%arg0: i32) -> (i32, i32, i32) {
    %c0_i32 = arith.constant 0 : i32
    %c0_i32_0 = arith.constant 0 : i32
    %c0_i32_1 = arith.constant 0 : i32
    %c0_i32_2 = arith.constant 0 : i32
    return %c0_i32, %c0_i32_0, %c0_i32_1 : i32, i32, i32
  }
  func.func @transform_30(%arg0: i32) -> (i32, i32, i32) {
    %c0_i32 = arith.constant 0 : i32
    %c0_i32_0 = arith.constant 0 : i32
    %c0_i32_1 = arith.constant 0 : i32
    %c0_i32_2 = arith.constant 0 : i32
    return %c0_i32, %c0_i32_0, %c0_i32_1 : i32, i32, i32
  }
  func.func @transform_31(%arg0: i32) -> (i32, i32, i32) {
    %c0_i32 = arith.constant 0 : i32
    %c0_i32_0 = arith.constant 0 : i32
    %c0_i32_1 = arith.constant 0 : i32
    %c0_i32_2 = arith.constant 0 : i32
    return %c0_i32, %c0_i32_0, %c0_i32_1 : i32, i32, i32
  }
  func.func @transform_32(%arg0: i32) -> (i32, i32, i32) {
    %c0_i32 = arith.constant 0 : i32
    %c0_i32_0 = arith.constant 0 : i32
    %c0_i32_1 = arith.constant 0 : i32
    %c0_i32_2 = arith.constant 0 : i32
    return %c0_i32, %c0_i32_0, %c0_i32_1 : i32, i32, i32
  }
  func.func @transform_33(%arg0: i32) -> (i32, i32, i32) {
    %c0_i32 = arith.constant 0 : i32
    %c0_i32_0 = arith.constant 0 : i32
    %c0_i32_1 = arith.constant 0 : i32
    return %arg0, %c0_i32, %c0_i32_0 : i32, i32, i32
  }
}

</mosaic_0001>

<bundles_post_ra>
// kernel: forward.1
= control target key start
LH: loop header
LB: loop body
LE: loop exit
PB: predicated region body
PF: predicated region fallthrough
CT: control target
= control target key end

     0   :  { %s7306_s6 = smov 1   ;;  %s7307_s10 = smov 2   ;;  %s8825_s0 = inlined_call_operand.smem [shape: u32[34], index: -1, kind: input, shape index: {}] }
   0x1   :  { %s7357_s5 = sld [smem:[%s8825_s0]]   ;;  %s7308_s14 = smov 3  }
   0x2   :  { %s7362_s9 = sld [smem:[%s8825_s0 + %s7306_s6]]   ;;  %s7309_s18 = smov 4  }
   0x3   :  { %s7367_s13 = sld [smem:[%s8825_s0 + %s7307_s10]]   ;;  %s7310_s22 = smov 5  }
   0x4   :  { %s7372_s17 = sld [smem:[%s8825_s0 + %s7308_s14]]   ;;  %s7311_s26 = smov 6  }
   0x5   :  { %s7377_s21 = sld [smem:[%s8825_s0 + %s7309_s18]]   ;;  %s7312_s30 = smov 7  }
   0x6   :  { %s7382_s25 = sld [smem:[%s8825_s0 + %s7310_s22]]   ;;  %s7313_s4 = smov 8  }
   0x7   :  { %8876 = sst [smem:[#allocation5_spill]] %s7357_s5  ;;  %s7314_s10 = smov 9  }
   0x8   :  { %8877 = sst [smem:[#allocation6_spill]] %s7362_s9  ;;  %s7315_s15 = smov 10  }
   0x9   :  { %8878 = sst [smem:[#allocation7_spill]] %s7367_s13  ;;  %s7316_s20 = smov 11  }
   0xa   :  { %8879 = sst [smem:[#allocation8_spill]] %s7372_s17  ;;  %s7318_s1 = smov 13  }
   0xb   :  { %8880 = sst [smem:[#allocation9_spill]] %s7377_s21  ;;  %s7319_s7 = smov 14  }
   0xc   :  { %s7387_s29 = sld [smem:[%s8825_s0 + %s7311_s26]]   ;;  %s7317_s26 = smov 12  }
   0xd   :  { %s7392_s3 = sld [smem:[%s8825_s0 + %s7312_s30]]   ;;  %s7321_s22 = smov 16  }
   0xe   :  { %s7397_s8 = sld [smem:[%s8825_s0 + %s7313_s4]]   ;;  %s7322_s28 = smov 17  }
   0xf   :  { %s7402_s14 = sld [smem:[%s8825_s0 + %s7314_s10]]  }
  0x10   :  { %s7407_s19 = sld [smem:[%s8825_s0 + %s7315_s15]]   ;;  %s7320_s15 = smov 15  }
  0x11   :  { %s7412_s24 = sld [smem:[%s8825_s0 + %s7316_s20]]  }
  0x12   :  { %s7417_s30 = sld [smem:[%s8825_s0 + %s7317_s26]]  }
  0x13   :  { %8881 = sst [smem:[#allocation10_spill]] %s7392_s3 }
  0x14   :  { %8882 = sst [smem:[#allocation11_spill]] %s7397_s8 }
  0x15   :  { %s7422_s6 = sld [smem:[%s8825_s0 + %s7318_s1]]  }
  0x16   :  { %s7427_s12 = sld [smem:[%s8825_s0 + %s7319_s7]]   ;;  %s7323_s7 = smov 18  }
  0x17   :  { %s7432_s20 = sld [smem:[%s8825_s0 + %s7320_s15]]   ;;  %s7324_s15 = smov 19  }
  0x18   :  { %s7437_s27 = sld [smem:[%s8825_s0 + %s7321_s22]]   ;;  %s7325_s22 = smov 20  }
  0x19   :  { %s7442_s4 = sld [smem:[%s8825_s0 + %s7322_s28]]   ;;  %s7326_s28 = smov 21  }
  0x1a   :  { %s7447_s17 = sld [smem:[%s8825_s0 + %s7323_s7]]   ;;  %s7327_s7 = smov 22  }
  0x1b   :  { %8883 = sst [smem:[#allocation12_spill]] %s7422_s6 }
  0x1c   :  { %8884 = sst [smem:[#allocation13_spill]] %s7427_s12 }
  0x1d   :  { %s7452_s13 = sld [smem:[%s8825_s0 + %s7324_s15]]   ;;  %s7328_s15 = smov 23  }
  0x1e   :  { %8885 = sst [smem:[#allocation14_spill]] %s7437_s27 }
  0x1f   :  { %8886 = sst [smem:[#allocation15_spill]] %s7442_s4 }
  0x20   :  { %s7457_s21 = sld [smem:[%s8825_s0 + %s7325_s22]]   ;;  %s7329_s22 = smov 24  }
  0x21   :  { %s7462_s27 = sld [smem:[%s8825_s0 + %s7326_s28]]   ;;  %s7330_s28 = smov 25  }
  0x22   :  { %s7467_s12 = sld [smem:[%s8825_s0 + %s7327_s7]]   ;;  %s7331_s7 = smov 26  }
  0x23   :  { %8887 = sst [smem:[#allocation16_spill]] %s7452_s13 }
  0x24   :  { %s7472_s13 = sld [smem:[%s8825_s0 + %s7328_s15]]   ;;  %s7332_s15 = smov 27  }
  0x26   :  { %8888 = sst [smem:[#allocation17_spill]] %s7457_s21 }
  0x27   :  { %8889 = sst [smem:[#allocation18_spill]] %s7462_s27 }
  0x28   :  { %8890 = sst [smem:[#allocation19_spill]] %s7467_s12 }
  0x29   :  { %s7477_s21 = sld [smem:[%s8825_s0 + %s7329_s22]]   ;;  %s7333_s22 = smov 28  }
  0x2a   :  { %8891 = sst [smem:[#allocation20_spill]] %s7472_s13 }
  0x2b   :  { %s7482_s27 = sld [smem:[%s8825_s0 + %s7330_s28]]   ;;  %s7334_s28 = smov 29  }
  0x2c   :  { %s7487_s12 = sld [smem:[%s8825_s0 + %s7331_s7]]   ;;  %s7335_s7 = smov 30  }
  0x2d   :  { %s7492_s13 = sld [smem:[%s8825_s0 + %s7332_s15]]   ;;  %s7336_s15 = smov 31  }
  0x2f   :  { %8892 = sst [smem:[#allocation21_spill]] %s7477_s21 }
  0x30   :  { %s7497_s21 = sld [smem:[%s8825_s0 + %s7333_s22]]   ;;  %s7337_s22 = smov 32  }
  0x31   :  { %8893 = sst [smem:[#allocation22_spill]] %s7482_s27 }
  0x32   :  { %8894 = sst [smem:[#allocation23_spill]] %s7487_s12 }
  0x33   :  { %8895 = sst [smem:[#allocation24_spill]] %s7492_s13 }
  0x34   :  { %s7502_s27 = sld [smem:[%s8825_s0 + %s7334_s28]]   ;;  %s7338_s28 = smov 33  }
  0x35   :  { %s7507_s12 = sld [smem:[%s8825_s0 + %s7335_s7]]  }
  0x36   :  { %8896 = sst [smem:[#allocation25_spill]] %s7497_s21 }
  0x37   :  { %s7512_s13 = sld [smem:[%s8825_s0 + %s7336_s15]]  }
  0x38   :  { %s7517_s21 = sld [smem:[%s8825_s0 + %s7337_s22]]  }
  0x3a   :  { %8897 = sst [smem:[#allocation26_spill]] %s7502_s27 }
  0x3b   :  { %8898 = sst [smem:[#allocation27_spill]] %s7507_s12 }
  0x3c   :  { %s7522_s27 = sld [smem:[%s8825_s0 + %s7338_s28]]  }
  0x42   :  { %8899 = sst [smem:[#allocation28_spill]] %s7522_s27 }
  0x43   :  { %72 = vsyncpa [#allocation3], 0 }
  0x44   :  { %74 = vsyncpa [#allocation3 + $0x1], 0  ;;  %s7524_s7 = smov 0   ;;  %s7526_s10 = smov 0  }
  0x45   :  { %s7528_s11 = smov 0   ;;  %s7530_s15 = smov 0  }
  0x46 LB: > { %s8900_s12 = sld [smem:[#allocation27_spill]]  ;;  %s7545_s0 = sadd.s32 4294967295, %s7304_s15   ;;  %s7292_s7 = sphi %s7524_s7, %s8962_s7   ;;  %s7304_s15 = sphi %s7530_s15, %s8961_s15   ;;  %s7300_s11 = sphi %s7528_s11, %s8964_s11   ;;  %s7296_s10 = sphi %s7526_s10, %s8963_s10  }
  0x47   : > { %s8901_s8 = sld [smem:[#allocation11_spill]]  ;;  %s6019_s16 = sadd.s32 4294967294, %s7304_s15  }
  0x48   : > { %s8902_s6 = sld [smem:[#allocation12_spill]]  ;;  %s7549_s18 = sadd.s32 1, %s7304_s15  }
  0x49   : > { %s8903_s4 = sld [smem:[#allocation15_spill]]  ;;  %s790_s22 = sadd.s32 1, %s7300_s11 }
  0x4a   : > { %s8904_s3 = sld [smem:[#allocation10_spill]]  ;;  %s787_s23 = ssub.s32 %s7304_s15, %s7549_s18 }
  0x4b   : > { %8905 = sst [smem:[#allocation29_spill]] %s7292_s7  ;;  %p800_p0 = scmp.ne.s32.totalorder %s7300_s11, %s7296_s10 }
  0x4c   : > { %8906 = sst [smem:[#allocation30_spill]] %s7296_s10  ;;  %p788_p1 = scmp.eq.s32.totalorder %s787_s23, 0 }
  0x4d   : > { %8907 = sst [smem:[#allocation31_spill]] %s7300_s11  ;;  %p801_p2 = scmp.eq.s32.totalorder %s7545_s0, 1 }
  0x4e   : > { %8908 = sst [smem:[#allocation32_spill]] %s7304_s15  ;;  %p806_p3 = scmp.ne.s32.totalorder %s7296_s10, %s7292_s7 }
  0x4f   : > { %8909 = sst [smem:[#allocation33_spill]] %s7545_s0  ;;  %p807_p4 = scmp.eq.s32.totalorder %s6019_s16, 1 }
  0x50   : > { %8910 = sst [smem:[#allocation34_spill]] %s7549_s18  ;;  %p7562_p5 = por %p801_p2, %p800_p0 }
  0x51   : > { %s7560_s26 = scalar_select %p788_p1, %s7300_s11, %s790_s22  }
  0x52   : > { %s8912_s28 = scalar_select %p7562_p5, 1, 0 }
  0x53   : > { %8911 = sst [smem:[#allocation35_spill]] %s7560_s26  ;;  %p7566_p6 = por %p807_p4, %p806_p3 }
  0x54   : > { %8913 = sst [smem:[#allocation36_spill]] %s8912_s28  ;;  %p6022_p7 = scmp.ge.s32.totalorder %s7304_s15, 1 }
  0x55   : > { %s8914_s1 = scalar_select %p7566_p6, 1, 0 }
  0x56   : > { %p932_p8 = scmp.lt.s32.totalorder %s7304_s15, 3 }
  0x57   : > { %8915 = sst [smem:[#allocation37_spill]] %s8914_s1 }
  0x58   : > { %p933_p9 = pnand %p6022_p7, %p932_p8 }
  0x59   : > { %s8916_s5 = sld [smem:[#allocation5_spill]] (!%p933_p9)  ;;  %p1019_p10 = scmp.lt.s32.totalorder (!%p933_p9), %s7545_s0, 1 }
  0x5a   : > { %936 = sbr.rel (%p933_p9) target bundleno = 7895 (0x1ed7), region = 152  ;;  %s8845_s23 = smov (!%p933_p9), 80  }
  0x5b   : > { %s8841_s26 = smov (!%p933_p9), 64   ;;  %s8919_s9 = sld [smem:[#allocation6_spill]] (!%p933_p9) }
  0x5c   : > { %s8928_s11 = sld [smem:[#allocation18_spill]] (!%p933_p9)  ;;  %s8930_s1 = smov (!%p933_p9), 48  }
  0x5d   : > { %s8931_s7 = smov (!%p933_p9), 32   ;;  %s8932_s15 = smov (!%p933_p9), 16  }
  0x5e   : > { %s8933_s28 = sld [smem:[#allocation19_spill]] (!%p933_p9) }
  0x5f   : > { %s7574_s2 = scalar_select %p1019_p10, %s7545_s0, 1  ;;  %vm1182_vm0 = vcmask 523264   ;;  %v7339_v2 = vmov 64.0   ;;  %v6052_v14 = vld [vmem:[%s8904_s3 + $0x30] sm:$0xf]  ;;  %vm1306_vm5 = vcmask 1047556  }
  0x60   : > { %7149 = vrcp.f32 %v7339_v2  ;;  %v6868_v15 = vld [vmem:[%s8904_s3 + $0x34] sm:$0xf0]  ;;  %v6867_v16 = vld [vmem:[%s8904_s3 + $0x34] sm:$0xf]  ;;  %v6054_v18 = vld [vmem:[%s8904_s3 + $0x38] sm:$0xf0] }
  0x61   : > { %s8840_s16 = sshll.u32 %s7574_s2, 3  ;;  %v6053_v17 = vor.u32 %v6868_v15, %v6052_v14  ;;  %v6057_v19 = vor.u32 %v6867_v16, %v6054_v18  ;;  %v6044_v20 = vld [vmem:[%s8904_s3 + $0x20] sm:$0xf]  ;;  %v6866_v21 = vld [vmem:[%s8904_s3 + $0x24] sm:$0xf0]  ;;  %vm1666_vm6 = vcmask 130048  }
  0x62   : > { %s7580_s22 = scalar_lea.vmem %s8916_s5, %s8840_s16  ;;  %v6865_v22 = vld [vmem:[%s8904_s3 + $0x24] sm:$0xf]  ;;  %v6045_v23 = vor.u32 %v6866_v21, %v6044_v20  ;;  %v6046_v24 = vld [vmem:[%s8904_s3 + $0x28] sm:$0xf0]  ;;  %v6036_v26 = vld [vmem:[%s8904_s3 + $0x10] sm:$0xf]  ;;  %s8929_s18 = smov %s8928_s11 }
  0x63   : > { %v1028_v0 = vld [vmem:[%s7580_s22] sm:$0xff]  ;;  %1273 = vmatpush.bf16.msra.mxu0 %v6053_v17  ;;  %1286 = vmatpush.bf16.msra.mxu1 %v6057_v19  ;;  %v6049_v25 = vor.u32 %v6865_v22, %v6046_v24  ;;  %v6864_v27 = vld [vmem:[%s8904_s3 + $0x14] sm:$0xf0]  ;;  %v6863_v28 = vld [vmem:[%s8904_s3 + $0x14] sm:$0xf]  ;;  %s8843_s16 = smov 112  }
  0x64   : > { %v1183_v1 = vsel %vm1182_vm0, %v1028_v0, 0.0  ;;  %v6037_v29 = vor.u32 %v6864_v27, %v6036_v26  ;;  %v6038_v30 = vld [vmem:[%s8904_s3 + $0x18] sm:$0xf0]  ;;  %v6028_v31 = vld [vmem:[%s8904_s3] sm:$0xf]  ;;  %s8853_s5 = smov 96  }
  0x65   : > { %1184 = vadd.xlane.f32.xlu0 %v1183_v1  ;;  %v6862_v32 = vld [vmem:[%s8904_s3 + $0x4] sm:$0xf0]  ;;  %v6041_v33 = vor.u32 %v6863_v28, %v6038_v30  ;;  %v6861_v34 = vld [vmem:[%s8904_s3 + $0x4] sm:$0xf]  ;;  %v6030_v35 = vld [vmem:[%s8904_s3 + $0x8] sm:$0xf0] }
  0x66   : > { %v7150_v3 = vpop.eup %7149  ;;  %v6029_v36 = vor.u32 %v6862_v32, %v6028_v31  ;;  %v6033_v37 = vor.u32 %v6861_v34, %v6030_v35  ;;  %v7119_v47 = vld [vmem:[%s7382_s25] ss:$0 sm:$0xff]  ;;  %v7345_v18 = vmov 1934713408   ;;  %vm1756_vm8 = vcmask 64512   ;;  %s8934_s27 = sld [smem:[#allocation22_spill]] }
  0x67   : > { %v1187_v4 = vmul.f32 64.0, %v7150_v3  ;;  %vm1191_vm1 = vweird.f32 %v7150_v3  ;;  %1274 = vmatpush.bf16.msra.mxu0 %v6045_v23  ;;  %1287 = vmatpush.bf16.msra.mxu1 %v6049_v25  ;;  %v7120_v50 = vld [vmem:[%s7387_s29] ss:$0 sm:$0xff]  ;;  %v1335_v19 = vunpack.c.l.s4 %v7345_v18  ;;  %vm1812_vm9 = vcmask 1043456   ;;  %s8937_s10 = sld [smem:[#allocation20_spill]] }
  0x68   : > { %v7610_v54 = vld [vmem:[%s8901_s8] sm:$0x3]  ;;  %vm2009_vm10 = vcmask 261120   ;;  %vm2011_vm11 = vcmask 392192  }
  0x69   : > { %v1188_v5 = vsub.f32 1.0, %v1187_v4  ;;  %v1222_v55 = vperm.slane %v7610_v54, 0  ;;  %v7632_v24 = vunpack.c.0.s8 %v1335_v19 }
  0x6b   : > { %v1189_v6 = vmul.f32 %v7150_v3, %v1188_v5  ;;  %1275 = vmatpush.bf16.msra.mxu0 %v6037_v29  ;;  %1288 = vmatpush.bf16.msra.mxu1 %v6041_v33 }
  0x6d   : > { %v1190_v7 = vadd.f32 %v7150_v3, %v1189_v6 }
  0x6f   : > { %v7584_v8 = vsel %vm1191_vm1, %v7150_v3, %v1190_v7  ;;  %1276 = vmatpush.bf16.msra.mxu0 %v6029_v36  ;;  %1289 = vmatpush.bf16.msra.mxu1 %v6033_v37  ;;  %v7344_v3 = vmov 1983009808  }
  0x70   : > { %v1311_v4 = vunpack.c.l.s4 %v7344_v3 }
  0xd8   : > { %v1185_v9 = vpop.xlane.xlu0 %1184 }
  0xd9   : > { %v1193_v10 = vmul.f32 %v7584_v8, %v1185_v9  ;;  %v7622_v9 = vunpack.c.0.s8 %v1311_v4 }
  0xdb   : > { %v1194_v11 = vsub.f32 %v1028_v0, %v1193_v10 }
  0xdd   : > { %v1195_v12 = vmul.f32 %v1194_v11, %v1194_v11 }
  0xdf   : > { %v1196_v13 = vsel %vm1182_vm0, %v1195_v12, 0.0 }
  0xe0   : > { %1197 = vadd.xlane.f32.xlu0 %v1196_v13 }
 0x153   : > { %v1198_v38 = vpop.xlane.xlu0 %1197 }
 0x154   : > { %v1199_v39 = vmul.f32 %v1198_v38, %v7584_v8 }
 0x156   : > { %v1200_v40 = vadd.f32 1e-05, %v1199_v39 }
 0x158   : > { %7151 = vrsqrt.f32 %v1200_v40  ;;  %vm1207_vm3 = vweird.f32 %v1200_v40 }
 0x15e   : > { %v7152_v41 = vpop.eup %7151 }
 0x15f   : > { %v1202_v42 = vmul.f32 %v7152_v41, %v1200_v40  ;;  %vm1208_vm2 = vweird.f32 %v7152_v41 }
 0x160   : > { %vm1209_vm4 = vmor %vm1207_vm3, %vm1208_vm2 }
 0x161   : > { %v1203_v43 = vmul.f32 %v7152_v41, %v1202_v42 }
 0x163   : > { %v1204_v44 = vmul.f32 0.5, %v1203_v43 }
 0x165   : > { %v1205_v45 = vsub.f32 1.5, %v1204_v44 }
 0x167   : > { %v1206_v46 = vmul.f32 %v7152_v41, %v1205_v45 }
 0x169   : > { %v1210_v48 = vsel %vm1209_vm4, %v7152_v41, %v1206_v46 }
 0x16a   : > { %v1211_v49 = vmul.f32 %v1210_v48, %v1194_v11 }
 0x16c   : > { %v1215_v51 = vmul.f32 %v7119_v47, %v1211_v49 }
 0x16e   : > { %v1219_v52 = vadd.f32 %v7120_v50, %v1215_v51 }
 0x170   : > { %v1220_v53 = vpack.c.bf16 %v1219_v52, %v1219_v52 }
 0x172   : > { %6058 = vmatmul.msk.bf16.vlgmr.msra.gmra.mxu0 %vm1182_vm0, %v1220_v53  ;;  %6059 = vmatmul.msk.bf16.vlgmr.msra.gmra.mxu1 %vm1182_vm0, %v1220_v53 }
 0x1ef   : > { %v1278_v56 = vpop.f32.mrf.mxu0  ;;  %v7613_v57 = vpop.f32.mrf.mxu1 }
 0x1f0   : > { %v1279_v58 = vadd.f32 %v1278_v56, %v1222_v55 }
 0x1f2   : > { %1302 = vrot.lane.b32.xlu2 %v1279_v58, %s8845_s23  ;;  %1296 = vrot.lane.b32.xlu1 %v1279_v58, %s8843_s16  ;;  %v1308_v5 = vrot.slane %v1279_v58, 4 }
 0x1f7   : > { %v1280_v59 = vpop.f32.mrf.mxu0  ;;  %v1293_v60 = vpop.f32.mrf.mxu1 }
 0x1fa   : > { %1299 = vrot.lane.b32.xlu1 %v1279_v58, %s8853_s5 }
 0x24c   : > { %v1303_v63 = vpop.permute.xlu2 %1302 }
 0x24d   : > { %v1318_v13 = vrot.slane %v1303_v63, 4 }
 0x264   : > { %v1297_v61 = vpop.permute.xlu1 %1296 }
 0x265   : > { %v7099_v62 = vpack.i.bf16 %v1297_v61, %v1279_v58  ;;  %v1320_v10 = vrot.slane %v1297_v61, 4  ;;  %v1319_v14 = vsel %vm1306_vm5, %v1318_v13, %v1297_v61 }
 0x266   : > { %v1325_v20 = vperm.slane %v1319_v14, %v7622_v9 }
 0x267   : > { %7100 = vrot.lane.b32.xlu2 %v7099_v62, %s8841_s26  ;;  %v1321_v15 = vsel %vm1306_vm5, %v1303_v63, %v1320_v10 }
 0x268   : > { %v1329_v21 = vperm.slane %v1321_v15, %v7622_v9  ;;  %v1330_v29 = vrot.slane %v1325_v20, 4 }
 0x26a   : > { %v1342_v25 = vrot.slane %v1329_v21, 4 }
 0x26c   : > { %v1300_v0 = vpop.permute.xlu1 %1299 }
 0x26d   : > { %v7104_v1 = vpack.i.bf16 %v1303_v63, %v1300_v0  ;;  %v1305_v2 = vrot.slane %v1300_v0, 4  ;;  %v1309_v7 = vsel %vm1306_vm5, %v1300_v0, %v1308_v5 }
 0x26e   : > { %v1317_v12 = vperm.slane %v1309_v7, %v7622_v9 }
 0x26f   : > { %7105 = vrot.lane.b32.xlu0 %v7104_v1, %s8841_s26  ;;  %v1307_v6 = vsel %vm1306_vm5, %v1305_v2, %v1279_v58  ;;  %s8851_s26 = smov 48  }
 0x270   : > { %v1313_v11 = vperm.slane %v1307_v6, %v7622_v9  ;;  %v1344_v17 = vrot.slane %v1317_v12, 4  ;;  %v1343_v30 = vsel %vm1306_vm5, %v1342_v25, %v1317_v12 }
 0x271   : > { %v1349_v35 = vperm.slane %v1343_v30, %v7632_v24 }
 0x272   : > { %v1332_v16 = vrot.slane %v1313_v11, 4  ;;  %v1345_v23 = vsel %vm1306_vm5, %v1329_v21, %v1344_v17  ;;  %v1331_v31 = vsel %vm1306_vm5, %v1330_v29, %v1313_v11 }
 0x273   : > { %v1353_v27 = vperm.slane %v1345_v23, %v7632_v24  ;;  %v1337_v37 = vperm.slane %v1331_v31, %v7632_v24  ;;  %v1358_v44 = vrot.slane %v1349_v35, 4 }
 0x274   : > { %v1333_v22 = vsel %vm1306_vm5, %v1325_v20, %v1332_v16 }
 0x275   : > { %v1341_v26 = vperm.slane %v1333_v22, %v7632_v24  ;;  %v1360_v36 = vrot.slane %v1353_v27, 4  ;;  %v1354_v50 = vrot.slane %v1337_v37, 4  ;;  %v1359_v63 = vsel %vm1306_vm5, 0.0, %v1358_v44 }
 0x277   : > { %v7638_v34 = vrot.slane %v1341_v26, 4  ;;  %v1361_v45 = vsel %vm1306_vm5, 0.0, %v1360_v36  ;;  %v1355_v4 = vsel %vm1306_vm5, 0.0, %v1354_v50  ;;  %v1373_v21 = vsel %vm1306_vm5, %v1360_v36, %v1349_v35 }
 0x278   : > { %v1378_v55 = vrot.slane %v1361_v45, 4 }
 0x279   : > { %v1357_v43 = vsel %vm1306_vm5, 0.0, %v7638_v34 }
 0x27a   : > { %v1367_v53 = vrot.slane %v1357_v43, 4  ;;  %v1379_v5 = vsel %vm1306_vm5, %v1378_v55, %v1359_v63 }
 0x27b   : > { %v7666_v17 = vperm.slane %v1379_v5, %v7622_v9 }
 0x27c   : > { %v1368_v12 = vsel %vm1306_vm5, %v1367_v53, %v1355_v4 }
 0x27d   : > { %v7672_v25 = vperm.slane %v1368_v12, %v7622_v9 }
 0x27f   : > { %v1384_v43 = vrot.slane %v7672_v25, 4 }
 0x2c1   : > { %v7101_v28 = vpop.permute.xlu2 %7100 }
 0x2c2   : > { %v7103_v32 = vunpack.i.h.bf16 %v7101_v28  ;;  %v7102_v33 = vunpack.i.l.bf16 %v7101_v28 }
 0x2c4   : > { %v1442_v39 = vrot.slane %v7103_v32, 4  ;;  %v1430_v40 = vrot.slane %v7102_v33, 4 }
 0x2e1   : > { %v7106_v38 = vpop.permute.xlu0 %7105 }
 0x2e2   : > { %v7108_v41 = vunpack.i.h.bf16 %v7106_v38  ;;  %v7107_v42 = vunpack.i.l.bf16 %v7106_v38 }
 0x2e4   : > { %v1440_v46 = vrot.slane %v7108_v41, 4  ;;  %v1443_v47 = vsel %vm1306_vm5, %v7108_v41, %v1442_v39  ;;  %v1428_v48 = vrot.slane %v7107_v42, 4  ;;  %v1431_v49 = vsel %vm1306_vm5, %v7107_v42, %v1430_v40 }
 0x2e5   : > { %v1451_v51 = vperm.slane %v1443_v47, %v7622_v9  ;;  %v1439_v52 = vperm.slane %v1431_v49, %v7622_v9  ;;  %v1362_v39 = vsel %vm1306_vm5, %v7638_v34, %v1337_v37  ;;  %v1377_v40 = vperm.slane %v1373_v21, %v7622_v9 }
 0x2e6   : > { %v1441_v56 = vsel %vm1306_vm5, %v1440_v46, %v7103_v32  ;;  %v1429_v58 = vsel %vm1306_vm5, %v1428_v48, %v7102_v33  ;;  %v1396_v33 = vrot.slane %v7666_v17, 4  ;;  %v1366_v48 = vperm.slane %v1362_v39, %v7622_v9 }
 0x2e7   : > { %v1447_v59 = vperm.slane %v1441_v56, %v7622_v9  ;;  %v1464_v60 = vrot.slane %v1451_v51, 4  ;;  %v1435_v61 = vperm.slane %v1429_v58, %v7622_v9  ;;  %v1466_v62 = vrot.slane %v1439_v52, 4 }
 0x2e8   : > { %v1397_v49 = vsel %vm1306_vm5, %v1396_v33, %v1377_v40  ;;  %v1385_v55 = vsel %vm1306_vm5, %v1384_v43, %v1366_v48 }
 0x2e9   : > { %v1452_v0 = vrot.slane %v1447_v59, 4  ;;  %v1454_v1 = vrot.slane %v1435_v61, 4  ;;  %v1465_v2 = vsel %vm1306_vm5, %v1464_v60, %v1439_v52  ;;  %v1467_v3 = vsel %vm1306_vm5, %v1451_v51, %v1466_v62 }
 0x2ea   : > { %v1471_v6 = vperm.slane %v1465_v2, %v7632_v24  ;;  %v1475_v7 = vperm.slane %v1467_v3, %v7632_v24  ;;  %v1403_v58 = vperm.slane %v1397_v49, %v7632_v24  ;;  %v1391_v63 = vperm.slane %v1385_v55, %v7632_v24 }
 0x2eb   : > { %v1453_v10 = vsel %vm1306_vm5, %v1452_v0, %v1435_v61  ;;  %v1455_v11 = vsel %vm1306_vm5, %v1447_v59, %v1454_v1 }
 0x2ec   : > { %v1459_v13 = vperm.slane %v1453_v10, %v7632_v24  ;;  %v1463_v14 = vperm.slane %v1455_v11, %v7632_v24  ;;  %v1480_v15 = vrot.slane %v1471_v6, 4  ;;  %v1482_v16 = vrot.slane %v1475_v7, 4 }
 0x2ed   : > { %v1408_v7 = vrot.slane %v1403_v58, 4 }
 0x2ee   : > { %v1476_v18 = vrot.slane %v1459_v13, 4  ;;  %v1478_v19 = vrot.slane %v1463_v14, 4  ;;  %v1483_v20 = vsel %vm1306_vm5, 0.0, %v1482_v16  ;;  %v1495_v23 = vsel %vm1306_vm5, %v1482_v16, %v1471_v6 }
 0x2ef   : > { %v1500_v22 = vrot.slane %v1483_v20, 4  ;;  %v1481_v27 = vsel %vm1306_vm5, 0.0, %v1480_v15  ;;  %v1499_v29 = vperm.slane %v1495_v23, %v7622_v9  ;;  %v1409_v16 = vsel %vm1306_vm5, %v1408_v7, %v1391_v63 }
 0x2f0   : > { %v1479_v26 = vsel %vm1306_vm5, 0.0, %v1478_v19  ;;  %v1484_v28 = vsel %vm1306_vm5, %v1478_v19, %v1459_v13  ;;  %v1477_v35 = vsel %vm1306_vm5, 0.0, %v1476_v18  ;;  %v1410_v13 = vrot.slane %v1391_v63, 4 }
 0x2f1   : > { %v1489_v30 = vrot.slane %v1479_v26, 4  ;;  %v1488_v31 = vperm.slane %v1484_v28, %v7622_v9  ;;  %v1501_v32 = vsel %vm1306_vm5, %v1500_v22, %v1481_v27  ;;  %v1520_v38 = vrot.slane %v1499_v29, 4 }
 0x2f2   : > { %v1505_v36 = vperm.slane %v1501_v32, %v7622_v9  ;;  %v1398_v18 = vrot.slane %v1377_v40, 4  ;;  %v1411_v19 = vsel %vm1306_vm5, %v1403_v58, %v1410_v13  ;;  %v1386_v20 = vrot.slane %v1366_v48, 4 }
 0x2f3   : > { %v1490_v41 = vsel %vm1306_vm5, %v1489_v30, %v1477_v35  ;;  %v1508_v42 = vrot.slane %v1488_v31, 4  ;;  %v1658_v21 = vpack.c.bf16 %v1409_v16, %v1409_v16  ;;  %v1659_v22 = vpack.c.bf16 %v1411_v19, %v1411_v19 }
 0x2f4   : > { %v1494_v44 = vperm.slane %v1490_v41, %v7622_v9  ;;  %v1518_v45 = vrot.slane %v1505_v36, 4  ;;  %v1521_v46 = vsel %vm1306_vm5, %v1505_v36, %v1520_v38  ;;  %v1399_v23 = vsel %vm1306_vm5, %v7666_v17, %v1398_v18 }
 0x2f5   : > { %v1529_v47 = vperm.slane %v1521_v46, %v7632_v24  ;;  %v1387_v26 = vsel %vm1306_vm5, %v7672_v25, %v1386_v20  ;;  %v1407_v27 = vperm.slane %v1399_v23, %v7632_v24  ;;  %v1747_v17 = vlaneseq }
 0x2f6   : > { %v1506_v50 = vrot.slane %v1494_v44, 4  ;;  %v1519_v34 = vsel %vm1306_vm5, %v1518_v45, %v1499_v29  ;;  %v1509_v37 = vsel %vm1306_vm5, %v1494_v44, %v1508_v42  ;;  %v1395_v28 = vperm.slane %v1387_v26, %v7632_v24 }
 0x2f7   : > { %v1525_v51 = vperm.slane %v1519_v34, %v7632_v24  ;;  %v1517_v52 = vperm.slane %v1509_v37, %v7632_v24  ;;  %v1534_v53 = vrot.slane %v1529_v47, 4  ;;  %v1412_v29 = vrot.slane %v1407_v27, 4 }
 0x2f8   : > { %v1507_v56 = vsel %vm1306_vm5, %v1506_v50, %v1488_v31  ;;  %v1414_v30 = vrot.slane %v1395_v28, 4  ;;  %v1748_v36 = vshrl.u32 %v1747_v17, 7  ;;  %v1750_v38 = vand.u32 127, %v1747_v17 }
 0x2f9   : > { %v1513_v59 = vperm.slane %v1507_v56, %v7632_v24  ;;  %v1530_v60 = vrot.slane %v1525_v51, 4  ;;  %v1535_v61 = vsel %vm1306_vm5, %v1534_v53, %v1517_v52  ;;  %v1536_v62 = vrot.slane %v1517_v52, 4 }
 0x2fa   : > { %v1664_v1 = vpack.c.bf16 %v1535_v61, %v1535_v61  ;;  %v1413_v31 = vsel %vm1306_vm5, %v1412_v29, %v1395_v28  ;;  %v1415_v32 = vsel %vm1306_vm5, %v1407_v27, %v1414_v30  ;;  %vm7724_vm7 = vcmp.le.s32.totalorder %v1750_v38, %v1748_v36 }
 0x2fb   : > { %v1531_v0 = vsel %vm1306_vm5, %v1530_v60, %v1513_v59  ;;  %v1532_v2 = vrot.slane %v1513_v59, 4  ;;  %v1537_v3 = vsel %vm1306_vm5, %v1529_v47, %v1536_v62  ;;  %v1660_v33 = vpack.c.bf16 %v1413_v31, %v1413_v31 }
 0x2fc   : > { %v1662_v4 = vpack.c.bf16 %v1531_v0, %v1531_v0  ;;  %v1665_v6 = vpack.c.bf16 %v1537_v3, %v1537_v3  ;;  %v1709_v12 = vsel %vm1666_vm6, %v1664_v1, 0  ;;  %v1661_v35 = vpack.c.bf16 %v1415_v32, %v1415_v32 }
 0x2fd   : > { %v1533_v5 = vsel %vm1306_vm5, %v1525_v51, %v1532_v2  ;;  %v1223_v37 = vperm.slane %v7610_v54, 1 }
 0x2fe   : > { %v1671_v10 = vsel %vm1666_vm6, %v1662_v4, 0  ;;  %v1663_v11 = vpack.c.bf16 %v1533_v5, %v1533_v5  ;;  %v1728_v15 = vsel %vm1666_vm6, %v1665_v6, 0 }
 0x2ff   : > { %1680 = vmatpush.bf16.xpose.msra.mxu2 %v1671_v10  ;;  %v1292_v58 = vadd.f32 %v7613_v57, %v1223_v37 }
 0x300   : > { %v1690_v14 = vsel %vm1666_vm6, %v1663_v11, 0 }
 0x301   : > { %1699 = vmatpush.bf16.xpose.msra.mxu3 %v1690_v14  ;;  %v1550_v19 = vrot.slane %v1292_v58, 4 }
 0x306   : > { %6060 = vmatmul.msk.bf16.vlgmr.msra.gmra.mxu2 %vm1666_vm6, %v1658_v21 }
 0x307   : > { %1718 = vmatpush.bf16.xpose.msrb.mxu2 %v1709_v12 }
 0x308   : > { %6061 = vmatmul.msk.bf16.vlgmr.msra.gmra.mxu3 %vm1666_vm6, %v1659_v22 }
 0x309   : > { %1737 = vmatpush.bf16.xpose.msrb.mxu3 %v1728_v15 }
 0x316   : > { %6062 = vmatmul.msk.bf16.vlgmr.msrb.gmra.mxu2 %vm1666_vm6, %v1660_v33 }
 0x318   : > { %6063 = vmatmul.msk.bf16.vlgmr.msrb.gmra.mxu3 %vm1666_vm6, %v1661_v35 }
 0x389   : > { %v1682_v25 = vpop.f32.mrf.mxu2 }
 0x38a   : > { %v1743_v40 = vmul.f32 0.25, %v1682_v25 }
 0x38b   : > { %v1701_v41 = vpop.f32.mrf.mxu3 }
 0x38c   : > { %v1744_v42 = vmul.f32 0.25, %v1701_v41  ;;  %v1752_v43 = vsel %vm7724_vm7, %v1743_v40, -1e+30 }
 0x38d   : > { %v1757_v44 = vsel %vm1756_vm8, %v1752_v43, -inf }
 0x38e   : > { %1758 = vmax.xlane.f32.xlu0 %v1757_v44  ;;  %v1753_v45 = vsel %vm7724_vm7, %v1744_v42, -1e+30 }
 0x38f   : > { %v1760_v46 = vsel %vm1756_vm8, %v1753_v45, -inf }
 0x390   : > { %1761 = vmax.xlane.f32.xlu2 %v1760_v46 }
 0x391   : > { %v1684_v47 = vpop.f32.mrf.mxu2 }
 0x393   : > { %v1703_v48 = vpop.f32.mrf.mxu3 }
 0x399   : > { %v1720_v49 = vpop.f32.mrf.mxu2 }
 0x39a   : > { %v1745_v50 = vmul.f32 0.25, %v1720_v49 }
 0x39b   : > { %v1739_v34 = vpop.f32.mrf.mxu3 }
 0x39c   : > { %v1746_v51 = vmul.f32 0.25, %v1739_v34  ;;  %v1754_v52 = vsel %vm7724_vm7, %v1745_v50, -1e+30 }
 0x39d   : > { %v1763_v53 = vsel %vm1756_vm8, %v1754_v52, -inf }
 0x39e   : > { %1764 = vmax.xlane.f32.xlu1 %v1763_v53  ;;  %v1755_v55 = vsel %vm7724_vm7, %v1746_v51, -1e+30 }
 0x39f   : > { %v1766_v56 = vsel %vm1756_vm8, %v1755_v55, -inf }
 0x3a0   : > { %1767 = vmax.xlane.f32.xlu2 %v1766_v56 }
 0x3a1   : > { %v1722_v59 = vpop.f32.mrf.mxu2 }
 0x3a2   : > { %1545 = vrot.lane.b32.xlu0 %v1292_v58, %s8845_s23  ;;  %s8847_s23 = smov 16  }
 0x3a3   : > { %v1741_v60 = vpop.f32.mrf.mxu3 }
 0x3b7   : > { %1539 = vrot.lane.b32.xlu1 %v1292_v58, %s8843_s16  ;;  %s8849_s16 = smov 32  }
 0x3b8   : > { %1542 = vrot.lane.b32.xlu2 %v1292_v58, %s8853_s5 }
 0x401   : > { %v1759_v54 = vpop.xlane.xlu0 %1758 }
 0x402   : > { %v1769_v61 = vsub.f32 %v1752_v43, %v1759_v54 }
 0x403   : > { %v1762_v63 = vpop.xlane.xlu2 %1761 }
 0x404   : > { %v1773_v62 = vmul.f32 1.442695, %v1769_v61  ;;  %v1770_v4 = vsub.f32 %v1753_v45, %v1762_v63 }
 0x406   : > { %7153 = vpow2.f32 %v1773_v62  ;;  %v1775_v10 = vmul.f32 1.442695, %v1770_v4 }
 0x40c   : > { %v7745_v0 = vpop.eup %7153 }
 0x40d   : > { %v1781_v1 = vsel %vm1756_vm8, %v7745_v0, 0.0 }
 0x40e   : > { %1782 = vadd.xlane.f32.xlu0 %v1781_v1 }
 0x411   : > { %v1765_v57 = vpop.xlane.xlu1 %1764 }
 0x412   : > { %v1771_v2 = vsub.f32 %v1754_v52, %v1765_v57 }
 0x413   : > { %v1768_v3 = vpop.xlane.xlu2 %1767 }
 0x414   : > { %v1777_v5 = vmul.f32 1.442695, %v1771_v2  ;;  %v1772_v6 = vsub.f32 %v1755_v55, %v1768_v3  ;;  %v1546_v21 = vpop.permute.xlu0 %1545 }
 0x415   : > { %v1560_v27 = vrot.slane %v1546_v21, 4 }
 0x416   : > { %7155 = vpow2.f32 %v1777_v5  ;;  %v1779_v7 = vmul.f32 1.442695, %v1772_v6 }
 0x418   : > { %7157 = vpow2.f32 %v1779_v7 }
 0x419   : > { %7159 = vpow2.f32 %v1775_v10 }
 0x41b   : > { %v1543_v12 = vpop.permute.xlu2 %1542 }
 0x41c   : > { %v7749_v11 = vpop.eup %7155  ;;  %v1548_v16 = vrot.slane %v1543_v12, 4  ;;  %v1551_v23 = vsel %vm1306_vm5, %v1543_v12, %v1550_v19 }
 0x41d   : > { %v1787_v13 = vsel %vm1756_vm8, %v7749_v11, 0.0  ;;  %v1559_v28 = vperm.slane %v1551_v23, %v7622_v9 }
 0x41e   : > { %v7753_v14 = vpop.eup %7157  ;;  %1788 = vadd.xlane.f32.xlu1 %v1787_v13  ;;  %v1549_v20 = vsel %vm1306_vm5, %v1548_v16, %v1292_v58 }
 0x41f   : > { %v1790_v15 = vsel %vm1756_vm8, %v7753_v14, 0.0  ;;  %v7757_v18 = vpop.eup %7159  ;;  %v1555_v26 = vperm.slane %v1549_v20, %v7622_v9  ;;  %v1586_v17 = vrot.slane %v1559_v28, 4 }
 0x420   : > { %1791 = vadd.xlane.f32.xlu2 %v1790_v15  ;;  %v1784_v22 = vsel %vm1756_vm8, %v7757_v18, 0.0 }
 0x421   : > { %v1574_v32 = vrot.slane %v1555_v26, 4 }
 0x426   : > { %1785 = vadd.xlane.f32.xlu1 %v1784_v22 }
 0x429   : > { %v1540_v29 = vpop.permute.xlu1 %1539 }
 0x42a   : > { %v1561_v30 = vsel %vm1306_vm5, %v1560_v27, %v1540_v29  ;;  %v1562_v31 = vrot.slane %v1540_v29, 4 }
 0x42b   : > { %v1567_v33 = vperm.slane %v1561_v30, %v7622_v9 }
 0x42c   : > { %v1563_v35 = vsel %vm1306_vm5, %v1546_v21, %v1562_v31 }
 0x42d   : > { %v1571_v36 = vperm.slane %v1563_v35, %v7622_v9  ;;  %v1572_v38 = vrot.slane %v1567_v33, 4  ;;  %v1575_v25 = vsel %vm1306_vm5, %v1567_v33, %v1574_v32 }
 0x42e   : > { %v1583_v40 = vperm.slane %v1575_v25, %v7632_v24 }
 0x42f   : > { %v1573_v41 = vsel %vm1306_vm5, %v1572_v38, %v1555_v26  ;;  %v1584_v42 = vrot.slane %v1571_v36, 4  ;;  %v1587_v43 = vsel %vm1306_vm5, %v1571_v36, %v1586_v17 }
 0x430   : > { %v1579_v44 = vperm.slane %v1573_v41, %v7632_v24  ;;  %v1595_v45 = vperm.slane %v1587_v43, %v7632_v24  ;;  %v1598_v46 = vrot.slane %v1583_v40, 4 }
 0x431   : > { %v1585_v47 = vsel %vm1306_vm5, %v1584_v42, %v1559_v28 }
 0x432   : > { %v1591_v48 = vperm.slane %v1585_v47, %v7632_v24  ;;  %v1596_v49 = vrot.slane %v1579_v44, 4  ;;  %v1599_v50 = vsel %vm1306_vm5, 0.0, %v1598_v46  ;;  %v1602_v34 = vrot.slane %v1595_v45, 4 }
 0x433   : > { %v1604_v37 = vsel %vm1306_vm5, %v1598_v46, %v1579_v44  ;;  %v1609_v51 = vrot.slane %v1599_v50, 4 }
 0x434   : > { %v1597_v52 = vsel %vm1306_vm5, 0.0, %v1596_v49  ;;  %v1600_v53 = vrot.slane %v1591_v48, 4  ;;  %v1603_v55 = vsel %vm1306_vm5, 0.0, %v1602_v34  ;;  %v1608_v56 = vperm.slane %v1604_v37, %v7622_v9 }
 0x435   : > { %v1610_v58 = vsel %vm1306_vm5, %v1609_v51, %v1597_v52  ;;  %v1615_v59 = vsel %vm1306_vm5, %v1602_v34, %v1591_v48  ;;  %v1620_v60 = vrot.slane %v1603_v55, 4 }
 0x436   : > { %v1601_v54 = vsel %vm1306_vm5, 0.0, %v1600_v53  ;;  %v1614_v61 = vperm.slane %v1610_v58, %v7622_v9  ;;  %v1628_v62 = vrot.slane %v1608_v56, 4  ;;  %v1619_v63 = vperm.slane %v1615_v59, %v7622_v9 }
 0x437   : > { %v1621_v1 = vsel %vm1306_vm5, %v1620_v60, %v1601_v54 }
 0x438   : > { %v1625_v57 = vperm.slane %v1621_v1, %v7622_v9  ;;  %v1629_v2 = vsel %vm1306_vm5, %v1614_v61, %v1628_v62  ;;  %v1640_v3 = vrot.slane %v1619_v63, 4  ;;  %v1626_v4 = vrot.slane %v1614_v61, 4 }
 0x439   : > { %v1637_v5 = vperm.slane %v1629_v2, %v7632_v24 }
 0x43a   : > { %v1641_v6 = vsel %vm1306_vm5, %v1625_v57, %v1640_v3  ;;  %v1627_v7 = vsel %vm1306_vm5, %v1626_v4, %v1608_v56  ;;  %v1638_v10 = vrot.slane %v1625_v57, 4 }
 0x43b   : > { %v1649_v12 = vperm.slane %v1641_v6, %v7632_v24  ;;  %v1656_v13 = vrot.slane %v1637_v5, 4  ;;  %v1633_v15 = vperm.slane %v1627_v7, %v7632_v24 }
 0x43c   : > { %v1639_v16 = vsel %vm1306_vm5, %v1638_v10, %v1619_v63 }
 0x43d   : > { %v1657_v19 = vsel %vm1306_vm5, %v1649_v12, %v1656_v13  ;;  %v1645_v20 = vperm.slane %v1639_v16, %v7632_v24  ;;  %v1652_v21 = vrot.slane %v1633_v15, 4  ;;  %v1654_v22 = vrot.slane %v1649_v12, 4 }
 0x43e   : > { %v1808_v23 = vpack.c.bf16 %v1657_v19, %v1657_v19 }
 0x43f   : > { %v1653_v26 = vsel %vm1306_vm5, %v1645_v20, %v1652_v21  ;;  %v1655_v27 = vsel %vm1306_vm5, %v1654_v22, %v1637_v5  ;;  %v1650_v28 = vrot.slane %v1645_v20, 4 }
 0x440   : > { %v1871_v29 = vsel %vm1812_vm9, %v1808_v23, 0  ;;  %v1806_v30 = vpack.c.bf16 %v1653_v26, %v1653_v26  ;;  %v1807_v31 = vpack.c.bf16 %v1655_v27, %v1655_v27 }
 0x441   : > { %1880 = vmatpush.bf16.msra.mxu3 %v1871_v29  ;;  %v1651_v32 = vsel %vm1306_vm5, %v1650_v28, %v1633_v15 }
 0x442   : > { %v1833_v33 = vsel %vm1812_vm9, %v1806_v30, 0  ;;  %v1852_v35 = vsel %vm1812_vm9, %v1807_v31, 0  ;;  %v1805_v17 = vpack.c.bf16 %v1651_v32, %v1651_v32 }
 0x443   : > { %1842 = vmatpush.bf16.msrb.mxu1 %v1833_v33  ;;  %1861 = vmatpush.bf16.msra.mxu2 %v1852_v35 }
 0x444   : > { %v1814_v36 = vsel %vm1812_vm9, %v1805_v17, 0 }
 0x445   : > { %1823 = vmatpush.bf16.msrb.mxu0 %v1814_v36 }
 0x481   : > { %v1783_v38 = vpop.xlane.xlu0 %1782 }
 0x482   : > { %7161 = vrcp.f32 %v1783_v38 }
 0x488   : > { %v7162_v25 = vpop.eup %7161 }
 0x489   : > { %v1797_v40 = vmul.f32 %v7162_v25, %v7745_v0 }
 0x48b   : > { %v1801_v41 = vpack.c.bf16 %v1797_v40, %v1797_v40 }
 0x48d   : > { %6064 = vmatmul.msk.bf16.vlgmr.msrb.gmra.mxu0 %vm1756_vm8, %v1801_v41 }
 0x491   : > { %v1789_v42 = vpop.xlane.xlu1 %1788 }
 0x492   : > { %7163 = vrcp.f32 %v1789_v42 }
 0x493   : > { %v1792_v43 = vpop.xlane.xlu2 %1791 }
 0x494   : > { %7165 = vrcp.f32 %v1792_v43 }
 0x498   : > { %v7164_v44 = vpop.eup %7163 }
 0x499   : > { %v1799_v45 = vmul.f32 %v7164_v44, %v7749_v11  ;;  %v1786_v46 = vpop.xlane.xlu1 %1785 }
 0x49a   : > { %v7166_v47 = vpop.eup %7165  ;;  %7167 = vrcp.f32 %v1786_v46 }
 0x49b   : > { %v1803_v48 = vpack.c.bf16 %v1799_v45, %v1799_v45  ;;  %v1800_v49 = vmul.f32 %v7166_v47, %v7753_v14 }
 0x49d   : > { %v1804_v50 = vpack.c.bf16 %v1800_v49, %v1800_v49  ;;  %6066 = vmatmul.msk.bf16.vlgmr.msra.gmra.mxu2 %vm1756_vm8, %v1803_v48 }
 0x49f   : > { %6067 = vmatmul.msk.bf16.vlgmr.msra.gmra.mxu3 %vm1756_vm8, %v1804_v50 }
 0x4a0   : > { %v7168_v0 = vpop.eup %7167 }
 0x4a1   : > { %v1798_v34 = vmul.f32 %v7168_v0, %v7757_v18 }
 0x4a3   : > { %v1802_v37 = vpack.c.bf16 %v1798_v34, %v1798_v34 }
 0x4a5   : > { %6065 = vmatmul.msk.bf16.vlgmr.msrb.gmra.mxu1 %vm1756_vm8, %v1802_v37 }
 0x50a   : > { %v1825_v51 = vpop.f32.mrf.mxu0 }
 0x50b   : > { %v1888_v11 = vrot.slane %v1825_v51, 4 }
 0x512   : > { %v1827_v52 = vpop.f32.mrf.mxu0 }
 0x520   : > { %v1863_v53 = vpop.f32.mrf.mxu2 }
 0x521   : > { %v1886_v55 = vrot.slane %v1863_v53, 4  ;;  %v1889_v56 = vsel %vm1306_vm5, %v1863_v53, %v1888_v11 }
 0x522   : > { %v1897_v14 = vperm.slane %v1889_v56, %v7622_v9  ;;  %v1844_v58 = vpop.f32.mrf.mxu1  ;;  %v1882_v59 = vpop.f32.mrf.mxu3 }
 0x523   : > { %v1887_v60 = vsel %vm1306_vm5, %v1886_v55, %v1825_v51  ;;  %v1900_v54 = vrot.slane %v1844_v58, 4  ;;  %v1898_v61 = vrot.slane %v1882_v59, 4 }
 0x524   : > { %v1893_v18 = vperm.slane %v1887_v60, %v7622_v9  ;;  %v1924_v57 = vrot.slane %v1897_v14, 4 }
 0x525   : > { %v1899_v62 = vsel %vm1306_vm5, %v1898_v61, %v1844_v58  ;;  %v1901_v63 = vsel %vm1306_vm5, %v1882_v59, %v1900_v54  ;;  %v6872_v54 = vld [vmem:[%s7402_s14 + $0x18] sm:$0xff]  ;;  %v6871_v61 = vld [vmem:[%s7402_s14 + $0x10] sm:$0xff] }
 0x526   : > { %v1912_v1 = vrot.slane %v1893_v18, 4  ;;  %v1905_v2 = vperm.slane %v1899_v62, %v7622_v9  ;;  %v1909_v3 = vperm.slane %v1901_v63, %v7622_v9  ;;  %2048 = vmatpush.bf16.msra.mxu0 %v6872_v54  ;;  %v6869_v62 = vld [vmem:[%s7402_s14] sm:$0xff]  ;;  %v6876_v63 = vld [vmem:[%s7412_s24 + $0x18] sm:$0xff] }
 0x527   : > { %2093 = vmatpush.bf16.msra.mxu1 %v6876_v63 }
 0x528   : > { %v1910_v4 = vrot.slane %v1905_v2, 4  ;;  %v1913_v5 = vsel %vm1306_vm5, %v1905_v2, %v1912_v1  ;;  %v1922_v6 = vrot.slane %v1909_v3, 4  ;;  %v1925_v7 = vsel %vm1306_vm5, %v1909_v3, %v1924_v57  ;;  %v1865_v10 = vpop.f32.mrf.mxu2  ;;  %v6875_v1 = vld [vmem:[%s7412_s24 + $0x10] sm:$0xff] }
 0x529   : > { %v1921_v12 = vperm.slane %v1913_v5, %v7632_v24  ;;  %v1933_v13 = vperm.slane %v1925_v7, %v7632_v24  ;;  %v6874_v10 = vld [vmem:[%s7412_s24 + $0x8] sm:$0xff] }
 0x52a   : > { %v1911_v15 = vsel %vm1306_vm5, %v1910_v4, %v1893_v18  ;;  %v1923_v16 = vsel %vm1306_vm5, %v1922_v6, %v1897_v14  ;;  %v1846_v19 = vpop.f32.mrf.mxu1  ;;  %v1884_v20 = vpop.f32.mrf.mxu3  ;;  %2049 = vmatpush.bf16.msra.mxu0 %v6871_v61  ;;  %v6870_v18 = vld [vmem:[%s7402_s14 + $0x8] sm:$0xff] }
 0x52b   : > { %v1917_v21 = vperm.slane %v1911_v15, %v7632_v24  ;;  %v1929_v22 = vperm.slane %v1923_v16, %v7632_v24  ;;  %v1936_v23 = vrot.slane %v1921_v12, 4  ;;  %v1940_v26 = vrot.slane %v1933_v13, 4  ;;  %2094 = vmatpush.bf16.msra.mxu1 %v6875_v1  ;;  %v6873_v12 = vld [vmem:[%s7412_s24] sm:$0xff]  ;;  %v6884_v13 = vld [vmem:[%s8902_s6 + $0x38] sm:$0xff]  ;;  %v6883_v15 = vld [vmem:[%s8902_s6 + $0x30] sm:$0xff] }
 0x52c   : > { %2163 = vmatpush.bf16.msrb.mxu2 %v6884_v13  ;;  %v7121_v16 = vld [vmem:[%s7407_s19] ss:$0 sm:$0xff] }
 0x52d   : > { %v1934_v27 = vrot.slane %v1917_v21, 4  ;;  %v1937_v28 = vsel %vm1306_vm5, 0.0, %v1936_v23  ;;  %v1938_v29 = vrot.slane %v1929_v22, 4  ;;  %v1941_v30 = vsel %vm1306_vm5, 0.0, %v1940_v26 }
 0x52e   : > { %v1947_v31 = vrot.slane %v1937_v28, 4  ;;  %v1953_v32 = vsel %vm1306_vm5, %v1940_v26, %v1929_v22  ;;  %v1958_v33 = vrot.slane %v1941_v30, 4  ;;  %v1942_v35 = vsel %vm1306_vm5, %v1936_v23, %v1917_v21  ;;  %2050 = vmatpush.bf16.msra.mxu0 %v6870_v18  ;;  %v7241_v21 = vld [vmem:[%s7580_s22] sm:$0xff]  ;;  %v6892_v30 = vld [vmem:[%s8903_s4 + $0x18] sm:$0xff]  ;;  %s8920_s22 = sshll.u32 %s7574_s2, 3  ;;  %s8921_s2 = sld [smem:[#allocation13_spill]] }
 0x52f   : > { %v1939_v17 = vsel %vm1306_vm5, 0.0, %v1938_v29  ;;  %v1935_v36 = vsel %vm1306_vm5, 0.0, %v1934_v27  ;;  %v1946_v38 = vperm.slane %v1942_v35, %v7622_v9  ;;  %v1957_v25 = vperm.slane %v1953_v32, %v7622_v9  ;;  %2095 = vmatpush.bf16.msra.mxu1 %v6874_v10  ;;  %v6882_v27 = vld [vmem:[%s8902_s6 + $0x28] sm:$0xff]  ;;  %v6881_v28 = vld [vmem:[%s8902_s6 + $0x20] sm:$0xff]  ;;  %v6880_v29 = vld [vmem:[%s8902_s6 + $0x18] sm:$0xff] }
 0x530   : > { %v1948_v40 = vsel %vm1306_vm5, %v1947_v31, %v1935_v36  ;;  %v1959_v41 = vsel %vm1306_vm5, %v1958_v33, %v1939_v17  ;;  %2164 = vmatpush.bf16.msrb.mxu2 %v6883_v15  ;;  %v6891_v31 = vld [vmem:[%s8903_s4 + $0x10] sm:$0xff]  ;;  %v6878_v33 = vld [vmem:[%s8902_s6 + $0x8] sm:$0xff]  ;;  %v6877_v35 = vld [vmem:[%s8902_s6] sm:$0xff] }
 0x531   : > { %v1952_v42 = vperm.slane %v1948_v40, %v7622_v9  ;;  %v1963_v43 = vperm.slane %v1959_v41, %v7622_v9  ;;  %v1966_v44 = vrot.slane %v1946_v38, 4  ;;  %v1978_v45 = vrot.slane %v1957_v25, 4  ;;  %v6879_v32 = vld [vmem:[%s8902_s6 + $0x10] sm:$0xff]  ;;  %v6890_v17 = vld [vmem:[%s8903_s4 + $0x8] sm:$0xff]  ;;  %v6888_v36 = vld [vmem:[%s7432_s20 + $0x18] sm:$0xff] }
 0x532   : > { %2051 = vmatpush.bf16.msra.mxu0 %v6869_v62  ;;  %2212 = vmatpush.bf16.msrb.mxu3 %v6888_v36  ;;  %v6887_v40 = vld [vmem:[%s7432_s20 + $0x10] sm:$0xff]  ;;  %v7122_v41 = vld [vmem:[%s7417_s30] ss:$0 sm:$0xff] }
 0x533   : > { %v1967_v46 = vsel %vm1306_vm5, %v1952_v42, %v1966_v44  ;;  %v1979_v47 = vsel %vm1306_vm5, %v1963_v43, %v1978_v45  ;;  %v1964_v48 = vrot.slane %v1952_v42, 4  ;;  %v1976_v49 = vrot.slane %v1963_v43, 4  ;;  %2096 = vmatpush.bf16.msra.mxu1 %v6873_v12 }
 0x534   : > { %v1975_v50 = vperm.slane %v1967_v46, %v7632_v24  ;;  %v1987_v0 = vperm.slane %v1979_v47, %v7632_v24  ;;  %2165 = vmatpush.bf16.msrb.mxu2 %v6882_v27 }
 0x535   : > { %v1965_v34 = vsel %vm1306_vm5, %v1964_v48, %v1946_v38  ;;  %v1977_v37 = vsel %vm1306_vm5, %v1976_v49, %v1957_v25  ;;  %v6889_v25 = vld [vmem:[%s8903_s4] sm:$0xff] }
 0x536   : > { %v1994_v51 = vrot.slane %v1975_v50, 4  ;;  %v1992_v52 = vrot.slane %v1987_v0, 4  ;;  %v1971_v11 = vperm.slane %v1965_v34, %v7632_v24  ;;  %v1983_v53 = vperm.slane %v1977_v37, %v7632_v24  ;;  %2256 = vmatpush.bf16.msrb.mxu0 %v6892_v30  ;;  %2213 = vmatpush.bf16.msrb.mxu3 %v6887_v40 }
 0x538   : > { %v1995_v55 = vsel %vm1306_vm5, %v1987_v0, %v1994_v51  ;;  %v1993_v56 = vsel %vm1306_vm5, %v1992_v52, %v1975_v50  ;;  %v1988_v14 = vrot.slane %v1983_v53, 4  ;;  %v1990_v58 = vrot.slane %v1971_v11, 4  ;;  %2166 = vmatpush.bf16.msrb.mxu2 %v6881_v28 }
 0x539   : > { %2005 = vrot.lane.b32.xlu0 %v1995_v55, %s8851_s26  ;;  %2001 = vrot.lane.b32.xlu1 %v1993_v56, %s8849_s16  ;;  %v7124_v55 = vld [vmem:[%s7447_s17] ss:$0 sm:$0xff]  ;;  %s8924_s16 = sld [smem:[#allocation16_spill]] }
 0x53a   : > { %v1991_v59 = vsel %vm1306_vm5, %v1983_v53, %v1990_v58  ;;  %v1989_v60 = vsel %vm1306_vm5, %v1988_v14, %v1971_v11  ;;  %2257 = vmatpush.bf16.msrb.mxu0 %v6891_v31  ;;  %v6886_v11 = vld [vmem:[%s7432_s20 + $0x8] sm:$0xff]  ;;  %v6885_v53 = vld [vmem:[%s7432_s20] sm:$0xff]  ;;  %s8925_s26 = sld [smem:[#allocation14_spill]] }
 0x53b   : > { %1997 = vrot.lane.b32.xlu2 %v1991_v59, %s8847_s23  ;;  %s1026_s23 = scalar_lea.vmem %s8919_s9, %s8920_s22  ;;  %2214 = vmatpush.bf16.msrb.mxu3 %v6886_v11  ;;  %s8923_s22 = smov 112   ;;  %v7123_v59 = vld [vmem:[%s8921_s2] ss:$0 sm:$0xff] }
 0x53c   : > { %2167 = vmatpush.bf16.msrb.mxu2 %v6880_v29  ;;  %v1029_v38 = vld [vmem:[%s1026_s23] sm:$0xff]  ;;  %s8922_s23 = smov 80   ;;  %s8927_s9 = smov 96  }
 0x53d   : > { %v7889_v42 = vpack.c.bf16 %v1029_v38, %v1029_v38 }
 0x53e   : > { %2258 = vmatpush.bf16.msrb.mxu0 %v6890_v17 }
 0x53f   : > { %2215 = vmatpush.bf16.msrb.mxu3 %v6885_v53  ;;  %v6895_v11 = vld [vmem:[%s8924_s16 + $0x10] sm:$0xff] }
 0x540   : > { %2168 = vmatpush.bf16.msrb.mxu2 %v6879_v32 }
 0x542   : > { %2259 = vmatpush.bf16.msrb.mxu0 %v6889_v25 }
 0x544   : > { %2169 = vmatpush.bf16.msrb.mxu2 %v6878_v33 }
 0x548   : > { %2170 = vmatpush.bf16.msrb.mxu2 %v6877_v35 }
 0x595   : > { %v1998_v57 = vpop.permute.xlu2 %1997 }
 0x596   : > { %v2008_v2 = vsel %vm1666_vm6, %v1989_v60, %v1998_v57 }
 0x5ab   : > { %v2006_v3 = vpop.permute.xlu0 %2005  ;;  %v2002_v4 = vpop.permute.xlu1 %2001 }
 0x5ac   : > { %v2010_v5 = vsel %vm2009_vm10, %v2008_v2, %v2002_v4 }
 0x5ad   : > { %v2012_v6 = vsel %vm2011_vm11, %v2010_v5, %v2006_v3 }
 0x5ae   : > { %v2013_v7 = vpack.c.bf16 %v2012_v6, %v2012_v6 }
 0x5b0   : > { %6084 = vmatmul.msk.bf16.vlgmr.msra.gmra.mxu0 %vm1182_vm0, %v2013_v7 }
 0x5c0   : > { %6167 = vmatmul.msk.bf16.vlgmr.msrb.gmra.mxu0 %vm1182_vm0, %v7889_v42 }
 0x62d   : > { %v2053_v19 = vpop.f32.mrf.mxu0 }
 0x62e   : > { %v2054_v20 = vadd.f32 %v7121_v16, %v2053_v19 }
 0x630   : > { %v2057_v22 = vadd.f32 %v7241_v21, %v2054_v20 }
 0x632   : > { %v2058_v23 = vpack.c.bf16 %v2057_v22, %v2057_v22 }
 0x634   : > { %6101 = vmatmul.msk.bf16.vlgmr.msra.gmra.mxu1 %vm1182_vm0, %v2058_v23 }
 0x635   : > { %v2055_v26 = vpop.f32.mrf.mxu0 }
 0x63d   : > { %v2261_v56 = vpop.f32.mrf.mxu0 }
 0x63e   : > { %v2262_v14 = vadd.f32 %v7124_v55, %v2261_v56 }
 0x640   : > { %2429 = vrot.lane.b32.xlu1 %v2262_v14, %s8853_s5  ;;  %2432 = vrot.lane.b32.xlu0 %v2262_v14, %s8922_s23  ;;  %v2437_v1 = vrot.slane %v2262_v14, 4 }
 0x641   : > { %2426 = vrot.lane.b32.xlu2 %v2262_v14, %s8923_s22 }
 0x645   : > { %v2263_v58 = vpop.f32.mrf.mxu0 }
 0x69b   : > { %v2427_v63 = vpop.permute.xlu2 %2426 }
 0x69c   : > { %v2449_v57 = vrot.slane %v2427_v63, 4 }
 0x6b1   : > { %v2098_v43 = vpop.f32.mrf.mxu1 }
 0x6b2   : > { %v2099_v44 = vadd.f32 %v7122_v41, %v2098_v43  ;;  %v2430_v2 = vpop.permute.xlu1 %2429  ;;  %v2433_v3 = vpop.permute.xlu0 %2432 }
 0x6b3   : > { %v2435_v4 = vrot.slane %v2430_v2, 4  ;;  %v2438_v5 = vsel %vm1306_vm5, %v2430_v2, %v2437_v1  ;;  %v2447_v6 = vrot.slane %v2433_v3, 4  ;;  %v2450_v7 = vsel %vm1306_vm5, %v2433_v3, %v2449_v57 }
 0x6b4   : > { %v2103_v45 = vmul.f32 0.044715, %v2099_v44  ;;  %v2102_v34 = vmul.f32 0.5, %v2099_v44  ;;  %v2446_v10 = vperm.slane %v2438_v5, %v7622_v9  ;;  %v2458_v12 = vperm.slane %v2450_v7, %v7622_v9 }
 0x6b5   : > { %v2436_v13 = vsel %vm1306_vm5, %v2435_v4, %v2262_v14  ;;  %v2448_v15 = vsel %vm1306_vm5, %v2447_v6, %v2427_v63  ;;  %v6894_v63 = vld [vmem:[%s8924_s16 + $0x8] sm:$0xff]  ;;  %v6893_v6 = vld [vmem:[%s8924_s16] sm:$0xff] }
 0x6b6   : > { %v2104_v46 = vmul.f32 %v2103_v45, %v2099_v44  ;;  %v2442_v16 = vperm.slane %v2436_v13, %v7622_v9  ;;  %v2473_v19 = vrot.slane %v2446_v10, 4  ;;  %v2454_v20 = vperm.slane %v2448_v15, %v7622_v9 }
 0x6b7   : > { %v2471_v21 = vrot.slane %v2458_v12, 4 }
 0x6b8   : > { %v2105_v47 = vmul.f32 %v2104_v46, %v2099_v44  ;;  %v2459_v23 = vrot.slane %v2454_v20, 4  ;;  %v2474_v27 = vsel %vm1306_vm5, %v2458_v12, %v2473_v19 }
 0x6b9   : > { %v2100_v48 = vpop.f32.mrf.mxu1  ;;  %v2472_v26 = vsel %vm1306_vm5, %v2471_v21, %v2446_v10  ;;  %v2482_v29 = vperm.slane %v2474_v27, %v7632_v24 }
 0x6ba   : > { %v2106_v49 = vadd.f32 %v2105_v47, %v2099_v44  ;;  %v2478_v28 = vperm.slane %v2472_v26, %v7632_v24  ;;  %v2460_v30 = vsel %vm1306_vm5, %v2459_v23, %v2442_v16  ;;  %v7125_v26 = vld [vmem:[%s8925_s26] ss:$0 sm:$0xff] }
 0x6bb   : > { %v2466_v32 = vperm.slane %v2460_v30, %v7632_v24  ;;  %v2489_v17 = vrot.slane %v2482_v29, 4 }
 0x6bc   : > { %v2107_v50 = vmul.f32 0.7978846, %v2106_v49  ;;  %v2487_v35 = vrot.slane %v2478_v28, 4 }
 0x6bd   : > { %v2483_v36 = vrot.slane %v2466_v32, 4  ;;  %v2490_v40 = vsel %vm1306_vm5, 0.0, %v2489_v17  ;;  %v2502_v41 = vsel %vm1306_vm5, %v2489_v17, %v2478_v28 }
 0x6be   : > { %7169 = vtanh.f32 %v2107_v50  ;;  %v2488_v25 = vsel %vm1306_vm5, 0.0, %v2487_v35  ;;  %v2507_v43 = vrot.slane %v2490_v40, 4  ;;  %v2506_v46 = vperm.slane %v2502_v41, %v7622_v9  ;;  %v6896_v50 = vld [vmem:[%s8924_s16 + $0x18] sm:$0xff] }
 0x6bf   : > { %v2484_v44 = vsel %vm1306_vm5, 0.0, %v2483_v36  ;;  %2296 = vmatpush.bf16.msrb.mxu1 %v6896_v50 }
 0x6c0   : > { %v2508_v48 = vsel %vm1306_vm5, %v2507_v43, %v2488_v25 }
 0x6c1   : > { %v2512_v49 = vperm.slane %v2508_v48, %v7622_v9 }
 0x6c3   : > { %2297 = vmatpush.bf16.msrb.mxu1 %v6895_v11 }
 0x6c4   : > { %v7170_v0 = vpop.eup %7169 }
 0x6c5   : > { %v2109_v37 = vadd.f32 1.0, %v7170_v0 }
 0x6c7   : > { %v2110_v51 = vmul.f32 %v2109_v37, %v2102_v34  ;;  %v2527_v34 = vrot.slane %v2506_v46, 4  ;;  %2298 = vmatpush.bf16.msrb.mxu1 %v6894_v63 }
 0x6c9   : > { %v2111_v52 = vpack.c.bf16 %v2110_v51, %v2110_v51  ;;  %v2525_v51 = vrot.slane %v2512_v49, 4 }
 0x6cb   : > { %2171 = vmatmul.bf16.vlgmr.msrb.gmra.mxu2 %v2111_v52  ;;  %v2526_v56 = vsel %vm1306_vm5, %v2525_v51, %v2506_v46  ;;  %2299 = vmatpush.bf16.msrb.mxu1 %v6893_v6 }
 0x6cc   : > { %v2532_v14 = vperm.slane %v2526_v56, %v7632_v24 }
 0x6ce   : > { %6184 = vmatmul.msk.bf16.vlgmr.msrb.gmra.mxu1 %vm1182_vm0, %v7889_v42 }
 0x74e   : > { %v2172_v60 = vpop.f32.mrf.mxu2 }
 0x74f   : > { %v2173_v54 = vadd.f32 %v7123_v59, %v2172_v60  ;;  %v2528_v60 = vsel %vm1306_vm5, %v2512_v49, %v2527_v34 }
 0x751   : > { %v7900_v61 = vadd.f32 %v2173_v54, %v2057_v22  ;;  %v2461_v22 = vrot.slane %v2442_v16, 4 }
 0x753   : > { %v2177_v18 = vpack.c.bf16 %v7900_v61, %v7900_v61  ;;  %v2462_v31 = vsel %vm1306_vm5, %v2454_v20, %v2461_v22 }
 0x754   : > { %v2470_v33 = vperm.slane %v2462_v31, %v7632_v24  ;;  %v7959_v31 = vpop.f32.mrf.mxu1 }
 0x755   : > { %6150 = vmatmul.msk.bf16.vlgmr.msrb.gmra.mxu3 %vm1182_vm0, %v2177_v18  ;;  %v2537_v18 = vrot.slane %v2532_v14, 4 }
 0x756   : > { %v2174_v62 = vpop.f32.mrf.mxu2  ;;  %v2485_v38 = vrot.slane %v2470_v33, 4 }
 0x757   : > { %v2536_v62 = vperm.slane %v2528_v60, %v7632_v24 }
 0x758   : > { %v2486_v45 = vsel %vm1306_vm5, 0.0, %v2485_v38  ;;  %v2491_v52 = vsel %vm1306_vm5, %v2485_v38, %v2466_v32 }
 0x759   : > { %v2496_v47 = vrot.slane %v2486_v45, 4  ;;  %v2495_v53 = vperm.slane %v2491_v52, %v7622_v9  ;;  %v2541_v4 = vrot.slane %v2536_v62, 4 }
 0x75b   : > { %v2497_v0 = vsel %vm1306_vm5, %v2496_v47, %v2484_v44  ;;  %v2515_v59 = vrot.slane %v2495_v53, 4 }
 0x75c   : > { %v2501_v37 = vperm.slane %v2497_v0, %v7622_v9  ;;  %v2303_v50 = vpop.f32.mrf.mxu1 }
 0x75e   : > { %v2513_v55 = vrot.slane %v2501_v37, 4  ;;  %v2516_v1 = vsel %vm1306_vm5, %v2501_v37, %v2515_v59 }
 0x75f   : > { %v2524_v3 = vperm.slane %v2516_v1, %v7632_v24 }
 0x760   : > { %v2514_v58 = vsel %vm1306_vm5, %v2513_v55, %v2495_v53 }
 0x761   : > { %v2520_v54 = vperm.slane %v2514_v58, %v7632_v24  ;;  %v2542_v10 = vsel %vm1306_vm5, %v2541_v4, %v2524_v3  ;;  %v2543_v12 = vrot.slane %v2524_v3, 4 }
 0x762   : > { %v2671_v16 = vpack.c.bf16 %v2542_v10, %v2542_v10 }
 0x763   : > { %v2538_v57 = vsel %vm1306_vm5, %v2537_v18, %v2520_v54  ;;  %v2539_v2 = vrot.slane %v2520_v54, 4  ;;  %v2544_v19 = vsel %vm1306_vm5, %v2536_v62, %v2543_v12 }
 0x764   : > { %v2669_v5 = vpack.c.bf16 %v2538_v57, %v2538_v57  ;;  %v2715_v21 = vsel %vm1666_vm6, %v2671_v16, 0  ;;  %v2672_v22 = vpack.c.bf16 %v2544_v19, %v2544_v19 }
 0x765   : > { %v2540_v7 = vsel %vm1306_vm5, %v2532_v14, %v2539_v2  ;;  %2724 = vmatpush.bf16.xpose.msra.mxu1 %v2715_v21 }
 0x766   : > { %v2677_v13 = vsel %vm1666_vm6, %v2669_v5, 0  ;;  %v2670_v15 = vpack.c.bf16 %v2540_v7, %v2540_v7  ;;  %v2734_v23 = vsel %vm1666_vm6, %v2672_v22, 0 }
 0x767   : > { %2686 = vmatpush.bf16.xpose.msra.mxu3 %v2677_v13  ;;  %2743 = vmatpush.bf16.xpose.msra.mxu2 %v2734_v23 }
 0x768   : > { %v2696_v20 = vsel %vm1666_vm6, %v2670_v15, 0 }
 0x769   : > { %2705 = vmatpush.bf16.xpose.msra.mxu0 %v2696_v20 }
 0x7d8   : > { %v2217_v27 = vpop.f32.mrf.mxu3 }
 0x7d9   : > { %v2218_v28 = vadd.f32 %v7125_v26, %v2217_v27 }
 0x7db   : > { %2312 = vrot.lane.b32.xlu0 %v2218_v28, %s8922_s23  ;;  %2309 = vrot.lane.b32.xlu1 %v2218_v28, %s8853_s5  ;;  %v2317_v33 = vrot.slane %v2218_v28, 4  ;;  %s8926_s5 = sld [smem:[#allocation17_spill]] }
 0x7dc   : > { %2306 = vrot.lane.b32.xlu2 %v2218_v28, %s8923_s22 }
 0x7e0   : > { %v2219_v29 = vpop.f32.mrf.mxu3 }
 0x836   : > { %v2307_v30 = vpop.permute.xlu2 %2306 }
 0x837   : > { %v2329_v32 = vrot.slane %v2307_v30, 4 }
 0x84d   : > { %v2313_v35 = vpop.permute.xlu0 %2312  ;;  %v2310_v17 = vpop.permute.xlu1 %2309 }
 0x84e   : > { %v2327_v36 = vrot.slane %v2313_v35, 4  ;;  %v2330_v38 = vsel %vm1306_vm5, %v2313_v35, %v2329_v32  ;;  %v2315_v25 = vrot.slane %v2310_v17, 4  ;;  %v2318_v40 = vsel %vm1306_vm5, %v2310_v17, %v2317_v33 }
 0x84f   : > { %v2338_v41 = vperm.slane %v2330_v38, %v7622_v9  ;;  %v2326_v43 = vperm.slane %v2318_v40, %v7622_v9 }
 0x850   : > { %v2328_v44 = vsel %vm1306_vm5, %v2327_v36, %v2307_v30  ;;  %v2316_v45 = vsel %vm1306_vm5, %v2315_v25, %v2218_v28 }
 0x851   : > { %v2334_v46 = vperm.slane %v2328_v44, %v7622_v9  ;;  %v2351_v47 = vrot.slane %v2338_v41, 4  ;;  %v2322_v48 = vperm.slane %v2316_v45, %v7622_v9  ;;  %v2353_v49 = vrot.slane %v2326_v43, 4 }
 0x853   : > { %v2339_v0 = vrot.slane %v2334_v46, 4  ;;  %v2341_v34 = vrot.slane %v2322_v48, 4  ;;  %v2352_v37 = vsel %vm1306_vm5, %v2351_v47, %v2326_v43  ;;  %v2354_v51 = vsel %vm1306_vm5, %v2338_v41, %v2353_v49 }
 0x854   : > { %v2358_v52 = vperm.slane %v2352_v37, %v7632_v24  ;;  %v2362_v11 = vperm.slane %v2354_v51, %v7632_v24 }
 0x855   : > { %v2340_v53 = vsel %vm1306_vm5, %v2339_v0, %v2322_v48  ;;  %v2342_v55 = vsel %vm1306_vm5, %v2334_v46, %v2341_v34 }
 0x856   : > { %v2346_v56 = vperm.slane %v2340_v53, %v7632_v24  ;;  %v2350_v14 = vperm.slane %v2342_v55, %v7632_v24  ;;  %v2367_v58 = vrot.slane %v2358_v52, 4  ;;  %v2369_v59 = vrot.slane %v2362_v11, 4 }
 0x858   : > { %v2363_v60 = vrot.slane %v2346_v56, 4  ;;  %v2365_v54 = vrot.slane %v2350_v14, 4  ;;  %v2370_v18 = vsel %vm1306_vm5, 0.0, %v2369_v59  ;;  %v2382_v62 = vsel %vm1306_vm5, %v2369_v59, %v2358_v52  ;;  %v7126_v59 = vld [vmem:[%s8926_s5] ss:$0 sm:$0xff] }
 0x859   : > { %v2387_v63 = vrot.slane %v2370_v18, 4  ;;  %v2368_v57 = vsel %vm1306_vm5, 0.0, %v2367_v58  ;;  %v2386_v3 = vperm.slane %v2382_v62, %v7622_v9 }
 0x85a   : > { %v2366_v1 = vsel %vm1306_vm5, 0.0, %v2365_v54  ;;  %v2371_v2 = vsel %vm1306_vm5, %v2365_v54, %v2346_v56  ;;  %v2364_v7 = vsel %vm1306_vm5, 0.0, %v2363_v60  ;;  %v2302_v60 = vadd.f32 %v7126_v59, %v7959_v31 }
 0x85b   : > { %v2375_v4 = vperm.slane %v2371_v2, %v7622_v9  ;;  %v2376_v5 = vrot.slane %v2366_v1, 4  ;;  %v2388_v6 = vsel %vm1306_vm5, %v2387_v63, %v2368_v57  ;;  %v2407_v12 = vrot.slane %v2386_v3, 4 }
 0x85c   : > { %v2392_v10 = vperm.slane %v2388_v6, %v7622_v9 }
 0x85d   : > { %v2377_v13 = vsel %vm1306_vm5, %v2376_v5, %v2364_v7  ;;  %v2395_v15 = vrot.slane %v2375_v4, 4 }
 0x85e   : > { %v2381_v16 = vperm.slane %v2377_v13, %v7622_v9  ;;  %v2405_v19 = vrot.slane %v2392_v10, 4  ;;  %v2408_v20 = vsel %vm1306_vm5, %v2392_v10, %v2407_v12 }
 0x85f   : > { %v2416_v21 = vperm.slane %v2408_v20, %v7632_v24 }
 0x860   : > { %v2393_v22 = vrot.slane %v2381_v16, 4  ;;  %v2406_v23 = vsel %vm1306_vm5, %v2405_v19, %v2386_v3  ;;  %v2396_v26 = vsel %vm1306_vm5, %v2381_v16, %v2395_v15 }
 0x861   : > { %v2404_v27 = vperm.slane %v2396_v26, %v7632_v24  ;;  %v2421_v28 = vrot.slane %v2416_v21, 4  ;;  %v2412_v29 = vperm.slane %v2406_v23, %v7632_v24 }
 0x862   : > { %v2394_v30 = vsel %vm1306_vm5, %v2393_v22, %v2375_v4 }
 0x863   : > { %v2422_v32 = vsel %vm1306_vm5, %v2421_v28, %v2404_v27  ;;  %v2400_v33 = vperm.slane %v2394_v30, %v7632_v24  ;;  %v2417_v35 = vrot.slane %v2412_v29, 4  ;;  %v2423_v17 = vrot.slane %v2404_v27, 4 }
 0x864   : > { %v2667_v36 = vpack.c.bf16 %v2422_v32, %v2422_v32 }
 0x865   : > { %v2418_v38 = vsel %vm1306_vm5, %v2417_v35, %v2400_v33  ;;  %v2424_v25 = vsel %vm1306_vm5, %v2416_v21, %v2423_v17  ;;  %v2419_v40 = vrot.slane %v2400_v33, 4  ;;  %v2557_v21 = vrot.slane %v2302_v60, 4 }
 0x866   : > { %6187 = vmatmul.msk.bf16.vlgmr.msra.gmra.mxu1 %vm1666_vm6, %v2667_v36  ;;  %v2665_v41 = vpack.c.bf16 %v2418_v38, %v2418_v38  ;;  %v2668_v43 = vpack.c.bf16 %v2424_v25, %v2424_v25 }
 0x867   : > { %v2420_v44 = vsel %vm1306_vm5, %v2412_v29, %v2419_v40 }
 0x868   : > { %6185 = vmatmul.msk.bf16.vlgmr.msra.gmra.mxu3 %vm1666_vm6, %v2665_v41  ;;  %6188 = vmatmul.msk.bf16.vlgmr.msra.gmra.mxu2 %vm1666_vm6, %v2668_v43  ;;  %v2666_v45 = vpack.c.bf16 %v2420_v44, %v2420_v44 }
 0x86a   : > { %6186 = vmatmul.msk.bf16.vlgmr.msra.gmra.mxu0 %vm1666_vm6, %v2666_v45 }
 0x8e3   : > { %v2726_v46 = vpop.f32.mrf.mxu1 }
 0x8e4   : > { %v2751_v47 = vmul.f32 0.25, %v2726_v46 }
 0x8e6   : > { %v2759_v48 = vsel %vm1756_vm8, %v2751_v47, -inf }
 0x8e7   : > { %2760 = vmax.xlane.f32.xlu0 %v2759_v48  ;;  %v2707_v49 = vpop.f32.mrf.mxu0 }
 0x8e8   : > { %v2750_v50 = vmul.f32 0.25, %v2707_v49 }
 0x8ea   : > { %v2756_v0 = vsel %vm1756_vm8, %v2750_v50, -inf }
 0x8eb   : > { %v2728_v34 = vpop.f32.mrf.mxu1  ;;  %v2745_v37 = vpop.f32.mrf.mxu2  ;;  %2757 = vmax.xlane.f32.xlu2 %v2756_v0 }
 0x8ec   : > { %v2752_v51 = vmul.f32 0.25, %v2745_v37  ;;  %v2688_v52 = vpop.f32.mrf.mxu3 }
 0x8ed   : > { %v2749_v11 = vmul.f32 0.25, %v2688_v52 }
 0x8ee   : > { %v2762_v53 = vsel %vm1756_vm8, %v2752_v51, -inf }
 0x8ef   : > { %2763 = vmax.xlane.f32.xlu1 %v2762_v53  ;;  %v2709_v55 = vpop.f32.mrf.mxu0  ;;  %v2753_v56 = vsel %vm1756_vm8, %v2749_v11, -inf }
 0x8f3   : > { %v2747_v14 = vpop.f32.mrf.mxu2  ;;  %2754 = vmax.xlane.f32.xlu2 %v2753_v56 }
 0x8f4   : > { %v2690_v58 = vpop.f32.mrf.mxu3 }
 0x8fb   : > { %2549 = vrot.lane.b32.xlu0 %v2302_v60, %s8927_s9 }
 0x908   : > { %2546 = vrot.lane.b32.xlu1 %v2302_v60, %s8923_s22 }
 0x90b   : > { %2552 = vrot.lane.b32.xlu2 %v2302_v60, %s8922_s23 }
 0x95a   : > { %v2761_v54 = vpop.xlane.xlu0 %2760 }
 0x95b   : > { %v2767_v18 = vsub.f32 %v2751_v47, %v2761_v54 }
 0x95d   : > { %v2773_v62 = vmul.f32 1.442695, %v2767_v18 }
 0x95e   : > { %v2758_v63 = vpop.xlane.xlu2 %2757 }
 0x95f   : > { %7171 = vpow2.f32 %v2773_v62  ;;  %v2766_v6 = vsub.f32 %v2750_v50, %v2758_v63 }
 0x961   : > { %v2771_v12 = vmul.f32 1.442695, %v2766_v6 }
 0x962   : > { %v2764_v1 = vpop.xlane.xlu1 %2763 }
 0x963   : > { %v2768_v57 = vsub.f32 %v2752_v51, %v2764_v1 }
 0x965   : > { %v8014_v2 = vpop.eup %7171  ;;  %v2775_v3 = vmul.f32 1.442695, %v2768_v57 }
 0x966   : > { %v2755_v4 = vpop.xlane.xlu2 %2754  ;;  %v2783_v31 = vsel %vm1756_vm8, %v8014_v2, 0.0 }
 0x967   : > { %7173 = vpow2.f32 %v2775_v3  ;;  %v2765_v5 = vsub.f32 %v2749_v11, %v2755_v4  ;;  %2784 = vadd.xlane.f32.xlu2 %v2783_v31 }
 0x969   : > { %v2769_v7 = vmul.f32 1.442695, %v2765_v5 }
 0x96b   : > { %7175 = vpow2.f32 %v2769_v7 }
 0x96c   : > { %7177 = vpow2.f32 %v2771_v12 }
 0x96d   : > { %v8018_v10 = vpop.eup %7173  ;;  %v2550_v13 = vpop.permute.xlu0 %2549 }
 0x96e   : > { %v2786_v15 = vsel %vm1756_vm8, %v8018_v10, 0.0  ;;  %v2555_v19 = vrot.slane %v2550_v13, 4  ;;  %v2553_v23 = vpop.permute.xlu2 %2552  ;;  %v2558_v27 = vsel %vm1306_vm5, %v2550_v13, %v2557_v21 }
 0x96f   : > { %2787 = vadd.xlane.f32.xlu1 %v2786_v15  ;;  %v2567_v29 = vrot.slane %v2553_v23, 4  ;;  %v2566_v30 = vperm.slane %v2558_v27, %v7622_v9 }
 0x970   : > { %v2556_v22 = vsel %vm1306_vm5, %v2555_v19, %v2302_v60 }
 0x971   : > { %v8022_v16 = vpop.eup %7175  ;;  %v2562_v28 = vperm.slane %v2556_v22, %v7622_v9  ;;  %v2593_v40 = vrot.slane %v2566_v30, 4 }
 0x972   : > { %v2777_v20 = vsel %vm1756_vm8, %v8022_v16, 0.0  ;;  %v8027_v26 = vpop.eup %7177 }
 0x973   : > { %2778 = vadd.xlane.f32.xlu0 %v2777_v20  ;;  %v2780_v33 = vsel %vm1756_vm8, %v8027_v26, 0.0  ;;  %v2581_v36 = vrot.slane %v2562_v28, 4 }
 0x97a   : > { %v2547_v32 = vpop.permute.xlu1 %2546 }
 0x97b   : > { %v2568_v35 = vsel %vm1306_vm5, %v2567_v29, %v2547_v32  ;;  %v2569_v17 = vrot.slane %v2547_v32, 4  ;;  %2781 = vadd.xlane.f32.xlu0 %v2780_v33 }
 0x97c   : > { %v2574_v38 = vperm.slane %v2568_v35, %v7622_v9 }
 0x97d   : > { %v2570_v25 = vsel %vm1306_vm5, %v2553_v23, %v2569_v17 }
 0x97e   : > { %v2578_v41 = vperm.slane %v2570_v25, %v7622_v9  ;;  %v2579_v43 = vrot.slane %v2574_v38, 4  ;;  %v2582_v44 = vsel %vm1306_vm5, %v2574_v38, %v2581_v36 }
 0x97f   : > { %v2590_v45 = vperm.slane %v2582_v44, %v7632_v24 }
 0x980   : > { %v2580_v46 = vsel %vm1306_vm5, %v2579_v43, %v2562_v28  ;;  %v2591_v47 = vrot.slane %v2578_v41, 4  ;;  %v2594_v48 = vsel %vm1306_vm5, %v2578_v41, %v2593_v40 }
 0x981   : > { %v2586_v49 = vperm.slane %v2580_v46, %v7632_v24  ;;  %v2602_v50 = vperm.slane %v2594_v48, %v7632_v24  ;;  %v2605_v0 = vrot.slane %v2590_v45, 4 }
 0x982   : > { %v2592_v34 = vsel %vm1306_vm5, %v2591_v47, %v2566_v30 }
 0x983   : > { %v2598_v37 = vperm.slane %v2592_v34, %v7632_v24  ;;  %v2603_v51 = vrot.slane %v2586_v49, 4  ;;  %v2606_v52 = vsel %vm1306_vm5, 0.0, %v2605_v0  ;;  %v2609_v11 = vrot.slane %v2602_v50, 4 }
 0x984   : > { %v2611_v53 = vsel %vm1306_vm5, %v2605_v0, %v2586_v49  ;;  %v2616_v55 = vrot.slane %v2606_v52, 4 }
 0x985   : > { %v2604_v56 = vsel %vm1306_vm5, 0.0, %v2603_v51  ;;  %v2607_v14 = vrot.slane %v2598_v37, 4  ;;  %v2610_v58 = vsel %vm1306_vm5, 0.0, %v2609_v11  ;;  %v2615_v59 = vperm.slane %v2611_v53, %v7622_v9 }
 0x986   : > { %v2617_v60 = vsel %vm1306_vm5, %v2616_v55, %v2604_v56  ;;  %v2622_v54 = vsel %vm1306_vm5, %v2609_v11, %v2598_v37  ;;  %v2627_v18 = vrot.slane %v2610_v58, 4 }
 0x987   : > { %v2608_v62 = vsel %vm1306_vm5, 0.0, %v2607_v14  ;;  %v2621_v63 = vperm.slane %v2617_v60, %v7622_v9  ;;  %v2635_v1 = vrot.slane %v2615_v59, 4  ;;  %v2626_v57 = vperm.slane %v2622_v54, %v7622_v9 }
 0x988   : > { %v2628_v3 = vsel %vm1306_vm5, %v2627_v18, %v2608_v62 }
 0x989   : > { %v2632_v4 = vperm.slane %v2628_v3, %v7622_v9  ;;  %v2636_v31 = vsel %vm1306_vm5, %v2621_v63, %v2635_v1  ;;  %v2647_v5 = vrot.slane %v2626_v57, 4  ;;  %v2633_v6 = vrot.slane %v2621_v63, 4 }
 0x98a   : > { %v2644_v7 = vperm.slane %v2636_v31, %v7632_v24 }
 0x98b   : > { %v2648_v12 = vsel %vm1306_vm5, %v2632_v4, %v2647_v5  ;;  %v2634_v13 = vsel %vm1306_vm5, %v2633_v6, %v2615_v59  ;;  %v2645_v15 = vrot.slane %v2632_v4, 4 }
 0x98c   : > { %v2656_v19 = vperm.slane %v2648_v12, %v7632_v24  ;;  %v2663_v20 = vrot.slane %v2644_v7, 4  ;;  %v2640_v21 = vperm.slane %v2634_v13, %v7632_v24 }
 0x98d   : > { %v2646_v22 = vsel %vm1306_vm5, %v2645_v15, %v2626_v57 }
 0x98e   : > { %v2664_v23 = vsel %vm1306_vm5, %v2656_v19, %v2663_v20  ;;  %v2652_v27 = vperm.slane %v2646_v22, %v7632_v24  ;;  %v2659_v28 = vrot.slane %v2640_v21, 4  ;;  %v2661_v29 = vrot.slane %v2656_v19, 4 }
 0x98f   : > { %v2804_v30 = vpack.c.bf16 %v2664_v23, %v2664_v23 }
 0x990   : > { %v2660_v32 = vsel %vm1306_vm5, %v2652_v27, %v2659_v28  ;;  %v2662_v33 = vsel %vm1306_vm5, %v2661_v29, %v2644_v7  ;;  %v2657_v35 = vrot.slane %v2652_v27, 4 }
 0x991   : > { %v2866_v17 = vsel %vm1812_vm9, %v2804_v30, 0  ;;  %v2802_v36 = vpack.c.bf16 %v2660_v32, %v2660_v32  ;;  %v2803_v38 = vpack.c.bf16 %v2662_v33, %v2662_v33 }
 0x992   : > { %2875 = vmatpush.bf16.msrb.mxu2 %v2866_v17  ;;  %v2658_v25 = vsel %vm1306_vm5, %v2657_v35, %v2640_v21 }
 0x993   : > { %v2828_v40 = vsel %vm1812_vm9, %v2802_v36, 0  ;;  %v2847_v41 = vsel %vm1812_vm9, %v2803_v38, 0  ;;  %v2801_v43 = vpack.c.bf16 %v2658_v25, %v2658_v25 }
 0x994   : > { %2837 = vmatpush.bf16.msrb.mxu0 %v2828_v40  ;;  %2856 = vmatpush.bf16.msrb.mxu1 %v2847_v41 }
 0x995   : > { %v2809_v44 = vsel %vm1812_vm9, %v2801_v43, 0 }
 0x996   : > { %2818 = vmatpush.bf16.msrb.mxu3 %v2809_v44 }
 0x9da   : > { %v2785_v45 = vpop.xlane.xlu2 %2784 }
 0x9db   : > { %7179 = vrcp.f32 %v2785_v45 }
 0x9e1   : > { %v7180_v46 = vpop.eup %7179 }
 0x9e2   : > { %v2795_v47 = vmul.f32 %v7180_v46, %v8014_v2  ;;  %v2788_v48 = vpop.xlane.xlu1 %2787 }
 0x9e3   : > { %7181 = vrcp.f32 %v2788_v48 }
 0x9e4   : > { %v2799_v49 = vpack.c.bf16 %v2795_v47, %v2795_v47 }
 0x9e6   : > { %v2779_v50 = vpop.xlane.xlu0 %2778  ;;  %6191 = vmatmul.msk.bf16.vlgmr.msrb.gmra.mxu1 %vm1756_vm8, %v2799_v49 }
 0x9e7   : > { %7183 = vrcp.f32 %v2779_v50 }
 0x9e9   : > { %v7182_v0 = vpop.eup %7181 }
 0x9ea   : > { %v2796_v34 = vmul.f32 %v7182_v0, %v8018_v10 }
 0x9ec   : > { %v2800_v37 = vpack.c.bf16 %v2796_v34, %v2796_v34 }
 0x9ed   : > { %v7184_v51 = vpop.eup %7183 }
 0x9ee   : > { %v2793_v52 = vmul.f32 %v7184_v51, %v8022_v16  ;;  %v2782_v11 = vpop.xlane.xlu0 %2781  ;;  %6192 = vmatmul.msk.bf16.vlgmr.msrb.gmra.mxu2 %vm1756_vm8, %v2800_v37 }
 0x9ef   : > { %7185 = vrcp.f32 %v2782_v11 }
 0x9f0   : > { %v2797_v53 = vpack.c.bf16 %v2793_v52, %v2793_v52 }
 0x9f2   : > { %6189 = vmatmul.msk.bf16.vlgmr.msrb.gmra.mxu3 %vm1756_vm8, %v2797_v53 }
 0x9f5   : > { %v7186_v2 = vpop.eup %7185 }
 0x9f6   : > { %v2794_v55 = vmul.f32 %v7186_v2, %v8027_v26 }
 0x9f8   : > { %v2798_v56 = vpack.c.bf16 %v2794_v55, %v2794_v55 }
 0x9fa   : > { %6190 = vmatmul.msk.bf16.vlgmr.msrb.gmra.mxu0 %vm1756_vm8, %v2798_v56 }
 0xa63   : > { %v2858_v14 = vpop.f32.mrf.mxu1 }
 0xa64   : > { %v2881_v59 = vrot.slane %v2858_v14, 4 }
 0xa6b   : > { %v2860_v58 = vpop.f32.mrf.mxu1 }
 0xa71   : > { %v2877_v10 = vpop.f32.mrf.mxu2 }
 0xa72   : > { %v2893_v54 = vrot.slane %v2877_v10, 4 }
 0xa75   : > { %v2820_v60 = vpop.f32.mrf.mxu3 }
 0xa76   : > { %v2882_v16 = vsel %vm1306_vm5, %v2881_v59, %v2820_v60  ;;  %v2883_v18 = vrot.slane %v2820_v60, 4 }
 0xa77   : > { %v2888_v62 = vperm.slane %v2882_v16, %v7622_v9  ;;  %v2839_v63 = vpop.f32.mrf.mxu0 }
 0xa78   : > { %v2884_v1 = vsel %vm1306_vm5, %v2858_v14, %v2883_v18  ;;  %v2894_v57 = vsel %vm1306_vm5, %v2893_v54, %v2839_v63  ;;  %v2895_v26 = vrot.slane %v2839_v63, 4 }
 0xa79   : > { %v2892_v3 = vperm.slane %v2884_v1, %v7622_v9  ;;  %v2907_v4 = vrot.slane %v2888_v62, 4  ;;  %v2900_v31 = vperm.slane %v2894_v57, %v7622_v9  ;;  %v2879_v5 = vpop.f32.mrf.mxu2 }
 0xa7a   : > { %v2896_v6 = vsel %vm1306_vm5, %v2877_v10, %v2895_v26  ;;  %v6900_v26 = vld [vmem:[%s8928_s11 + $0x18] sm:$0xff]  ;;  %s8935_s11 = sld [smem:[#allocation24_spill]] }
 0xa7b   : > { %v2919_v7 = vrot.slane %v2892_v3, 4  ;;  %v2904_v12 = vperm.slane %v2896_v6, %v7622_v9  ;;  %v2905_v13 = vrot.slane %v2900_v31, 4  ;;  %v2908_v15 = vsel %vm1306_vm5, %v2900_v31, %v2907_v4  ;;  %3041 = vmatpush.bf16.msra.mxu3 %v6900_v26  ;;  %v6898_v4 = vld [vmem:[%s8929_s18 + $0x8] sm:$0xff]  ;;  %v6897_v31 = vld [vmem:[%s8929_s18] sm:$0xff] }
 0xa7c   : > { %v2916_v19 = vperm.slane %v2908_v15, %v7632_v24  ;;  %v7128_v26 = vld [vmem:[%s8937_s10] ss:$0 sm:$0xff]  ;;  %s8939_s10 = sld [smem:[#allocation23_spill]] }
 0xa7d   : > { %v2906_v20 = vsel %vm1306_vm5, %v2905_v13, %v2888_v62  ;;  %v2917_v21 = vrot.slane %v2904_v12, 4  ;;  %v2920_v22 = vsel %vm1306_vm5, %v2904_v12, %v2919_v7  ;;  %v2822_v23 = vpop.f32.mrf.mxu3 }
 0xa7e   : > { %v2912_v27 = vperm.slane %v2906_v20, %v7632_v24  ;;  %v2928_v28 = vperm.slane %v2920_v22, %v7632_v24  ;;  %v2931_v29 = vrot.slane %v2916_v19, 4  ;;  %v7127_v20 = vld [vmem:[%s8933_s28] ss:$0 sm:$0xff] }
 0xa7f   : > { %v2918_v30 = vsel %vm1306_vm5, %v2917_v21, %v2892_v3  ;;  %v2841_v32 = vpop.f32.mrf.mxu0  ;;  %v6899_v3 = vld [vmem:[%s8929_s18 + $0x10] sm:$0xff]  ;;  %s8938_s18 = sld [smem:[#allocation21_spill]] }
 0xa80   : > { %v2924_v33 = vperm.slane %v2918_v30, %v7632_v24  ;;  %v2929_v35 = vrot.slane %v2912_v27, 4  ;;  %v2932_v17 = vsel %vm1306_vm5, 0.0, %v2931_v29  ;;  %v2935_v36 = vrot.slane %v2928_v28, 4  ;;  %3042 = vmatpush.bf16.msra.mxu3 %v6899_v3  ;;  %s8936_s0 = smov %s8935_s11 }
 0xa81   : > { %v2937_v38 = vsel %vm1306_vm5, %v2931_v29, %v2912_v27  ;;  %v2942_v25 = vrot.slane %v2932_v17, 4  ;;  %v6908_v17 = vld [vmem:[%s8934_s27 + $0x34] sm:$0xf0] }
 0xa82   : > { %v2930_v40 = vsel %vm1306_vm5, 0.0, %v2929_v35  ;;  %v2933_v41 = vrot.slane %v2924_v33, 4  ;;  %v2936_v43 = vsel %vm1306_vm5, 0.0, %v2935_v36  ;;  %v2941_v44 = vperm.slane %v2937_v38, %v7622_v9 }
 0xa83   : > { %v2953_v45 = vrot.slane %v2936_v43, 4  ;;  %v2943_v46 = vsel %vm1306_vm5, %v2942_v25, %v2930_v40  ;;  %v2948_v47 = vsel %vm1306_vm5, %v2935_v36, %v2924_v33  ;;  %v6907_v36 = vld [vmem:[%s8934_s27 + $0x34] sm:$0xf]  ;;  %v6238_v25 = vld [vmem:[%s8934_s27 + $0x38] sm:$0xf0] }
 0xa84   : > { %v2934_v48 = vsel %vm1306_vm5, 0.0, %v2933_v41  ;;  %v2947_v49 = vperm.slane %v2943_v46, %v7622_v9  ;;  %v2952_v50 = vperm.slane %v2948_v47, %v7622_v9  ;;  %v2961_v0 = vrot.slane %v2941_v44, 4  ;;  %3043 = vmatpush.bf16.msra.mxu3 %v6898_v4  ;;  %v6228_v41 = vld [vmem:[%s8934_s27 + $0x20] sm:$0xf]  ;;  %v6906_v43 = vld [vmem:[%s8934_s27 + $0x24] sm:$0xf0] }
 0xa85   : > { %v2954_v34 = vsel %vm1306_vm5, %v2953_v45, %v2934_v48  ;;  %v6241_v40 = vor.u32 %v6907_v36, %v6238_v25  ;;  %v6229_v45 = vor.u32 %v6906_v43, %v6228_v41  ;;  %v6230_v46 = vld [vmem:[%s8934_s27 + $0x28] sm:$0xf0]  ;;  %v6220_v48 = vld [vmem:[%s8934_s27 + $0x10] sm:$0xf] }
 0xa86   : > { %v2958_v37 = vperm.slane %v2954_v34, %v7622_v9  ;;  %v2962_v51 = vsel %vm1306_vm5, %v2947_v49, %v2961_v0  ;;  %v2973_v52 = vrot.slane %v2952_v50, 4  ;;  %v2959_v11 = vrot.slane %v2947_v49, 4  ;;  %v6904_v49 = vld [vmem:[%s8934_s27 + $0x14] sm:$0xf0]  ;;  %v6222_v34 = vld [vmem:[%s8934_s27 + $0x18] sm:$0xf0] }
 0xa87   : > { %v2970_v53 = vperm.slane %v2962_v51, %v7632_v24  ;;  %3147 = vmatpush.bf16.msra.mxu1 %v6241_v40  ;;  %v6221_v0 = vor.u32 %v6904_v49, %v6220_v48  ;;  %v6212_v51 = vld [vmem:[%s8934_s27] sm:$0xf] }
 0xa88   : > { %v2974_v2 = vsel %vm1306_vm5, %v2958_v37, %v2973_v52  ;;  %v2960_v55 = vsel %vm1306_vm5, %v2959_v11, %v2941_v44  ;;  %v2971_v56 = vrot.slane %v2958_v37, 4  ;;  %3044 = vmatpush.bf16.msra.mxu3 %v6897_v31  ;;  %v6905_v44 = vld [vmem:[%s8934_s27 + $0x24] sm:$0xf]  ;;  %v6902_v52 = vld [vmem:[%s8934_s27 + $0x4] sm:$0xf0] }
 0xa89   : > { %v2982_v14 = vperm.slane %v2974_v2, %v7632_v24  ;;  %v2989_v58 = vrot.slane %v2970_v53, 4  ;;  %v2966_v10 = vperm.slane %v2960_v55, %v7632_v24  ;;  %v6233_v47 = vor.u32 %v6905_v44, %v6230_v46  ;;  %v6901_v11 = vld [vmem:[%s8934_s27 + $0x4] sm:$0xf]  ;;  %v6214_v2 = vld [vmem:[%s8934_s27 + $0x8] sm:$0xf0] }
 0xa8a   : > { %v2972_v59 = vsel %vm1306_vm5, %v2971_v56, %v2952_v50  ;;  %v6903_v50 = vld [vmem:[%s8934_s27 + $0x14] sm:$0xf]  ;;  %v6217_v55 = vor.u32 %v6901_v11, %v6214_v2  ;;  %v6916_v56 = vld [vmem:[%s8935_s11 + $0x38] sm:$0xff]  ;;  %v7129_v31 = vld [vmem:[%s8938_s18] ss:$0 sm:$0xff]  ;;  %s8940_s11 = sld [smem:[#allocation26_spill]] }
 0xa8b   : > { %v2990_v60 = vsel %vm1306_vm5, %v2982_v14, %v2989_v58  ;;  %v2987_v54 = vrot.slane %v2982_v14, 4  ;;  %v2978_v16 = vperm.slane %v2972_v59, %v7632_v24  ;;  %v2985_v18 = vrot.slane %v2966_v10, 4  ;;  %3148 = vmatpush.bf16.msra.mxu1 %v6233_v47  ;;  %v6924_v14 = vld [vmem:[%s8936_s0 + $0x78] sm:$0xff]  ;;  %3275 = vmatpush.bf16.msra.mxu2 %v6916_v56  ;;  %v6915_v59 = vld [vmem:[%s8936_s0 + $0x30] sm:$0xff] }
 0xa8c   : > { %3000 = vrot.lane.b32.xlu0 %v2990_v60, %s8930_s1  ;;  %v6225_v37 = vor.u32 %v6903_v50, %v6222_v34  ;;  %3288 = vmatpush.bf16.msrb.mxu3 %v6924_v14  ;;  %v6923_v60 = vld [vmem:[%s8936_s0 + $0x70] sm:$0xff] }
 0xa8d   : > { %v2988_v62 = vsel %vm1306_vm5, %v2987_v54, %v2970_v53  ;;  %v2983_v63 = vrot.slane %v2978_v16, 4  ;;  %v2986_v1 = vsel %vm1306_vm5, %v2978_v16, %v2985_v18  ;;  %v6213_v53 = vor.u32 %v6902_v52, %v6212_v51 }
 0xa8e   : > { %2996 = vrot.lane.b32.xlu2 %v2988_v62, %s8931_s7  ;;  %2992 = vrot.lane.b32.xlu1 %v2986_v1, %s8932_s15 }
 0xa8f   : > { %v2984_v57 = vsel %vm1306_vm5, %v2983_v63, %v2966_v10  ;;  %3149 = vmatpush.bf16.msra.mxu1 %v6225_v37  ;;  %3276 = vmatpush.bf16.msra.mxu2 %v6915_v59 }
 0xa90   : > { %3289 = vmatpush.bf16.msrb.mxu3 %v6923_v60  ;;  %s8941_s28 = smov %s8940_s11 }
 0xa91   : > { %v6927_v36 = vld [vmem:[%s8941_s28 + $0x10] sm:$0xff]  ;;  %v6926_v60 = vld [vmem:[%s8941_s28 + $0x8] sm:$0xff] }
 0xa93   : > { %3150 = vmatpush.bf16.msra.mxu1 %v6217_v55 }
 0xae8   : > { %v2997_v6 = vpop.permute.xlu2 %2996 }
 0xafe   : > { %v3001_v12 = vpop.permute.xlu0 %3000 }
 0xb00   : > { %v2993_v5 = vpop.permute.xlu1 %2992 }
 0xb01   : > { %v3003_v7 = vsel %vm1666_vm6, %v2984_v57, %v2993_v5 }
 0xb02   : > { %v3004_v13 = vsel %vm2009_vm10, %v3003_v7, %v2997_v6 }
 0xb03   : > { %v3005_v15 = vsel %vm2011_vm11, %v3004_v13, %v3001_v12  ;;  %v6914_v12 = vld [vmem:[%s8936_s0 + $0x28] sm:$0xff] }
 0xb04   : > { %v3006_v19 = vpack.c.bf16 %v3005_v15, %v3005_v15  ;;  %v6922_v13 = vld [vmem:[%s8936_s0 + $0x68] sm:$0xff]  ;;  %3277 = vmatpush.bf16.msra.mxu2 %v6914_v12  ;;  %v6913_v15 = vld [vmem:[%s8936_s0 + $0x20] sm:$0xff]  ;;  %v6932_v12 = vld [vmem:[%s7512_s13 + $0x18] sm:$0xff] }
 0xb05   : > { %3290 = vmatpush.bf16.msrb.mxu3 %v6922_v13  ;;  %v6931_v13 = vld [vmem:[%s7512_s13 + $0x10] sm:$0xff] }
 0xb06   : > { %6209 = vmatmul.msk.bf16.vlgmr.msra.gmra.mxu3 %vm1182_vm0, %v3006_v19  ;;  %v6921_v19 = vld [vmem:[%s8936_s0 + $0x60] sm:$0xff] }
 0xb08   : > { %3278 = vmatpush.bf16.msra.mxu2 %v6913_v15  ;;  %v6930_v15 = vld [vmem:[%s7512_s13 + $0x8] sm:$0xff] }
 0xb09   : > { %3291 = vmatpush.bf16.msrb.mxu3 %v6921_v19  ;;  %v6929_v19 = vld [vmem:[%s7512_s13] sm:$0xff] }
 0xb89   : > { %v3046_v21 = vpop.f32.mrf.mxu3 }
 0xb8a   : > { %v3047_v22 = vadd.f32 %v7127_v20, %v3046_v21  ;;  %v6912_v20 = vld [vmem:[%s8936_s0 + $0x18] sm:$0xff] }
 0xb8b   : > { %v6920_v21 = vld [vmem:[%s8936_s0 + $0x58] sm:$0xff]  ;;  %3279 = vmatpush.bf16.msra.mxu2 %v6912_v20  ;;  %v7131_v20 = vld [vmem:[%s8900_s12] ss:$0 sm:$0xff] }
 0xb8c   : > { %v8135_v23 = vadd.f32 %v3047_v22, %v7900_v61  ;;  %v6236_v61 = vld [vmem:[%s8934_s27 + $0x30] sm:$0xf]  ;;  %3292 = vmatpush.bf16.msrb.mxu3 %v6920_v21 }
 0xb8d   : > { %v6237_v38 = vor.u32 %v6908_v17, %v6236_v61  ;;  %v6911_v22 = vld [vmem:[%s8936_s0 + $0x10] sm:$0xff] }
 0xb8e   : > { %v3051_v27 = vsel %vm1182_vm0, %v8135_v23, 0.0 }
 0xb8f   : > { %3052 = vadd.xlane.f32.xlu0 %v3051_v27  ;;  %3134 = vmatpush.bf16.msra.mxu0 %v6237_v38  ;;  %v6919_v27 = vld [vmem:[%s8936_s0 + $0x50] sm:$0xff] }
 0xb90   : > { %3280 = vmatpush.bf16.msra.mxu2 %v6911_v22  ;;  %3293 = vmatpush.bf16.msrb.mxu3 %v6919_v27 }
 0xb91   : > { %v3048_v28 = vpop.f32.mrf.mxu3 }
 0xb92   : > { %v6910_v28 = vld [vmem:[%s8936_s0 + $0x8] sm:$0xff] }
 0xb93   : > { %3135 = vmatpush.bf16.msra.mxu0 %v6229_v45 }
 0xb94   : > { %3281 = vmatpush.bf16.msra.mxu2 %v6910_v28 }
 0xb97   : > { %3136 = vmatpush.bf16.msra.mxu0 %v6221_v0 }
 0xb9b   : > { %3137 = vmatpush.bf16.msra.mxu0 %v6213_v53 }
 0xc02   : > { %v3053_v29 = vpop.xlane.xlu0 %3052 }
 0xc03   : > { %v3054_v30 = vmul.f32 %v3053_v29, %v7584_v8  ;;  %v6918_v29 = vld [vmem:[%s8936_s0 + $0x48] sm:$0xff] }
 0xc04   : > { %3294 = vmatpush.bf16.msrb.mxu3 %v6918_v29 }
 0xc05   : > { %v3055_v32 = vsub.f32 %v8135_v23, %v3054_v30  ;;  %v6909_v30 = vld [vmem:[%s8936_s0] sm:$0xff] }
 0xc06   : > { %3282 = vmatpush.bf16.msra.mxu2 %v6909_v30 }
 0xc07   : > { %v3056_v33 = vmul.f32 %v3055_v32, %v3055_v32 }
 0xc09   : > { %v3057_v35 = vsel %vm1182_vm0, %v3056_v33, 0.0  ;;  %v1122_v33 = vld [vmem:[%s8939_s10] sm:$0x3]  ;;  %s8942_s10 = sld [smem:[#allocation25_spill]] }
 0xc0a   : > { %3058 = vadd.xlane.f32.xlu1 %v3057_v35  ;;  %v6928_v35 = vld [vmem:[%s8940_s11 + $0x18] sm:$0xff]  ;;  %v3083_v61 = vperm.slane %v1122_v33, 0  ;;  %v3084_v17 = vperm.slane %v1122_v33, 1  ;;  %s8944_s11 = smov 64  }
 0xc0b   : > { %3337 = vmatpush.bf16.msrb.mxu0 %v6928_v35 }
 0xc0f   : > { %3338 = vmatpush.bf16.msrb.mxu0 %v6927_v36  ;;  %s8943_s18 = smov %s8942_s10 }
 0xc13   : > { %3339 = vmatpush.bf16.msrb.mxu0 %v6926_v60 }
 0xc7d   : > { %v3059_v58 = vpop.xlane.xlu1 %3058 }
 0xc7e   : > { %v3060_v10 = vmul.f32 %v3059_v58, %v7584_v8 }
 0xc80   : > { %v3061_v54 = vadd.f32 1e-05, %v3060_v10 }
 0xc82   : > { %7187 = vrsqrt.f32 %v3061_v54  ;;  %vm3068_vm13 = vweird.f32 %v3061_v54 }
 0xc88   : > { %v7188_v16 = vpop.eup %7187 }
 0xc89   : > { %v3063_v18 = vmul.f32 %v7188_v16, %v3061_v54  ;;  %vm3069_vm12 = vweird.f32 %v7188_v16  ;;  %v6925_v54 = vld [vmem:[%s8941_s28] sm:$0xff] }
 0xc8a   : > { %vm3070_vm14 = vmor %vm3068_vm13, %vm3069_vm12  ;;  %3340 = vmatpush.bf16.msrb.mxu0 %v6925_v54  ;;  %v6521_v54 = vld [vmem:[%s8904_s3 + $0x58] sm:$0xf0] }
 0xc8b   : > { %v3064_v62 = vmul.f32 %v7188_v16, %v3063_v18  ;;  %v6935_v18 = vld [vmem:[%s7512_s13 + $0x30] sm:$0xff] }
 0xc8d   : > { %v3065_v63 = vmul.f32 0.5, %v3064_v62  ;;  %v7130_v62 = vld [vmem:[%s8942_s10] ss:$0 sm:$0xff]  ;;  %s8951_s10 = sld [smem:[#allocation7_spill]] }
 0xc8f   : > { %v3066_v1 = vsub.f32 1.5, %v3065_v63 }
 0xc91   : > { %v3067_v57 = vmul.f32 %v7188_v16, %v3066_v1 }
 0xc93   : > { %v3071_v3 = vsel %vm3070_vm14, %v7188_v16, %v3067_v57  ;;  %v6936_v16 = vld [vmem:[%s7512_s13 + $0x38] sm:$0xff] }
 0xc94   : > { %v3072_v4 = vmul.f32 %v3071_v3, %v3055_v32  ;;  %v6917_v32 = vld [vmem:[%s8936_s0 + $0x40] sm:$0xff]  ;;  %3407 = vmatpush.bf16.msrb.mxu1 %v6936_v16 }
 0xc95   : > { %3295 = vmatpush.bf16.msrb.mxu3 %v6917_v32 }
 0xc96   : > { %v3076_v5 = vmul.f32 %v7128_v26, %v3072_v4 }
 0xc98   : > { %v3080_v6 = vadd.f32 %v7129_v31, %v3076_v5  ;;  %3408 = vmatpush.bf16.msrb.mxu1 %v6935_v18  ;;  %v6511_v18 = vld [vmem:[%s8904_s3 + $0x40] sm:$0xf] }
 0xc9a   : > { %v3081_v7 = vpack.c.bf16 %v3080_v6, %v3080_v6  ;;  %v6934_v6 = vld [vmem:[%s7512_s13 + $0x28] sm:$0xff] }
 0xc9c   : > { %6242 = vmatmul.msk.bf16.vlgmr.msra.gmra.mxu0 %vm1182_vm0, %v3081_v7  ;;  %6243 = vmatmul.msk.bf16.vlgmr.msra.gmra.mxu1 %vm1182_vm0, %v3081_v7  ;;  %v6933_v7 = vld [vmem:[%s7512_s13 + $0x20] sm:$0xff] }
 0xc9d   : > { %3409 = vmatpush.bf16.msrb.mxu1 %v6934_v6 }
 0xca1   : > { %3410 = vmatpush.bf16.msrb.mxu1 %v6933_v7 }
 0xca5   : > { %3411 = vmatpush.bf16.msrb.mxu1 %v6932_v12 }
 0xca9   : > { %3412 = vmatpush.bf16.msrb.mxu1 %v6931_v13 }
 0xcad   : > { %3413 = vmatpush.bf16.msrb.mxu1 %v6930_v15 }
 0xcb1   : > { %3414 = vmatpush.bf16.msrb.mxu1 %v6929_v19  ;;  %v7133_v19 = vld [vmem:[%s7382_s25 + $0x1] ss:$0 sm:$0xff] }
 0xd19   : > { %v3139_v38 = vpop.f32.mrf.mxu0  ;;  %v3152_v25 = vpop.f32.mrf.mxu1 }
 0xd1a   : > { %v3140_v40 = vadd.f32 %v3139_v38, %v3083_v61  ;;  %v3153_v41 = vadd.f32 %v3152_v25, %v3084_v17  ;;  %v7132_v38 = vld [vmem:[%s7517_s21] ss:$0 sm:$0xff] }
 0xd1c   : > { %v3158_v43 = vmul.f32 0.044715, %v3140_v40  ;;  %v3159_v44 = vmul.f32 0.044715, %v3153_v41  ;;  %v3156_v53 = vmul.f32 0.5, %v3140_v40  ;;  %v3157_v55 = vmul.f32 0.5, %v3153_v41 }
 0xd1e   : > { %v3160_v45 = vmul.f32 %v3158_v43, %v3140_v40  ;;  %v3161_v46 = vmul.f32 %v3159_v44, %v3153_v41 }
 0xd20   : > { %v3162_v47 = vmul.f32 %v3160_v45, %v3140_v40  ;;  %v3163_v48 = vmul.f32 %v3161_v46, %v3153_v41 }
 0xd21   : > { %v3141_v49 = vpop.f32.mrf.mxu0  ;;  %v3154_v50 = vpop.f32.mrf.mxu1 }
 0xd22   : > { %v3164_v0 = vadd.f32 %v3162_v47, %v3140_v40  ;;  %v3165_v34 = vadd.f32 %v3163_v48, %v3153_v41  ;;  %v6535_v50 = vld [vmem:[%s8904_s3 + $0x70] sm:$0xf] }
 0xd24   : > { %v3166_v37 = vmul.f32 0.7978846, %v3164_v0  ;;  %v3167_v51 = vmul.f32 0.7978846, %v3165_v34  ;;  %v6944_v0 = vld [vmem:[%s8904_s3 + $0x74] sm:$0xf0] }
 0xd25   : > { %v6943_v34 = vld [vmem:[%s8904_s3 + $0x74] sm:$0xf] }
 0xd26   : > { %7189 = vtanh.f32 %v3166_v37  ;;  %v6536_v37 = vor.u32 %v6944_v0, %v6535_v50 }
 0xd27   : > { %7191 = vtanh.f32 %v3167_v51  ;;  %v6537_v51 = vld [vmem:[%s8904_s3 + $0x78] sm:$0xf0] }
 0xd28   : > { %3684 = vmatpush.bf16.msra.mxu0 %v6536_v37 }
 0xd2c   : > { %v7190_v52 = vpop.eup %7189 }
 0xd2d   : > { %v7192_v11 = vpop.eup %7191  ;;  %v3170_v2 = vadd.f32 1.0, %v7190_v52  ;;  %v6540_v52 = vor.u32 %v6943_v34, %v6537_v51 }
 0xd2e   : > { %v3171_v56 = vadd.f32 1.0, %v7192_v11  ;;  %v6527_v11 = vld [vmem:[%s8904_s3 + $0x60] sm:$0xf] }
 0xd2f   : > { %v3172_v14 = vmul.f32 %v3170_v2, %v3156_v53  ;;  %3697 = vmatpush.bf16.msrb.mxu2 %v6540_v52  ;;  %v6942_v53 = vld [vmem:[%s8904_s3 + $0x64] sm:$0xf0]  ;;  %v6941_v2 = vld [vmem:[%s8904_s3 + $0x64] sm:$0xf] }
 0xd30   : > { %v3173_v58 = vmul.f32 %v3171_v56, %v3157_v55  ;;  %v6528_v55 = vor.u32 %v6942_v53, %v6527_v11  ;;  %v6529_v56 = vld [vmem:[%s8904_s3 + $0x68] sm:$0xf0] }
 0xd31   : > { %v3174_v10 = vpack.c.bf16 %v3172_v14, %v3172_v14  ;;  %v6532_v14 = vor.u32 %v6941_v2, %v6529_v56 }
 0xd32   : > { %v3175_v59 = vpack.c.bf16 %v3173_v58, %v3173_v58  ;;  %3685 = vmatpush.bf16.msra.mxu0 %v6528_v55  ;;  %v6519_v58 = vld [vmem:[%s8904_s3 + $0x50] sm:$0xf] }
 0xd33   : > { %3283 = vmatmul.bf16.vlgmr.msra.gmra.mxu2 %v3174_v10  ;;  %v6940_v10 = vld [vmem:[%s8904_s3 + $0x54] sm:$0xf0] }
 0xd34   : > { %3296 = vmatmul.bf16.vlgmr.msrb.gmra.mxu3 %v3175_v59  ;;  %3698 = vmatpush.bf16.msrb.mxu2 %v6532_v14  ;;  %v6939_v59 = vld [vmem:[%s8904_s3 + $0x54] sm:$0xf]  ;;  %v6520_v60 = vor.u32 %v6940_v10, %v6519_v58 }
 0xd35   : > { %v6524_v16 = vor.u32 %v6939_v59, %v6521_v54 }
 0xd36   : > { %3686 = vmatpush.bf16.msra.mxu0 %v6520_v60 }
 0xd38   : > { %3699 = vmatpush.bf16.msrb.mxu2 %v6524_v16 }
 0xdb6   : > { %v3284_v63 = vpop.f32.mrf.mxu2 }
 0xdb7   : > { %v3285_v1 = vadd.f32 %v7130_v62, %v3284_v63  ;;  %v3297_v57 = vpop.f32.mrf.mxu3  ;;  %v6938_v62 = vld [vmem:[%s8904_s3 + $0x44] sm:$0xf0]  ;;  %v6937_v63 = vld [vmem:[%s8904_s3 + $0x44] sm:$0xf] }
 0xdb9   : > { %v3298_v26 = vadd.f32 %v3297_v57, %v3285_v1  ;;  %v6512_v1 = vor.u32 %v6938_v62, %v6511_v18  ;;  %v6513_v57 = vld [vmem:[%s8904_s3 + $0x48] sm:$0xf0] }
 0xdbb   : > { %v3301_v3 = vadd.f32 %v3298_v26, %v8135_v23  ;;  %v6516_v26 = vor.u32 %v6937_v63, %v6513_v57  ;;  %3687 = vmatpush.bf16.msra.mxu0 %v6512_v1 }
 0xdbd   : > { %v3302_v4 = vpack.c.bf16 %v3301_v3, %v3301_v3  ;;  %3700 = vmatpush.bf16.msrb.mxu2 %v6516_v26 }
 0xdbe   : > { %v3286_v31 = vpop.f32.mrf.mxu2 }
 0xdbf   : > { %v3299_v5 = vpop.f32.mrf.mxu3  ;;  %6324 = vmatmul.msk.bf16.vlgmr.msrb.gmra.mxu0 %vm1182_vm0, %v3302_v4 }
 0xe3c   : > { %v3342_v23 = vpop.f32.mrf.mxu0 }
 0xe3d   : > { %v3343_v21 = vadd.f32 %v7131_v20, %v3342_v23 }
 0xe3f   : > { %v3347_v22 = vmul.f32 0.044715, %v3343_v21  ;;  %v3346_v35 = vmul.f32 0.5, %v3343_v21 }
 0xe41   : > { %v3348_v27 = vmul.f32 %v3347_v22, %v3343_v21 }
 0xe43   : > { %v3349_v28 = vmul.f32 %v3348_v27, %v3343_v21 }
 0xe44   : > { %v3344_v29 = vpop.f32.mrf.mxu0 }
 0xe45   : > { %v3350_v30 = vadd.f32 %v3349_v28, %v3343_v21  ;;  %v7134_v21 = vld [vmem:[%s7387_s29 + $0x1] ss:$0 sm:$0xff]  ;;  %v8226_v29 = vld [vmem:[%s8901_s8 + $0x2] sm:$0x3] }
 0xe47   : > { %v3351_v32 = vmul.f32 0.7978846, %v3350_v30  ;;  %v3633_v30 = vperm.slane %v8226_v29, 0 }
 0xe49   : > { %7193 = vtanh.f32 %v3351_v32 }
 0xe4f   : > { %v7194_v33 = vpop.eup %7193 }
 0xe50   : > { %v3353_v61 = vadd.f32 1.0, %v7194_v33 }
 0xe52   : > { %v3354_v17 = vmul.f32 %v3353_v61, %v3346_v35 }
 0xe54   : > { %v3355_v36 = vpack.c.bf16 %v3354_v17, %v3354_v17 }
 0xe56   : > { %3415 = vmatmul.bf16.vlgmr.msrb.gmra.mxu1 %v3355_v36 }
 0xed3   : > { %v3416_v25 = vpop.f32.mrf.mxu1 }
 0xed4   : > { %v3417_v40 = vadd.f32 %v7132_v38, %v3416_v25 }
 0xed6   : > { %v8197_v41 = vadd.f32 %v3417_v40, %v3301_v3 }
 0xed8   : > { %v3601_v43 = vsel %vm1182_vm0, %v8197_v41, 0.0 }
 0xed9   : > { %3602 = vadd.xlane.f32.xlu2 %v3601_v43 }
 0xedb   : > { %v3418_v44 = vpop.f32.mrf.mxu1 }
 0xf4c   : > { %v3603_v45 = vpop.xlane.xlu2 %3602 }
 0xf4d   : > { %v3604_v46 = vmul.f32 %v3603_v45, %v7584_v8 }
 0xf4f   : > { %v3605_v47 = vsub.f32 %v8197_v41, %v3604_v46 }
 0xf51   : > { %v3606_v48 = vmul.f32 %v3605_v47, %v3605_v47 }
 0xf53   : > { %v3607_v49 = vsel %vm1182_vm0, %v3606_v48, 0.0 }
 0xf54   : > { %3608 = vadd.xlane.f32.xlu2 %v3607_v49 }
 0xfc7   : > { %v3609_v3 = vpop.xlane.xlu2 %3608 }
 0xfc8   : > { %v3610_v4 = vmul.f32 %v3609_v3, %v7584_v8 }
 0xfca   : > { %v3611_v31 = vadd.f32 1e-05, %v3610_v4 }
 0xfcc   : > { %7195 = vrsqrt.f32 %v3611_v31  ;;  %vm3618_vm1 = vweird.f32 %v3611_v31 }
 0xfd2   : > { %v7196_v5 = vpop.eup %7195 }
 0xfd3   : > { %v3613_v6 = vmul.f32 %v7196_v5, %v3611_v31  ;;  %vm3619_vm15 = vweird.f32 %v7196_v5 }
 0xfd4   : > { %vm3620_vm2 = vmor %vm3618_vm1, %vm3619_vm15 }
 0xfd5   : > { %v3614_v7 = vmul.f32 %v7196_v5, %v3613_v6 }
 0xfd7   : > { %v3615_v12 = vmul.f32 0.5, %v3614_v7 }
 0xfd9   : > { %v3616_v13 = vsub.f32 1.5, %v3615_v12 }
 0xfdb   : > { %v3617_v15 = vmul.f32 %v7196_v5, %v3616_v13 }
 0xfdd   : > { %v3621_v20 = vsel %vm3620_vm2, %v7196_v5, %v3617_v15 }
 0xfde   : > { %v3622_v23 = vmul.f32 %v3621_v20, %v3605_v47 }
 0xfe0   : > { %v3626_v22 = vmul.f32 %v7133_v19, %v3622_v23 }
 0xfe2   : > { %v3630_v27 = vadd.f32 %v7134_v21, %v3626_v22 }
 0xfe4   : > { %v3631_v28 = vpack.c.bf16 %v3630_v27, %v3630_v27 }
 0xfe6   : > { %6541 = vmatmul.msk.bf16.vlgmr.msra.gmra.mxu0 %vm1182_vm0, %v3631_v28  ;;  %6542 = vmatmul.msk.bf16.vlgmr.msrb.gmra.mxu2 %vm1182_vm0, %v3631_v28 }
0x1063   : > { %v3689_v32 = vpop.f32.mrf.mxu0 }
0x1064   : > { %v3690_v33 = vadd.f32 %v3689_v32, %v3633_v30 }
0x1066   : > { %3713 = vrot.lane.b32.xlu2 %v3690_v33, %s8922_s23  ;;  %3710 = vrot.lane.b32.xlu1 %v3690_v33, %s8927_s9  ;;  %v3718_v46 = vrot.slane %v3690_v33, 4 }
0x1067   : > { %3707 = vrot.lane.b32.xlu0 %v3690_v33, %s8923_s22 }
0x1069   : > { %v8232_v35 = vpop.f32.mrf.mxu2 }
0x106b   : > { %v3691_v61 = vpop.f32.mrf.mxu0 }
0x1071   : > { %v3704_v17 = vpop.f32.mrf.mxu2 }
0x10c0   : > { %v3714_v36 = vpop.permute.xlu2 %3713 }
0x10c1   : > { %v3728_v49 = vrot.slane %v3714_v36, 4 }
0x10d8   : > { %v3711_v38 = vpop.permute.xlu1 %3710 }
0x10d9   : > { %v7114_v25 = vpack.i.bf16 %v3714_v36, %v3711_v38  ;;  %v3708_v40 = vpop.permute.xlu0 %3707  ;;  %v3716_v44 = vrot.slane %v3711_v38, 4  ;;  %v3719_v47 = vsel %vm1306_vm5, %v3711_v38, %v3718_v46 }
0x10da   : > { %v7109_v43 = vpack.i.bf16 %v3708_v40, %v3690_v33  ;;  %v3730_v48 = vrot.slane %v3708_v40, 4  ;;  %v3727_v0 = vperm.slane %v3719_v47, %v7622_v9  ;;  %v3729_v34 = vsel %vm1306_vm5, %v3728_v49, %v3708_v40 }
0x10db   : > { %7115 = vrot.lane.b32.xlu1 %v7114_v25, %s8944_s11  ;;  %v3717_v45 = vsel %vm1306_vm5, %v3716_v44, %v3690_v33  ;;  %v3735_v52 = vperm.slane %v3729_v34, %v7622_v9 }
0x10dc   : > { %7110 = vrot.lane.b32.xlu0 %v7109_v43, %s8944_s11  ;;  %v3723_v50 = vperm.slane %v3717_v45, %v7622_v9  ;;  %v3731_v37 = vsel %vm1306_vm5, %v3714_v36, %v3730_v48  ;;  %v3754_v11 = vrot.slane %v3727_v0, 4  ;;  %s8952_s11 = sld [smem:[#allocation8_spill]] }
0x10dd   : > { %v3739_v53 = vperm.slane %v3731_v37, %v7622_v9  ;;  %v3740_v55 = vrot.slane %v3735_v52, 4 }
0x10de   : > { %v3742_v51 = vrot.slane %v3723_v50, 4 }
0x10df   : > { %v3752_v56 = vrot.slane %v3739_v53, 4  ;;  %v3755_v14 = vsel %vm1306_vm5, %v3739_v53, %v3754_v11  ;;  %v3741_v10 = vsel %vm1306_vm5, %v3740_v55, %v3723_v50 }
0x10e0   : > { %v3743_v2 = vsel %vm1306_vm5, %v3735_v52, %v3742_v51  ;;  %v3763_v59 = vperm.slane %v3755_v14, %v7632_v24  ;;  %v3747_v16 = vperm.slane %v3741_v10, %v7632_v24 }
0x10e1   : > { %v3751_v58 = vperm.slane %v3743_v2, %v7632_v24  ;;  %v3753_v60 = vsel %vm1306_vm5, %v3752_v56, %v3727_v0 }
0x10e2   : > { %v3759_v18 = vperm.slane %v3753_v60, %v7632_v24  ;;  %v3770_v62 = vrot.slane %v3763_v59, 4  ;;  %v3764_v5 = vrot.slane %v3747_v16, 4 }
0x10e3   : > { %v3766_v54 = vrot.slane %v3751_v58, 4 }
0x10e4   : > { %v3768_v12 = vrot.slane %v3759_v18, 4  ;;  %v3771_v13 = vsel %vm1306_vm5, 0.0, %v3770_v62  ;;  %v3765_v17 = vsel %vm1306_vm5, 0.0, %v3764_v5  ;;  %v3783_v36 = vsel %vm1306_vm5, %v3770_v62, %v3759_v18 }
0x10e5   : > { %v3767_v3 = vsel %vm1306_vm5, 0.0, %v3766_v54  ;;  %v3772_v20 = vsel %vm1306_vm5, %v3766_v54, %v3747_v16  ;;  %v3788_v43 = vrot.slane %v3771_v13, 4  ;;  %v3787_v56 = vperm.slane %v3783_v36, %v7622_v9 }
0x10e6   : > { %v3777_v23 = vrot.slane %v3767_v3, 4  ;;  %v3776_v40 = vperm.slane %v3772_v20, %v7622_v9  ;;  %v3769_v47 = vsel %vm1306_vm5, 0.0, %v3768_v12 }
0x10e7   : > { %v3789_v11 = vsel %vm1306_vm5, %v3788_v43, %v3769_v47 }
0x10e8   : > { %v3778_v46 = vsel %vm1306_vm5, %v3777_v23, %v3765_v17  ;;  %v3796_v10 = vrot.slane %v3776_v40, 4  ;;  %v3793_v54 = vperm.slane %v3789_v11, %v7622_v9 }
0x10e9   : > { %v3782_v55 = vperm.slane %v3778_v46, %v7622_v9 }
0x10ea   : > { %v3806_v20 = vrot.slane %v3793_v54, 4 }
0x10eb   : > { %v3794_v3 = vrot.slane %v3782_v55, 4 }
0x10ec   : > { %v3807_v43 = vsel %vm1306_vm5, %v3806_v20, %v3787_v56 }
0x10ed   : > { %v3795_v17 = vsel %vm1306_vm5, %v3794_v3, %v3776_v40 }
0x114d   : > { %v7116_v63 = vpop.permute.xlu1 %7115 }
0x114e   : > { %v7118_v1 = vunpack.i.h.bf16 %v7116_v63  ;;  %v7117_v57 = vunpack.i.l.bf16 %v7116_v63  ;;  %v7111_v26 = vpop.permute.xlu0 %7110 }
0x114f   : > { %v7113_v4 = vunpack.i.h.bf16 %v7111_v26  ;;  %v7112_v31 = vunpack.i.l.bf16 %v7111_v26 }
0x1150   : > { %v3850_v6 = vrot.slane %v7118_v1, 4  ;;  %v3838_v7 = vrot.slane %v7117_v57, 4 }
0x1151   : > { %v3852_v15 = vrot.slane %v7113_v4, 4  ;;  %v3840_v19 = vrot.slane %v7112_v31, 4 }
0x1152   : > { %v3851_v21 = vsel %vm1306_vm5, %v3850_v6, %v7113_v4  ;;  %v3839_v22 = vsel %vm1306_vm5, %v3838_v7, %v7112_v31  ;;  %v3808_v4 = vrot.slane %v3787_v56, 4 }
0x1153   : > { %v3853_v27 = vsel %vm1306_vm5, %v7118_v1, %v3852_v15  ;;  %v3857_v28 = vperm.slane %v3851_v21, %v7622_v9  ;;  %v3841_v30 = vsel %vm1306_vm5, %v7117_v57, %v3840_v19  ;;  %v3845_v32 = vperm.slane %v3839_v22, %v7622_v9 }
0x1154   : > { %v3861_v33 = vperm.slane %v3853_v27, %v7622_v9  ;;  %v3849_v61 = vperm.slane %v3841_v30, %v7622_v9  ;;  %v3797_v19 = vsel %vm1306_vm5, %v3782_v55, %v3796_v10  ;;  %v3809_v30 = vsel %vm1306_vm5, %v3793_v54, %v3808_v4 }
0x1155   : > { %v3862_v38 = vrot.slane %v3857_v28, 4  ;;  %v3864_v25 = vrot.slane %v3845_v32, 4  ;;  %v3817_v46 = vperm.slane %v3809_v30, %v7632_v24 }
0x1156   : > { %v3874_v44 = vrot.slane %v3861_v33, 4  ;;  %v3876_v45 = vrot.slane %v3849_v61, 4 }
0x1157   : > { %v3863_v48 = vsel %vm1306_vm5, %v3862_v38, %v3845_v32  ;;  %v3865_v49 = vsel %vm1306_vm5, %v3857_v28, %v3864_v25  ;;  %v3822_v55 = vrot.slane %v3817_v46, 4 }
0x1158   : > { %v3869_v50 = vperm.slane %v3863_v48, %v7632_v24  ;;  %v3873_v0 = vperm.slane %v3865_v49, %v7632_v24  ;;  %v3875_v34 = vsel %vm1306_vm5, %v3874_v44, %v3849_v61  ;;  %v3877_v37 = vsel %vm1306_vm5, %v3861_v33, %v3876_v45 }
0x1159   : > { %v3881_v51 = vperm.slane %v3875_v34, %v7632_v24  ;;  %v3885_v52 = vperm.slane %v3877_v37, %v7632_v24  ;;  %v3805_v61 = vperm.slane %v3797_v19, %v7632_v24  ;;  %v3801_v49 = vperm.slane %v3795_v17, %v7632_v24 }
0x115a   : > { %v3886_v53 = vrot.slane %v3869_v50, 4  ;;  %v3888_v2 = vrot.slane %v3873_v0, 4  ;;  %v3813_v34 = vperm.slane %v3807_v43, %v7632_v24  ;;  %v3634_v17 = vperm.slane %v8226_v29, 1 }
0x115b   : > { %v3890_v14 = vrot.slane %v3881_v51, 4  ;;  %v3892_v58 = vrot.slane %v3885_v52, 4  ;;  %v3824_v52 = vrot.slane %v3805_v61, 4 }
0x115c   : > { %v3889_v59 = vsel %vm1306_vm5, 0.0, %v3888_v2  ;;  %v3894_v60 = vsel %vm1306_vm5, %v3888_v2, %v3869_v50  ;;  %v3887_v63 = vsel %vm1306_vm5, 0.0, %v3886_v53 }
0x115d   : > { %v3893_v16 = vsel %vm1306_vm5, 0.0, %v3892_v58  ;;  %v3899_v18 = vrot.slane %v3889_v59, 4  ;;  %v3905_v62 = vsel %vm1306_vm5, %v3892_v58, %v3881_v51  ;;  %v3898_v57 = vperm.slane %v3894_v60, %v7622_v9 }
0x115e   : > { %v3910_v1 = vrot.slane %v3893_v16, 4  ;;  %v3909_v26 = vperm.slane %v3905_v62, %v7622_v9  ;;  %v3891_v31 = vsel %vm1306_vm5, 0.0, %v3890_v14  ;;  %v3820_v58 = vrot.slane %v3801_v49, 4 }
0x115f   : > { %v3900_v5 = vsel %vm1306_vm5, %v3899_v18, %v3887_v63  ;;  %v3918_v12 = vrot.slane %v3898_v57, 4  ;;  %v3818_v59 = vrot.slane %v3813_v34, 4  ;;  %v3825_v54 = vsel %vm1306_vm5, %v3817_v46, %v3824_v52 }
0x1160   : > { %v3904_v6 = vperm.slane %v3900_v5, %v7622_v9  ;;  %v3911_v7 = vsel %vm1306_vm5, %v3910_v1, %v3891_v31  ;;  %v3930_v13 = vrot.slane %v3909_v26, 4  ;;  %v3823_v16 = vsel %vm1306_vm5, %v3822_v55, %v3805_v61 }
0x1161   : > { %v3915_v15 = vperm.slane %v3911_v7, %v7622_v9  ;;  %v3821_v18 = vsel %vm1306_vm5, %v3813_v34, %v3820_v58  ;;  %v4071_v62 = vpack.c.bf16 %v3825_v54, %v3825_v54  ;;  %v3819_v63 = vsel %vm1306_vm5, %v3818_v59, %v3801_v49 }
0x1162   : > { %v3919_v23 = vsel %vm1306_vm5, %v3904_v6, %v3918_v12  ;;  %v3916_v21 = vrot.slane %v3904_v6, 4  ;;  %v4070_v1 = vpack.c.bf16 %v3823_v16, %v3823_v16 }
0x1163   : > { %v3927_v22 = vperm.slane %v3919_v23, %v7632_v24  ;;  %v3931_v27 = vsel %vm1306_vm5, %v3915_v15, %v3930_v13  ;;  %v3928_v28 = vrot.slane %v3915_v15, 4 }
0x1164   : > { %v3939_v32 = vperm.slane %v3931_v27, %v7632_v24  ;;  %v3917_v33 = vsel %vm1306_vm5, %v3916_v21, %v3898_v57  ;;  %v4069_v57 = vpack.c.bf16 %v3821_v18, %v3821_v18 }
0x1165   : > { %v3946_v36 = vrot.slane %v3927_v22, 4  ;;  %v3923_v38 = vperm.slane %v3917_v33, %v7632_v24  ;;  %v3929_v25 = vsel %vm1306_vm5, %v3928_v28, %v3909_v26  ;;  %v4068_v26 = vpack.c.bf16 %v3819_v63, %v3819_v63 }
0x1166   : > { %v3944_v44 = vrot.slane %v3939_v32, 4  ;;  %v3935_v45 = vperm.slane %v3929_v25, %v7632_v24 }
0x1167   : > { %v3947_v47 = vsel %vm1306_vm5, %v3939_v32, %v3946_v36  ;;  %v3942_v48 = vrot.slane %v3923_v38, 4  ;;  %v3703_v36 = vadd.f32 %v8232_v35, %v3634_v17 }
0x1168   : > { %v3945_v50 = vsel %vm1306_vm5, %v3944_v44, %v3927_v22  ;;  %v4075_v40 = vpack.c.bf16 %v3947_v47, %v3947_v47  ;;  %v3940_v0 = vrot.slane %v3935_v45, 4 }
0x1169   : > { %v4074_v37 = vpack.c.bf16 %v3945_v50, %v3945_v50  ;;  %v3943_v51 = vsel %vm1306_vm5, %v3935_v45, %v3942_v48  ;;  %v3960_v52 = vrot.slane %v3703_v36, 4 }
0x116a   : > { %v4137_v11 = vsel %vm1666_vm6, %v4075_v40, 0  ;;  %v3941_v53 = vsel %vm1306_vm5, %v3940_v0, %v3923_v38  ;;  %v4073_v2 = vpack.c.bf16 %v3943_v51, %v3943_v51 }
0x116b   : > { %v4118_v56 = vsel %vm1666_vm6, %v4074_v37, 0  ;;  %4146 = vmatpush.bf16.xpose.msra.mxu2 %v4137_v11  ;;  %v4072_v14 = vpack.c.bf16 %v3941_v53, %v3941_v53 }
0x116c   : > { %4127 = vmatpush.bf16.xpose.msra.mxu1 %v4118_v56  ;;  %v4099_v10 = vsel %vm1666_vm6, %v4073_v2, 0 }
0x116d   : > { %v4080_v60 = vsel %vm1666_vm6, %v4072_v14, 0  ;;  %4108 = vmatpush.bf16.xpose.msrb.mxu0 %v4099_v10 }
0x116e   : > { %4089 = vmatpush.bf16.xpose.msra.mxu3 %v4080_v60 }
0x1172   : > { %6546 = vmatmul.msk.bf16.vlgmr.msra.gmra.mxu2 %vm1666_vm6, %v4071_v62 }
0x1173   : > { %6545 = vmatmul.msk.bf16.vlgmr.msra.gmra.mxu1 %vm1666_vm6, %v4070_v1 }
0x1174   : > { %6544 = vmatmul.msk.bf16.vlgmr.msrb.gmra.mxu0 %vm1666_vm6, %v4069_v57 }
0x1175   : > { %6543 = vmatmul.msk.bf16.vlgmr.msra.gmra.mxu3 %vm1666_vm6, %v4068_v26 }
0x11f0   : > { %v4129_v3 = vpop.f32.mrf.mxu1 }
0x11f1   : > { %v4154_v4 = vmul.f32 0.25, %v4129_v3  ;;  %v4110_v31 = vpop.f32.mrf.mxu0 }
0x11f2   : > { %v4153_v5 = vmul.f32 0.25, %v4110_v31 }
0x11f3   : > { %v4158_v6 = vsel %vm7724_vm7, %v4154_v4, -1e+30 }
0x11f4   : > { %v4166_v7 = vsel %vm1756_vm8, %v4158_v6, -inf  ;;  %v4157_v12 = vsel %vm7724_vm7, %v4153_v5, -1e+30 }
0x11f5   : > { %4167 = vmax.xlane.f32.xlu1 %v4166_v7  ;;  %v4148_v13 = vpop.f32.mrf.mxu2  ;;  %v4163_v15 = vsel %vm1756_vm8, %v4157_v12, -inf }
0x11f6   : > { %v4155_v19 = vmul.f32 0.25, %v4148_v13  ;;  %4164 = vmax.xlane.f32.xlu0 %v4163_v15 }
0x11f8   : > { %v4091_v20 = vpop.f32.mrf.mxu3  ;;  %v4131_v23 = vpop.f32.mrf.mxu1  ;;  %v4159_v21 = vsel %vm7724_vm7, %v4155_v19, -1e+30 }
0x11f9   : > { %v4152_v22 = vmul.f32 0.25, %v4091_v20  ;;  %v4112_v27 = vpop.f32.mrf.mxu0  ;;  %v4169_v28 = vsel %vm1756_vm8, %v4159_v21, -inf }
0x11fa   : > { %4170 = vmax.xlane.f32.xlu2 %v4169_v28 }
0x11fb   : > { %v4156_v30 = vsel %vm7724_vm7, %v4152_v22, -1e+30 }
0x11fc   : > { %v4160_v33 = vsel %vm1756_vm8, %v4156_v30, -inf }
0x11fd   : > { %v4150_v32 = vpop.f32.mrf.mxu2 }
0x11fe   : > { %4161 = vmax.xlane.f32.xlu0 %v4160_v33 }
0x1200   : > { %v4093_v61 = vpop.f32.mrf.mxu3 }
0x120e   : > { %3952 = vrot.lane.b32.xlu1 %v3703_v36, %s8927_s9 }
0x1212   : > { %3949 = vrot.lane.b32.xlu2 %v3703_v36, %s8923_s22  ;;  %3955 = vrot.lane.b32.xlu0 %v3703_v36, %s8922_s23 }
0x1268   : > { %v4168_v38 = vpop.xlane.xlu1 %4167 }
0x1269   : > { %v4174_v25 = vsub.f32 %v4158_v6, %v4168_v38  ;;  %v4165_v43 = vpop.xlane.xlu0 %4164 }
0x126a   : > { %v4173_v35 = vsub.f32 %v4157_v12, %v4165_v43 }
0x126b   : > { %v4180_v39 = vmul.f32 1.442695, %v4174_v25 }
0x126c   : > { %v4178_v0 = vmul.f32 1.442695, %v4173_v35 }
0x126d   : > { %7197 = vpow2.f32 %v4180_v39  ;;  %v4171_v44 = vpop.xlane.xlu2 %4170 }
0x126e   : > { %v4175_v45 = vsub.f32 %v4159_v21, %v4171_v44 }
0x1270   : > { %v4182_v46 = vmul.f32 1.442695, %v4175_v45 }
0x1271   : > { %v4162_v47 = vpop.xlane.xlu0 %4161 }
0x1272   : > { %7199 = vpow2.f32 %v4182_v46  ;;  %v4172_v48 = vsub.f32 %v4156_v30, %v4162_v47 }
0x1273   : > { %v8341_v29 = vpop.eup %7197 }
0x1274   : > { %v4176_v49 = vmul.f32 1.442695, %v4172_v48  ;;  %v4190_v50 = vsel %vm1756_vm8, %v8341_v29, 0.0 }
0x1275   : > { %4191 = vadd.xlane.f32.xlu1 %v4190_v50  ;;  %v3950_v11 = vpop.permute.xlu2 %3949 }
0x1276   : > { %7201 = vpow2.f32 %v4176_v49  ;;  %v3972_v58 = vrot.slane %v3950_v11, 4 }
0x1277   : > { %7203 = vpow2.f32 %v4178_v0 }
0x1278   : > { %v8345_v40 = vpop.eup %7199 }
0x1279   : > { %v4193_v34 = vsel %vm1756_vm8, %v8345_v40, 0.0 }
0x127a   : > { %4194 = vadd.xlane.f32.xlu0 %v4193_v34 }
0x127c   : > { %v8349_v37 = vpop.eup %7201 }
0x127d   : > { %v4184_v51 = vsel %vm1756_vm8, %v8349_v37, 0.0  ;;  %v8354_v56 = vpop.eup %7203 }
0x127e   : > { %4185 = vadd.xlane.f32.xlu2 %v4184_v51  ;;  %v4187_v18 = vsel %vm1756_vm8, %v8354_v56, 0.0 }
0x1280   : > { %v3953_v53 = vpop.permute.xlu1 %3952 }
0x1281   : > { %v3958_v2 = vrot.slane %v3953_v53, 4  ;;  %v3961_v55 = vsel %vm1306_vm5, %v3953_v53, %v3960_v52 }
0x1282   : > { %v3969_v14 = vperm.slane %v3961_v55, %v7622_v9 }
0x1283   : > { %v3959_v10 = vsel %vm1306_vm5, %v3958_v2, %v3703_v36 }
0x1284   : > { %v3965_v59 = vperm.slane %v3959_v10, %v7622_v9  ;;  %v3956_v60 = vpop.permute.xlu0 %3955  ;;  %v3996_v62 = vrot.slane %v3969_v14, 4 }
0x1285   : > { %v3970_v54 = vrot.slane %v3956_v60, 4  ;;  %v3973_v16 = vsel %vm1306_vm5, %v3956_v60, %v3972_v58 }
0x1286   : > { %v3981_v63 = vperm.slane %v3973_v16, %v7622_v9  ;;  %4188 = vadd.xlane.f32.xlu2 %v4187_v18  ;;  %v3984_v57 = vrot.slane %v3965_v59, 4 }
0x1287   : > { %v3971_v1 = vsel %vm1306_vm5, %v3970_v54, %v3950_v11 }
0x1288   : > { %v3977_v26 = vperm.slane %v3971_v1, %v7622_v9  ;;  %v3994_v3 = vrot.slane %v3981_v63, 4  ;;  %v3997_v4 = vsel %vm1306_vm5, %v3981_v63, %v3996_v62 }
0x1289   : > { %v4005_v31 = vperm.slane %v3997_v4, %v7632_v24 }
0x128a   : > { %v3982_v5 = vrot.slane %v3977_v26, 4  ;;  %v3985_v6 = vsel %vm1306_vm5, %v3977_v26, %v3984_v57  ;;  %v3995_v7 = vsel %vm1306_vm5, %v3994_v3, %v3969_v14 }
0x128b   : > { %v3993_v12 = vperm.slane %v3985_v6, %v7632_v24  ;;  %v4001_v13 = vperm.slane %v3995_v7, %v7632_v24  ;;  %v4012_v15 = vrot.slane %v4005_v31, 4 }
0x128c   : > { %v3983_v19 = vsel %vm1306_vm5, %v3982_v5, %v3965_v59 }
0x128d   : > { %v3989_v20 = vperm.slane %v3983_v19, %v7632_v24  ;;  %v4008_v23 = vrot.slane %v3993_v12, 4  ;;  %v4010_v21 = vrot.slane %v4001_v13, 4  ;;  %v4013_v22 = vsel %vm1306_vm5, 0.0, %v4012_v15 }
0x128e   : > { %v4025_v27 = vsel %vm1306_vm5, %v4012_v15, %v4001_v13  ;;  %v4030_v28 = vrot.slane %v4013_v22, 4 }
0x128f   : > { %v4006_v30 = vrot.slane %v3989_v20, 4  ;;  %v4009_v32 = vsel %vm1306_vm5, 0.0, %v4008_v23  ;;  %v4011_v33 = vsel %vm1306_vm5, 0.0, %v4010_v21  ;;  %v4014_v61 = vsel %vm1306_vm5, %v4008_v23, %v3989_v20 }
0x1290   : > { %v4019_v17 = vrot.slane %v4009_v32, 4  ;;  %v4029_v36 = vperm.slane %v4025_v27, %v7622_v9  ;;  %v4031_v38 = vsel %vm1306_vm5, %v4030_v28, %v4011_v33  ;;  %v4018_v25 = vperm.slane %v4014_v61, %v7622_v9 }
0x1291   : > { %v4007_v43 = vsel %vm1306_vm5, 0.0, %v4006_v30  ;;  %v4035_v39 = vperm.slane %v4031_v38, %v7622_v9 }
0x1292   : > { %v4050_v44 = vrot.slane %v4029_v36, 4  ;;  %v4020_v45 = vsel %vm1306_vm5, %v4019_v17, %v4007_v43  ;;  %v4038_v46 = vrot.slane %v4018_v25, 4 }
0x1293   : > { %v4024_v47 = vperm.slane %v4020_v45, %v7622_v9  ;;  %v4048_v48 = vrot.slane %v4035_v39, 4 }
0x1294   : > { %v4051_v35 = vsel %vm1306_vm5, %v4035_v39, %v4050_v44 }
0x1295   : > { %v4039_v49 = vsel %vm1306_vm5, %v4024_v47, %v4038_v46  ;;  %v4059_v50 = vperm.slane %v4051_v35, %v7632_v24  ;;  %v4036_v0 = vrot.slane %v4024_v47, 4  ;;  %v4049_v34 = vsel %vm1306_vm5, %v4048_v48, %v4029_v36 }
0x1296   : > { %v4047_v51 = vperm.slane %v4039_v49, %v7632_v24  ;;  %v4055_v52 = vperm.slane %v4049_v34, %v7632_v24 }
0x1297   : > { %v4064_v11 = vrot.slane %v4059_v50, 4  ;;  %v4037_v53 = vsel %vm1306_vm5, %v4036_v0, %v4018_v25 }
0x1298   : > { %v4043_v2 = vperm.slane %v4037_v53, %v7632_v24  ;;  %v4060_v55 = vrot.slane %v4055_v52, 4  ;;  %v4066_v14 = vrot.slane %v4047_v51, 4 }
0x1299   : > { %v4065_v58 = vsel %vm1306_vm5, %v4064_v11, %v4047_v51 }
0x129a   : > { %v4210_v10 = vpack.c.bf16 %v4065_v58, %v4065_v58  ;;  %v4061_v59 = vsel %vm1306_vm5, %v4060_v55, %v4043_v2  ;;  %v4067_v60 = vsel %vm1306_vm5, %v4059_v50, %v4066_v14  ;;  %v4062_v54 = vrot.slane %v4043_v2, 4 }
0x129b   : > { %v4208_v16 = vpack.c.bf16 %v4061_v59, %v4061_v59  ;;  %v4211_v18 = vpack.c.bf16 %v4067_v60, %v4067_v60 }
0x129c   : > { %v4254_v62 = vsel %vm1812_vm9, %v4210_v10, 0  ;;  %v4063_v63 = vsel %vm1306_vm5, %v4055_v52, %v4062_v54 }
0x129d   : > { %4263 = vmatpush.bf16.msrb.mxu1 %v4254_v62  ;;  %v4216_v1 = vsel %vm1812_vm9, %v4208_v16, 0  ;;  %v4273_v57 = vsel %vm1812_vm9, %v4211_v18, 0  ;;  %v4209_v26 = vpack.c.bf16 %v4063_v63, %v4063_v63 }
0x129e   : > { %4225 = vmatpush.bf16.msrb.mxu3 %v4216_v1  ;;  %4282 = vmatpush.bf16.msrb.mxu2 %v4273_v57 }
0x129f   : > { %v4235_v3 = vsel %vm1812_vm9, %v4209_v26, 0 }
0x12a0   : > { %4244 = vmatpush.bf16.msra.mxu0 %v4235_v3 }
0x12e8   : > { %v4192_v4 = vpop.xlane.xlu1 %4191 }
0x12e9   : > { %7205 = vrcp.f32 %v4192_v4 }
0x12ed   : > { %v4195_v31 = vpop.xlane.xlu0 %4194 }
0x12ee   : > { %7207 = vrcp.f32 %v4195_v31 }
0x12ef   : > { %v7206_v5 = vpop.eup %7205 }
0x12f0   : > { %v4202_v6 = vmul.f32 %v7206_v5, %v8341_v29 }
0x12f1   : > { %v4186_v7 = vpop.xlane.xlu2 %4185 }
0x12f2   : > { %v4206_v12 = vpack.c.bf16 %v4202_v6, %v4202_v6  ;;  %7209 = vrcp.f32 %v4186_v7 }
0x12f4   : > { %v7208_v13 = vpop.eup %7207  ;;  %6549 = vmatmul.msk.bf16.vlgmr.msrb.gmra.mxu1 %vm1756_vm8, %v4206_v12 }
0x12f5   : > { %v4203_v15 = vmul.f32 %v7208_v13, %v8345_v40 }
0x12f7   : > { %v4207_v19 = vpack.c.bf16 %v4203_v15, %v4203_v15 }
0x12f8   : > { %v7210_v20 = vpop.eup %7209 }
0x12f9   : > { %v4200_v23 = vmul.f32 %v7210_v20, %v8349_v37  ;;  %v4189_v21 = vpop.xlane.xlu2 %4188  ;;  %6550 = vmatmul.msk.bf16.vlgmr.msrb.gmra.mxu2 %vm1756_vm8, %v4207_v19 }
0x12fa   : > { %7211 = vrcp.f32 %v4189_v21 }
0x12fb   : > { %v4204_v22 = vpack.c.bf16 %v4200_v23, %v4200_v23 }
0x12fd   : > { %6547 = vmatmul.msk.bf16.vlgmr.msrb.gmra.mxu3 %vm1756_vm8, %v4204_v22 }
0x1300   : > { %v7212_v29 = vpop.eup %7211 }
0x1301   : > { %v4201_v27 = vmul.f32 %v7212_v29, %v8354_v56 }
0x1303   : > { %v4205_v28 = vpack.c.bf16 %v4201_v27, %v4201_v27 }
0x1305   : > { %6548 = vmatmul.msk.bf16.vlgmr.msra.gmra.mxu0 %vm1756_vm8, %v4205_v28 }
0x1371   : > { %v4265_v30 = vpop.f32.mrf.mxu1 }
0x1372   : > { %v4288_v33 = vrot.slane %v4265_v30, 4 }
0x1379   : > { %v4267_v32 = vpop.f32.mrf.mxu1 }
0x137c   : > { %v4284_v40 = vpop.f32.mrf.mxu2 }
0x137d   : > { %v4300_v17 = vrot.slane %v4284_v40, 4 }
0x1380   : > { %v4227_v61 = vpop.f32.mrf.mxu3 }
0x1381   : > { %v4289_v37 = vsel %vm1306_vm5, %v4288_v33, %v4227_v61  ;;  %v4290_v36 = vrot.slane %v4227_v61, 4 }
0x1382   : > { %v4295_v38 = vperm.slane %v4289_v37, %v7622_v9  ;;  %v4246_v25 = vpop.f32.mrf.mxu0 }
0x1383   : > { %v4291_v43 = vsel %vm1306_vm5, %v4265_v30, %v4290_v36  ;;  %v4301_v39 = vsel %vm1306_vm5, %v4300_v17, %v4246_v25  ;;  %v4302_v56 = vrot.slane %v4246_v25, 4 }
0x1384   : > { %v4299_v44 = vperm.slane %v4291_v43, %v7622_v9  ;;  %v4314_v45 = vrot.slane %v4295_v38, 4  ;;  %v4307_v46 = vperm.slane %v4301_v39, %v7622_v9  ;;  %v4286_v47 = vpop.f32.mrf.mxu2  ;;  %v6948_v39 = vld [vmem:[%s7402_s14 + $0x38] sm:$0xff] }
0x1385   : > { %v4303_v48 = vsel %vm1306_vm5, %v4284_v40, %v4302_v56  ;;  %4448 = vmatpush.bf16.msra.mxu3 %v6948_v39  ;;  %v6947_v56 = vld [vmem:[%s7402_s14 + $0x30] sm:$0xff] }
0x1386   : > { %v4326_v35 = vrot.slane %v4299_v44, 4  ;;  %v4311_v49 = vperm.slane %v4303_v48, %v7622_v9  ;;  %v4312_v50 = vrot.slane %v4307_v46, 4  ;;  %v4315_v0 = vsel %vm1306_vm5, %v4307_v46, %v4314_v45  ;;  %v6945_v45 = vld [vmem:[%s7402_s14 + $0x20] sm:$0xff]  ;;  %v6952_v46 = vld [vmem:[%s7412_s24 + $0x38] sm:$0xff]  ;;  %v6951_v47 = vld [vmem:[%s7412_s24 + $0x30] sm:$0xff] }
0x1387   : > { %v4323_v34 = vperm.slane %v4315_v0, %v7632_v24  ;;  %4493 = vmatpush.bf16.msrb.mxu0 %v6952_v46 }
0x1388   : > { %v4313_v51 = vsel %vm1306_vm5, %v4312_v50, %v4295_v38  ;;  %v4324_v52 = vrot.slane %v4311_v49, 4  ;;  %v4327_v11 = vsel %vm1306_vm5, %v4311_v49, %v4326_v35  ;;  %v4229_v53 = vpop.f32.mrf.mxu3 }
0x1389   : > { %v4319_v2 = vperm.slane %v4313_v51, %v7632_v24  ;;  %v4335_v55 = vperm.slane %v4327_v11, %v7632_v24  ;;  %v4338_v14 = vrot.slane %v4323_v34, 4  ;;  %4449 = vmatpush.bf16.msra.mxu3 %v6947_v56  ;;  %v6949_v11 = vld [vmem:[%s7412_s24 + $0x20] sm:$0xff]  ;;  %v6960_v53 = vld [vmem:[%s8902_s6 + $0x78] sm:$0xff] }
0x138a   : > { %v4325_v58 = vsel %vm1306_vm5, %v4324_v52, %v4299_v44  ;;  %v4248_v10 = vpop.f32.mrf.mxu0  ;;  %v6946_v44 = vld [vmem:[%s7402_s14 + $0x28] sm:$0xff]  ;;  %4563 = vmatpush.bf16.msra.mxu1 %v6960_v53  ;;  %v6972_v56 = vld [vmem:[%s8924_s16 + $0x38] sm:$0xff] }
0x138b   : > { %v4331_v59 = vperm.slane %v4325_v58, %v7632_v24  ;;  %v4336_v60 = vrot.slane %v4319_v2, 4  ;;  %v4339_v54 = vsel %vm1306_vm5, 0.0, %v4338_v14  ;;  %v4342_v16 = vrot.slane %v4335_v55, 4  ;;  %4494 = vmatpush.bf16.msrb.mxu0 %v6951_v47  ;;  %v6950_v52 = vld [vmem:[%s7412_s24 + $0x28] sm:$0xff]  ;;  %v6959_v55 = vld [vmem:[%s8902_s6 + $0x70] sm:$0xff] }
0x138c   : > { %v4344_v18 = vsel %vm1306_vm5, %v4338_v14, %v4319_v2  ;;  %v4349_v62 = vrot.slane %v4339_v54, 4  ;;  %v6968_v2 = vld [vmem:[%s8903_s4 + $0x38] sm:$0xff]  ;;  %v7135_v14 = vld [vmem:[%s7407_s19 + $0x1] ss:$0 sm:$0xff] }
0x138d   : > { %v4337_v63 = vsel %vm1306_vm5, 0.0, %v4336_v60  ;;  %v4340_v1 = vrot.slane %v4331_v59, 4  ;;  %v4343_v57 = vsel %vm1306_vm5, 0.0, %v4342_v16  ;;  %v4348_v26 = vperm.slane %v4344_v18, %v7622_v9  ;;  %4450 = vmatpush.bf16.msra.mxu3 %v6946_v44  ;;  %v6958_v18 = vld [vmem:[%s8902_s6 + $0x68] sm:$0xff]  ;;  %v6971_v44 = vld [vmem:[%s8924_s16 + $0x30] sm:$0xff] }
0x138e   : > { %v4360_v3 = vrot.slane %v4343_v57, 4  ;;  %v4350_v4 = vsel %vm1306_vm5, %v4349_v62, %v4337_v63  ;;  %v4355_v31 = vsel %vm1306_vm5, %v4342_v16, %v4331_v59  ;;  %4564 = vmatpush.bf16.msra.mxu1 %v6959_v55  ;;  %v6967_v16 = vld [vmem:[%s8903_s4 + $0x30] sm:$0xff]  ;;  %v6966_v62 = vld [vmem:[%s8903_s4 + $0x28] sm:$0xff]  ;;  %v6957_v63 = vld [vmem:[%s8902_s6 + $0x60] sm:$0xff] }
0x138f   : > { %v4341_v5 = vsel %vm1306_vm5, 0.0, %v4340_v1  ;;  %v4354_v6 = vperm.slane %v4350_v4, %v7622_v9  ;;  %v4359_v7 = vperm.slane %v4355_v31, %v7622_v9  ;;  %v4368_v12 = vrot.slane %v4348_v26, 4  ;;  %4495 = vmatpush.bf16.msrb.mxu0 %v6950_v52  ;;  %v6965_v1 = vld [vmem:[%s8903_s4 + $0x20] sm:$0xff]  ;;  %v6956_v57 = vld [vmem:[%s8902_s6 + $0x58] sm:$0xff] }
0x1390   : > { %v4361_v13 = vsel %vm1306_vm5, %v4360_v3, %v4341_v5  ;;  %v6953_v3 = vld [vmem:[%s8902_s6 + $0x40] sm:$0xff]  ;;  %v6964_v4 = vld [vmem:[%s7432_s20 + $0x38] sm:$0xff] }
0x1391   : > { %v4365_v15 = vperm.slane %v4361_v13, %v7622_v9  ;;  %v4369_v19 = vsel %vm1306_vm5, %v4354_v6, %v4368_v12  ;;  %v4380_v20 = vrot.slane %v4359_v7, 4  ;;  %v4366_v23 = vrot.slane %v4354_v6, 4  ;;  %4451 = vmatpush.bf16.msra.mxu3 %v6945_v45  ;;  %4612 = vmatpush.bf16.msra.mxu2 %v6964_v4  ;;  %v7136_v31 = vld [vmem:[%s7417_s30 + $0x1] ss:$0 sm:$0xff] }
0x1392   : > { %v4377_v21 = vperm.slane %v4369_v19, %v7632_v24  ;;  %4565 = vmatpush.bf16.msra.mxu1 %v6958_v18 }
0x1393   : > { %v4381_v22 = vsel %vm1306_vm5, %v4365_v15, %v4380_v20  ;;  %v4367_v29 = vsel %vm1306_vm5, %v4366_v23, %v4348_v26  ;;  %v4378_v27 = vrot.slane %v4365_v15, 4  ;;  %4496 = vmatpush.bf16.msrb.mxu0 %v6949_v11  ;;  %v6954_v26 = vld [vmem:[%s8902_s6 + $0x48] sm:$0xff] }
0x1394   : > { %v4389_v28 = vperm.slane %v4381_v22, %v7632_v24  ;;  %v4396_v30 = vrot.slane %v4377_v21, 4  ;;  %v4373_v32 = vperm.slane %v4367_v29, %v7632_v24 }
0x1395   : > { %v4379_v40 = vsel %vm1306_vm5, %v4378_v27, %v4359_v7  ;;  %4652 = vmatpush.bf16.msrb.mxu3 %v6968_v2 }
0x1396   : > { %v4397_v33 = vsel %vm1306_vm5, %v4389_v28, %v4396_v30  ;;  %v4394_v61 = vrot.slane %v4389_v28, 4  ;;  %v4385_v17 = vperm.slane %v4379_v40, %v7632_v24  ;;  %v4392_v37 = vrot.slane %v4373_v32, 4  ;;  %4566 = vmatpush.bf16.msra.mxu1 %v6957_v63  ;;  %v6963_v28 = vld [vmem:[%s7432_s20 + $0x30] sm:$0xff]  ;;  %v7137_v30 = vld [vmem:[%s7447_s17 + $0x1] ss:$0 sm:$0xff] }
0x1397   : > { %4407 = vrot.lane.b32.xlu2 %v4397_v33, %s8930_s1  ;;  %4613 = vmatpush.bf16.msra.mxu2 %v6963_v28  ;;  %v6962_v33 = vld [vmem:[%s7432_s20 + $0x28] sm:$0xff] }
0x1398   : > { %v4395_v36 = vsel %vm1306_vm5, %v4394_v61, %v4377_v21  ;;  %v4390_v38 = vrot.slane %v4385_v17, 4  ;;  %v4393_v25 = vsel %vm1306_vm5, %v4385_v17, %v4392_v37  ;;  %v6961_v17 = vld [vmem:[%s7432_s20 + $0x20] sm:$0xff]  ;;  %4692 = vmatpush.bf16.msra.mxu0 %v6972_v56 }
0x1399   : > { %4403 = vrot.lane.b32.xlu1 %v4395_v36, %s8931_s7  ;;  %4399 = vrot.lane.b32.xlu0 %v4393_v25, %s8932_s15  ;;  %v7138_v37 = vld [vmem:[%s8921_s2 + $0x1] ss:$0 sm:$0xff] }
0x139a   : > { %v4391_v43 = vsel %vm1306_vm5, %v4390_v38, %v4373_v32  ;;  %4653 = vmatpush.bf16.msrb.mxu3 %v6967_v16  ;;  %4567 = vmatpush.bf16.msra.mxu1 %v6956_v57 }
0x139b   : > { %4614 = vmatpush.bf16.msra.mxu2 %v6962_v33 }
0x139c   : > { %4693 = vmatpush.bf16.msra.mxu0 %v6971_v44 }
0x139e   : > { %4654 = vmatpush.bf16.msrb.mxu3 %v6966_v62 }
0x139f   : > { %4615 = vmatpush.bf16.msra.mxu2 %v6961_v17 }
0x13a2   : > { %4655 = vmatpush.bf16.msrb.mxu3 %v6965_v1 }
0x13f1   : > { %v4408_v50 = vpop.permute.xlu2 %4407 }
0x140b   : > { %v4404_v48 = vpop.permute.xlu1 %4403  ;;  %v4400_v35 = vpop.permute.xlu0 %4399 }
0x140c   : > { %v4410_v49 = vsel %vm1666_vm6, %v4391_v43, %v4400_v35 }
0x140d   : > { %v4411_v0 = vsel %vm2009_vm10, %v4410_v49, %v4404_v48 }
0x140e   : > { %v4412_v34 = vsel %vm2011_vm11, %v4411_v0, %v4408_v50 }
0x140f   : > { %v4413_v51 = vpack.c.bf16 %v4412_v34, %v4412_v34 }
0x1411   : > { %6567 = vmatmul.msk.bf16.vlgmr.msra.gmra.mxu3 %vm1182_vm0, %v4413_v51 }
0x1421   : > { %6650 = vmatmul.msk.bf16.vlgmr.msrb.gmra.mxu3 %vm1182_vm0, %v7889_v42 }
0x1494   : > { %v4453_v58 = vpop.f32.mrf.mxu3 }
0x1495   : > { %v4454_v10 = vadd.f32 %v7135_v14, %v4453_v58 }
0x1497   : > { %v4457_v59 = vadd.f32 %v4454_v10, %v8197_v41  ;;  %v6955_v41 = vld [vmem:[%s8902_s6 + $0x50] sm:$0xff] }
0x1498   : > { %4568 = vmatpush.bf16.msra.mxu1 %v6955_v41 }
0x1499   : > { %v4458_v60 = vpack.c.bf16 %v4457_v59, %v4457_v59 }
0x149b   : > { %6584 = vmatmul.msk.bf16.vlgmr.msrb.gmra.mxu0 %vm1182_vm0, %v4458_v60 }
0x149c   : > { %v4455_v54 = vpop.f32.mrf.mxu3  ;;  %4569 = vmatpush.bf16.msra.mxu1 %v6954_v26 }
0x14a0   : > { %4570 = vmatpush.bf16.msra.mxu1 %v6953_v3 }
0x14a4   : > { %v4657_v32 = vpop.f32.mrf.mxu3 }
0x14a5   : > { %v4658_v40 = vadd.f32 %v7137_v30, %v4657_v32 }
0x14a7   : > { %4822 = vrot.lane.b32.xlu0 %v4658_v40, %s8923_s22  ;;  %4825 = vrot.lane.b32.xlu1 %v4658_v40, %s8927_s9  ;;  %v4833_v45 = vrot.slane %v4658_v40, 4 }
0x14ac   : > { %v4659_v61 = vpop.f32.mrf.mxu3 }
0x14af   : > { %4828 = vrot.lane.b32.xlu0 %v4658_v40, %s8922_s23 }
0x1518   : > { %v4498_v5 = vpop.f32.mrf.mxu0 }
0x1519   : > { %v4499_v6 = vadd.f32 %v7136_v31, %v4498_v5  ;;  %v4823_v46 = vpop.permute.xlu0 %4822  ;;  %v4826_v47 = vpop.permute.xlu1 %4825 }
0x151a   : > { %v4831_v48 = vrot.slane %v4826_v47, 4  ;;  %v4834_v35 = vsel %vm1306_vm5, %v4826_v47, %v4833_v45  ;;  %v4845_v0 = vrot.slane %v4823_v46, 4 }
0x151b   : > { %v4503_v7 = vmul.f32 0.044715, %v4499_v6  ;;  %v4502_v21 = vmul.f32 0.5, %v4499_v6  ;;  %v4842_v50 = vperm.slane %v4834_v35, %v7622_v9  ;;  %v6969_v35 = vld [vmem:[%s8924_s16 + $0x20] sm:$0xff] }
0x151c   : > { %v4832_v49 = vsel %vm1306_vm5, %v4831_v48, %v4658_v40 }
0x151d   : > { %v4504_v12 = vmul.f32 %v4503_v7, %v4499_v6  ;;  %v4838_v34 = vperm.slane %v4832_v49, %v7622_v9  ;;  %v4869_v51 = vrot.slane %v4842_v50, 4 }
0x151f   : > { %v4505_v13 = vmul.f32 %v4504_v12, %v4499_v6  ;;  %v4857_v2 = vrot.slane %v4838_v34, 4 }
0x1520   : > { %v4500_v15 = vpop.f32.mrf.mxu0 }
0x1521   : > { %v4506_v19 = vadd.f32 %v4505_v13, %v4499_v6  ;;  %v4829_v52 = vpop.permute.xlu0 %4828 }
0x1522   : > { %v4843_v11 = vrot.slane %v4829_v52, 4  ;;  %v4846_v53 = vsel %vm1306_vm5, %v4829_v52, %v4845_v0 }
0x1523   : > { %v4507_v20 = vmul.f32 0.7978846, %v4506_v19  ;;  %v4854_v55 = vperm.slane %v4846_v53, %v7622_v9 }
0x1524   : > { %v4844_v14 = vsel %vm1306_vm5, %v4843_v11, %v4823_v46 }
0x1525   : > { %7213 = vtanh.f32 %v4507_v20  ;;  %v4850_v58 = vperm.slane %v4844_v14, %v7622_v9  ;;  %v4867_v10 = vrot.slane %v4854_v55, 4 }
0x1527   : > { %v4855_v54 = vrot.slane %v4850_v58, 4  ;;  %v4858_v16 = vsel %vm1306_vm5, %v4850_v58, %v4857_v2  ;;  %v4868_v18 = vsel %vm1306_vm5, %v4867_v10, %v4842_v50  ;;  %v7139_v58 = vld [vmem:[%s8925_s26 + $0x1] ss:$0 sm:$0xff] }
0x1528   : > { %v4866_v62 = vperm.slane %v4858_v16, %v7632_v24  ;;  %v4874_v63 = vperm.slane %v4868_v18, %v7632_v24 }
0x1529   : > { %v4856_v57 = vsel %vm1306_vm5, %v4855_v54, %v4838_v34 }
0x152a   : > { %v4862_v41 = vperm.slane %v4856_v57, %v7632_v24  ;;  %v4881_v26 = vrot.slane %v4866_v62, 4  ;;  %v4883_v3 = vrot.slane %v4874_v63, 4 }
0x152b   : > { %v7214_v23 = vpop.eup %7213 }
0x152c   : > { %v4509_v22 = vadd.f32 1.0, %v7214_v23  ;;  %v4879_v6 = vrot.slane %v4862_v41, 4  ;;  %v4882_v7 = vsel %vm1306_vm5, 0.0, %v4881_v26  ;;  %v4884_v12 = vsel %vm1306_vm5, 0.0, %v4883_v3 }
0x152d   : > { %v4892_v15 = vrot.slane %v4882_v7, 4  ;;  %v4887_v28 = vsel %vm1306_vm5, %v4881_v26, %v4862_v41 }
0x152e   : > { %v4510_v29 = vmul.f32 %v4509_v22, %v4502_v21  ;;  %v4880_v20 = vsel %vm1306_vm5, 0.0, %v4879_v6  ;;  %v4891_v30 = vperm.slane %v4887_v28, %v7622_v9 }
0x152f   : > { %v4893_v21 = vsel %vm1306_vm5, %v4892_v15, %v4880_v20 }
0x1530   : > { %v4511_v27 = vpack.c.bf16 %v4510_v29, %v4510_v29  ;;  %v4897_v29 = vperm.slane %v4893_v21, %v7622_v9  ;;  %v4911_v17 = vrot.slane %v4891_v30, 4 }
0x1532   : > { %4571 = vmatmul.bf16.vlgmr.msra.gmra.mxu1 %v4511_v27  ;;  %v4909_v32 = vrot.slane %v4897_v29, 4  ;;  %v4912_v56 = vsel %vm1306_vm5, %v4897_v29, %v4911_v17 }
0x1533   : > { %v4920_v46 = vperm.slane %v4912_v56, %v7632_v24 }
0x1534   : > { %v4910_v61 = vsel %vm1306_vm5, %v4909_v32, %v4891_v30 }
0x1535   : > { %v4939_v0 = vrot.slane %v4920_v46, 4 }
0x15af   : > { %v4572_v36 = vpop.f32.mrf.mxu1 }
0x15b0   : > { %v4573_v38 = vadd.f32 %v7138_v37, %v4572_v36  ;;  %v6970_v36 = vld [vmem:[%s8924_s16 + $0x28] sm:$0xff] }
0x15b1   : > { %4694 = vmatpush.bf16.msra.mxu0 %v6970_v36 }
0x15b2   : > { %v8491_v25 = vadd.f32 %v4573_v38, %v4457_v59  ;;  %v4870_v59 = vsel %vm1306_vm5, %v4854_v55, %v4869_v51  ;;  %v4916_v38 = vperm.slane %v4910_v61, %v7632_v24 }
0x15b3   : > { %v4878_v60 = vperm.slane %v4870_v59, %v7632_v24 }
0x15b4   : > { %v4577_v43 = vpack.c.bf16 %v8491_v25, %v8491_v25  ;;  %v4935_v45 = vrot.slane %v4916_v38, 4 }
0x15b5   : > { %v4885_v1 = vrot.slane %v4878_v60, 4  ;;  %4695 = vmatpush.bf16.msra.mxu0 %v6969_v35 }
0x15b6   : > { %6633 = vmatmul.msk.bf16.vlgmr.msra.gmra.mxu2 %vm1182_vm0, %v4577_v43 }
0x15b7   : > { %v4574_v39 = vpop.f32.mrf.mxu1  ;;  %v4886_v4 = vsel %vm1306_vm5, 0.0, %v4885_v1  ;;  %v4898_v31 = vsel %vm1306_vm5, %v4885_v1, %v4874_v63 }
0x15b8   : > { %v4903_v5 = vrot.slane %v4886_v4, 4  ;;  %v4902_v13 = vperm.slane %v4898_v31, %v7622_v9  ;;  %6667 = vmatmul.msk.bf16.vlgmr.msra.gmra.mxu0 %vm1182_vm0, %v7889_v42 }
0x15ba   : > { %v4904_v19 = vsel %vm1306_vm5, %v4903_v5, %v4884_v12  ;;  %v4923_v22 = vrot.slane %v4902_v13, 4 }
0x15bb   : > { %v4908_v23 = vperm.slane %v4904_v19, %v7622_v9 }
0x15bd   : > { %v4921_v27 = vrot.slane %v4908_v23, 4  ;;  %v4924_v37 = vsel %vm1306_vm5, %v4908_v23, %v4923_v22 }
0x15be   : > { %v4932_v39 = vperm.slane %v4924_v37, %v7632_v24 }
0x15bf   : > { %v4922_v40 = vsel %vm1306_vm5, %v4921_v27, %v4902_v13 }
0x15c0   : > { %v4928_v33 = vperm.slane %v4922_v40, %v7632_v24  ;;  %v4937_v47 = vrot.slane %v4932_v39, 4  ;;  %v4940_v11 = vsel %vm1306_vm5, %v4932_v39, %v4939_v0 }
0x15c1   : > { %v5068_v55 = vpack.c.bf16 %v4940_v11, %v4940_v11 }
0x15c2   : > { %v4933_v43 = vrot.slane %v4928_v33, 4  ;;  %v4936_v49 = vsel %vm1306_vm5, %v4928_v33, %v4935_v45  ;;  %v4938_v50 = vsel %vm1306_vm5, %v4937_v47, %v4920_v46 }
0x15c3   : > { %v5066_v51 = vpack.c.bf16 %v4936_v49, %v4936_v49  ;;  %v5067_v52 = vpack.c.bf16 %v4938_v50, %v4938_v50  ;;  %v5130_v14 = vsel %vm1666_vm6, %v5068_v55, 0 }
0x15c4   : > { %v4934_v44 = vsel %vm1306_vm5, %v4933_v43, %v4916_v38  ;;  %5139 = vmatpush.bf16.xpose.msrb.mxu1 %v5130_v14 }
0x15c5   : > { %v5065_v48 = vpack.c.bf16 %v4934_v44, %v4934_v44  ;;  %v5092_v53 = vsel %vm1666_vm6, %v5066_v51, 0  ;;  %v5111_v2 = vsel %vm1666_vm6, %v5067_v52, 0 }
0x15c6   : > { %5101 = vmatpush.bf16.xpose.msra.mxu3 %v5092_v53  ;;  %5120 = vmatpush.bf16.xpose.msrb.mxu0 %v5111_v2 }
0x15c7   : > { %v5073_v34 = vsel %vm1666_vm6, %v5065_v48, 0 }
0x15c8   : > { %5082 = vmatpush.bf16.xpose.msrb.mxu2 %v5073_v34 }
0x1635   : > { %v8550_v16 = vpop.f32.mrf.mxu0 }
0x1639   : > { %v4617_v10 = vpop.f32.mrf.mxu2 }
0x163a   : > { %v4618_v59 = vadd.f32 %v7139_v58, %v4617_v10 }
0x163c   : > { %4708 = vrot.lane.b32.xlu0 %v4618_v59, %s8922_s23  ;;  %4705 = vrot.lane.b32.xlu1 %v4618_v59, %s8927_s9  ;;  %v4713_v62 = vrot.slane %v4618_v59, 4 }
0x163d   : > { %4702 = vrot.lane.b32.xlu2 %v4618_v59, %s8923_s22  ;;  %v4699_v15 = vpop.f32.mrf.mxu0 }
0x1641   : > { %v4619_v60 = vpop.f32.mrf.mxu2 }
0x1697   : > { %v4703_v54 = vpop.permute.xlu2 %4702 }
0x1698   : > { %v4725_v18 = vrot.slane %v4703_v54, 4 }
0x16ae   : > { %v4709_v63 = vpop.permute.xlu0 %4708  ;;  %v4706_v1 = vpop.permute.xlu1 %4705 }
0x16af   : > { %v4723_v57 = vrot.slane %v4709_v63, 4  ;;  %v4726_v42 = vsel %vm1306_vm5, %v4709_v63, %v4725_v18  ;;  %v4711_v41 = vrot.slane %v4706_v1, 4  ;;  %v4714_v26 = vsel %vm1306_vm5, %v4706_v1, %v4713_v62 }
0x16b0   : > { %v4734_v3 = vperm.slane %v4726_v42, %v7622_v9  ;;  %v4722_v4 = vperm.slane %v4714_v26, %v7622_v9 }
0x16b1   : > { %v4724_v31 = vsel %vm1306_vm5, %v4723_v57, %v4703_v54  ;;  %v4712_v5 = vsel %vm1306_vm5, %v4711_v41, %v4618_v59 }
0x16b2   : > { %v4730_v6 = vperm.slane %v4724_v31, %v7622_v9  ;;  %v4747_v7 = vrot.slane %v4734_v3, 4  ;;  %v4718_v12 = vperm.slane %v4712_v5, %v7622_v9  ;;  %v4749_v13 = vrot.slane %v4722_v4, 4 }
0x16b4   : > { %v4735_v19 = vrot.slane %v4730_v6, 4  ;;  %v4737_v20 = vrot.slane %v4718_v12, 4  ;;  %v4748_v23 = vsel %vm1306_vm5, %v4747_v7, %v4722_v4  ;;  %v4750_v21 = vsel %vm1306_vm5, %v4734_v3, %v4749_v13 }
0x16b5   : > { %v4754_v22 = vperm.slane %v4748_v23, %v7632_v24  ;;  %v4758_v29 = vperm.slane %v4750_v21, %v7632_v24 }
0x16b6   : > { %v4736_v27 = vsel %vm1306_vm5, %v4735_v19, %v4718_v12  ;;  %v4738_v28 = vsel %vm1306_vm5, %v4730_v6, %v4737_v20 }
0x16b7   : > { %v4742_v30 = vperm.slane %v4736_v27, %v7632_v24  ;;  %v4746_v32 = vperm.slane %v4738_v28, %v7632_v24  ;;  %v4763_v40 = vrot.slane %v4754_v22, 4  ;;  %v4765_v33 = vrot.slane %v4758_v29, 4 }
0x16b9   : > { %v4759_v61 = vrot.slane %v4742_v30, 4  ;;  %v4761_v17 = vrot.slane %v4746_v32, 4  ;;  %v4766_v37 = vsel %vm1306_vm5, 0.0, %v4765_v33  ;;  %v4778_v36 = vsel %vm1306_vm5, %v4765_v33, %v4754_v22 }
0x16ba   : > { %v4783_v38 = vrot.slane %v4766_v37, 4  ;;  %v4764_v39 = vsel %vm1306_vm5, 0.0, %v4763_v40  ;;  %v4782_v44 = vperm.slane %v4778_v36, %v7622_v9 }
0x16bb   : > { %v4762_v43 = vsel %vm1306_vm5, 0.0, %v4761_v17  ;;  %v4767_v56 = vsel %vm1306_vm5, %v4761_v17, %v4742_v30  ;;  %v4760_v48 = vsel %vm1306_vm5, 0.0, %v4759_v61  ;;  %v7140_v30 = vld [vmem:[%s8926_s5 + $0x1] ss:$0 sm:$0xff] }
0x16bc   : > { %v4771_v45 = vperm.slane %v4767_v56, %v7622_v9  ;;  %v4772_v46 = vrot.slane %v4762_v43, 4  ;;  %v4784_v47 = vsel %vm1306_vm5, %v4783_v38, %v4764_v39  ;;  %v4803_v49 = vrot.slane %v4782_v44, 4 }
0x16bd   : > { %v4788_v35 = vperm.slane %v4784_v47, %v7622_v9  ;;  %v4698_v40 = vadd.f32 %v7140_v30, %v8550_v16 }
0x16be   : > { %v4773_v50 = vsel %vm1306_vm5, %v4772_v46, %v4760_v48  ;;  %v4791_v0 = vrot.slane %v4771_v45, 4 }
0x16bf   : > { %v4777_v34 = vperm.slane %v4773_v50, %v7622_v9  ;;  %v4801_v51 = vrot.slane %v4788_v35, 4  ;;  %v4804_v52 = vsel %vm1306_vm5, %v4788_v35, %v4803_v49 }
0x16c0   : > { %v4812_v11 = vperm.slane %v4804_v52, %v7632_v24  ;;  %v4953_v52 = vrot.slane %v4698_v40, 4 }
0x16c1   : > { %v4789_v53 = vrot.slane %v4777_v34, 4  ;;  %v4802_v2 = vsel %vm1306_vm5, %v4801_v51, %v4782_v44  ;;  %v4792_v55 = vsel %vm1306_vm5, %v4777_v34, %v4791_v0 }
0x16c2   : > { %v4800_v14 = vperm.slane %v4792_v55, %v7632_v24  ;;  %v4817_v58 = vrot.slane %v4812_v11, 4  ;;  %v4808_v10 = vperm.slane %v4802_v2, %v7632_v24 }
0x16c3   : > { %v4790_v59 = vsel %vm1306_vm5, %v4789_v53, %v4771_v45 }
0x16c4   : > { %v4818_v60 = vsel %vm1306_vm5, %v4817_v58, %v4800_v14  ;;  %v4796_v54 = vperm.slane %v4790_v59, %v7632_v24  ;;  %v4813_v18 = vrot.slane %v4808_v10, 4  ;;  %v4819_v62 = vrot.slane %v4800_v14, 4 }
0x16c5   : > { %v5063_v63 = vpack.c.bf16 %v4818_v60, %v4818_v60 }
0x16c6   : > { %v4814_v1 = vsel %vm1306_vm5, %v4813_v18, %v4796_v54  ;;  %v4815_v57 = vrot.slane %v4796_v54, 4  ;;  %v4820_v42 = vsel %vm1306_vm5, %v4812_v11, %v4819_v62 }
0x16c7   : > { %6670 = vmatmul.msk.bf16.vlgmr.msrb.gmra.mxu0 %vm1666_vm6, %v5063_v63  ;;  %v5061_v41 = vpack.c.bf16 %v4814_v1, %v4814_v1  ;;  %v5064_v26 = vpack.c.bf16 %v4820_v42, %v4820_v42 }
0x16c8   : > { %v4816_v3 = vsel %vm1306_vm5, %v4808_v10, %v4815_v57 }
0x16c9   : > { %6668 = vmatmul.msk.bf16.vlgmr.msrb.gmra.mxu2 %vm1666_vm6, %v5061_v41  ;;  %6671 = vmatmul.msk.bf16.vlgmr.msrb.gmra.mxu1 %vm1666_vm6, %v5064_v26  ;;  %v5062_v4 = vpack.c.bf16 %v4816_v3, %v4816_v3 }
0x16cb   : > { %6669 = vmatmul.msk.bf16.vlgmr.msra.gmra.mxu3 %vm1666_vm6, %v5062_v4 }
0x1744   : > { %v5122_v31 = vpop.f32.mrf.mxu0 }
0x1745   : > { %v5147_v5 = vmul.f32 0.25, %v5122_v31 }
0x1746   : > { %v5141_v6 = vpop.f32.mrf.mxu1 }
0x1747   : > { %v5148_v7 = vmul.f32 0.25, %v5141_v6  ;;  %v5155_v12 = vsel %vm1756_vm8, %v5147_v5, -inf }
0x1748   : > { %5156 = vmax.xlane.f32.xlu0 %v5155_v12 }
0x1749   : > { %v5158_v13 = vsel %vm1756_vm8, %v5148_v7, -inf }
0x174a   : > { %5159 = vmax.xlane.f32.xlu2 %v5158_v13 }
0x174c   : > { %v5084_v15 = vpop.f32.mrf.mxu2  ;;  %v5124_v19 = vpop.f32.mrf.mxu0 }
0x174d   : > { %v5145_v20 = vmul.f32 0.25, %v5084_v15 }
0x174e   : > { %v5103_v23 = vpop.f32.mrf.mxu3  ;;  %v5143_v21 = vpop.f32.mrf.mxu1 }
0x174f   : > { %v5146_v22 = vmul.f32 0.25, %v5103_v23  ;;  %v5149_v27 = vsel %vm1756_vm8, %v5145_v20, -inf }
0x1751   : > { %v5152_v29 = vsel %vm1756_vm8, %v5146_v22, -inf }
0x1752   : > { %5153 = vmax.xlane.f32.xlu1 %v5152_v29  ;;  %5150 = vmax.xlane.f32.xlu2 %v5149_v27 }
0x1754   : > { %v5086_v28 = vpop.f32.mrf.mxu2 }
0x1756   : > { %v5105_v32 = vpop.f32.mrf.mxu3 }
0x175c   : > { %4945 = vrot.lane.b32.xlu0 %v4698_v40, %s8927_s9  ;;  %s8945_s9 = sld [smem:[#allocation18_spill]] }
0x176a   : > { %4948 = vrot.lane.b32.xlu2 %v4698_v40, %s8922_s23  ;;  %s8946_s23 = sld [smem:[#allocation19_spill]] }
0x176b   : > { %4942 = vrot.lane.b32.xlu1 %v4698_v40, %s8923_s22  ;;  %s8950_s22 = sld [smem:[#allocation9_spill]] }
0x17bb   : > { %v5157_v33 = vpop.xlane.xlu0 %5156 }
0x17bc   : > { %v5163_v61 = vsub.f32 %v5147_v5, %v5157_v33 }
0x17bd   : > { %v5160_v17 = vpop.xlane.xlu2 %5159 }
0x17be   : > { %v5169_v37 = vmul.f32 1.442695, %v5163_v61  ;;  %v5164_v46 = vsub.f32 %v5148_v7, %v5160_v17 }
0x17c0   : > { %7215 = vpow2.f32 %v5169_v37  ;;  %v5171_v47 = vmul.f32 1.442695, %v5164_v46 }
0x17c5   : > { %v5154_v36 = vpop.xlane.xlu1 %5153  ;;  %v5151_v38 = vpop.xlane.xlu2 %5150 }
0x17c6   : > { %v8605_v43 = vpop.eup %7215  ;;  %v5162_v39 = vsub.f32 %v5146_v22, %v5154_v36  ;;  %v5161_v56 = vsub.f32 %v5145_v20, %v5151_v38 }
0x17c7   : > { %v5179_v16 = vsel %vm1756_vm8, %v8605_v43, 0.0 }
0x17c8   : > { %v5167_v44 = vmul.f32 1.442695, %v5162_v39  ;;  %v5165_v45 = vmul.f32 1.442695, %v5161_v56  ;;  %5180 = vadd.xlane.f32.xlu2 %v5179_v16 }
0x17ca   : > { %7217 = vpow2.f32 %v5167_v44 }
0x17cb   : > { %7219 = vpow2.f32 %v5165_v45 }
0x17cc   : > { %7221 = vpow2.f32 %v5171_v47 }
0x17cd   : > { %v4949_v53 = vpop.permute.xlu2 %4948 }
0x17ce   : > { %v4946_v49 = vpop.permute.xlu0 %4945  ;;  %v4963_v58 = vrot.slane %v4949_v53, 4 }
0x17cf   : > { %v4951_v34 = vrot.slane %v4946_v49, 4  ;;  %v4954_v2 = vsel %vm1306_vm5, %v4946_v49, %v4953_v52 }
0x17d0   : > { %v8609_v48 = vpop.eup %7217  ;;  %v4962_v10 = vperm.slane %v4954_v2, %v7622_v9 }
0x17d1   : > { %v8611_v35 = vpop.eup %7219  ;;  %v5176_v50 = vsel %vm1756_vm8, %v8609_v48, 0.0  ;;  %v4952_v11 = vsel %vm1306_vm5, %v4951_v34, %v4698_v40 }
0x17d2   : > { %5177 = vadd.xlane.f32.xlu1 %v5176_v50  ;;  %v5173_v0 = vsel %vm1756_vm8, %v8611_v35, 0.0  ;;  %v8617_v51 = vpop.eup %7221  ;;  %v4958_v14 = vperm.slane %v4952_v11, %v7622_v9  ;;  %v4989_v1 = vrot.slane %v4962_v10, 4 }
0x17d3   : > { %5174 = vadd.xlane.f32.xlu0 %v5173_v0  ;;  %v5182_v55 = vsel %vm1756_vm8, %v8617_v51, 0.0 }
0x17d4   : > { %v4977_v18 = vrot.slane %v4958_v14, 4 }
0x17db   : > { %5183 = vadd.xlane.f32.xlu0 %v5182_v55 }
0x17dd   : > { %v4943_v59 = vpop.permute.xlu1 %4942 }
0x17de   : > { %v4964_v60 = vsel %vm1306_vm5, %v4963_v58, %v4943_v59  ;;  %v4965_v54 = vrot.slane %v4943_v59, 4 }
0x17df   : > { %v4970_v62 = vperm.slane %v4964_v60, %v7622_v9 }
0x17e0   : > { %v4966_v63 = vsel %vm1306_vm5, %v4949_v53, %v4965_v54 }
0x17e1   : > { %v4974_v57 = vperm.slane %v4966_v63, %v7622_v9  ;;  %v4975_v42 = vrot.slane %v4970_v62, 4  ;;  %v4978_v41 = vsel %vm1306_vm5, %v4970_v62, %v4977_v18 }
0x17e2   : > { %v4986_v26 = vperm.slane %v4978_v41, %v7632_v24 }
0x17e3   : > { %v4976_v3 = vsel %vm1306_vm5, %v4975_v42, %v4958_v14  ;;  %v4987_v4 = vrot.slane %v4974_v57, 4  ;;  %v4990_v31 = vsel %vm1306_vm5, %v4974_v57, %v4989_v1 }
0x17e4   : > { %v4982_v5 = vperm.slane %v4976_v3, %v7632_v24  ;;  %v4998_v6 = vperm.slane %v4990_v31, %v7632_v24  ;;  %v5001_v7 = vrot.slane %v4986_v26, 4 }
0x17e5   : > { %v4988_v12 = vsel %vm1306_vm5, %v4987_v4, %v4962_v10 }
0x17e6   : > { %v4994_v13 = vperm.slane %v4988_v12, %v7632_v24  ;;  %v4999_v15 = vrot.slane %v4982_v5, 4  ;;  %v5002_v19 = vsel %vm1306_vm5, 0.0, %v5001_v7  ;;  %v5005_v20 = vrot.slane %v4998_v6, 4 }
0x17e7   : > { %v5007_v23 = vsel %vm1306_vm5, %v5001_v7, %v4982_v5  ;;  %v5012_v21 = vrot.slane %v5002_v19, 4 }
0x17e8   : > { %v5000_v22 = vsel %vm1306_vm5, 0.0, %v4999_v15  ;;  %v5003_v29 = vrot.slane %v4994_v13, 4  ;;  %v5006_v27 = vsel %vm1306_vm5, 0.0, %v5005_v20  ;;  %v5011_v28 = vperm.slane %v5007_v23, %v7622_v9 }
0x17e9   : > { %v5013_v30 = vsel %vm1306_vm5, %v5012_v21, %v5000_v22  ;;  %v5018_v32 = vsel %vm1306_vm5, %v5005_v20, %v4994_v13  ;;  %v5023_v40 = vrot.slane %v5006_v27, 4 }
0x17ea   : > { %v5004_v33 = vsel %vm1306_vm5, 0.0, %v5003_v29  ;;  %v5017_v61 = vperm.slane %v5013_v30, %v7622_v9  ;;  %v5031_v17 = vrot.slane %v5011_v28, 4  ;;  %v5022_v37 = vperm.slane %v5018_v32, %v7622_v9 }
0x17eb   : > { %v5024_v36 = vsel %vm1306_vm5, %v5023_v40, %v5004_v33 }
0x17ec   : > { %v5028_v38 = vperm.slane %v5024_v36, %v7622_v9  ;;  %v5032_v39 = vsel %vm1306_vm5, %v5017_v61, %v5031_v17  ;;  %v5043_v56 = vrot.slane %v5022_v37, 4  ;;  %v5029_v16 = vrot.slane %v5017_v61, 4 }
0x17ed   : > { %v5040_v44 = vperm.slane %v5032_v39, %v7632_v24 }
0x17ee   : > { %v5044_v45 = vsel %vm1306_vm5, %v5028_v38, %v5043_v56  ;;  %v5030_v46 = vsel %vm1306_vm5, %v5029_v16, %v5011_v28  ;;  %v5041_v47 = vrot.slane %v5028_v38, 4 }
0x17ef   : > { %v5052_v49 = vperm.slane %v5044_v45, %v7632_v24  ;;  %v5059_v50 = vrot.slane %v5040_v44, 4  ;;  %v5036_v0 = vperm.slane %v5030_v46, %v7632_v24 }
0x17f0   : > { %v5042_v34 = vsel %vm1306_vm5, %v5041_v47, %v5022_v37 }
0x17f1   : > { %v5060_v52 = vsel %vm1306_vm5, %v5052_v49, %v5059_v50  ;;  %v5048_v11 = vperm.slane %v5042_v34, %v7632_v24  ;;  %v5055_v53 = vrot.slane %v5036_v0, 4  ;;  %v5057_v2 = vrot.slane %v5052_v49, 4 }
0x17f2   : > { %v5200_v55 = vpack.c.bf16 %v5060_v52, %v5060_v52 }
0x17f3   : > { %v5056_v14 = vsel %vm1306_vm5, %v5048_v11, %v5055_v53  ;;  %v5058_v58 = vsel %vm1306_vm5, %v5057_v2, %v5040_v44  ;;  %v5053_v10 = vrot.slane %v5048_v11, 4 }
0x17f4   : > { %v5262_v59 = vsel %vm1812_vm9, %v5200_v55, 0  ;;  %v5198_v60 = vpack.c.bf16 %v5056_v14, %v5056_v14  ;;  %v5199_v54 = vpack.c.bf16 %v5058_v58, %v5058_v58 }
0x17f5   : > { %5271 = vmatpush.bf16.msra.mxu1 %v5262_v59  ;;  %v5054_v18 = vsel %vm1306_vm5, %v5053_v10, %v5036_v0 }
0x17f6   : > { %v5224_v62 = vsel %vm1812_vm9, %v5198_v60, 0  ;;  %v5243_v63 = vsel %vm1812_vm9, %v5199_v54, 0  ;;  %v5197_v1 = vpack.c.bf16 %v5054_v18, %v5054_v18 }
0x17f7   : > { %5233 = vmatpush.bf16.msrb.mxu3 %v5224_v62  ;;  %5252 = vmatpush.bf16.msra.mxu0 %v5243_v63 }
0x17f8   : > { %v5205_v57 = vsel %vm1812_vm9, %v5197_v1, 0 }
0x17f9   : > { %5214 = vmatpush.bf16.msra.mxu2 %v5205_v57 }
0x183b   : > { %v5181_v42 = vpop.xlane.xlu2 %5180 }
0x183c   : > { %7223 = vrcp.f32 %v5181_v42 }
0x1842   : > { %v7224_v41 = vpop.eup %7223 }
0x1843   : > { %v5191_v26 = vmul.f32 %v7224_v41, %v8605_v43 }
0x1845   : > { %v5195_v3 = vpack.c.bf16 %v5191_v26, %v5191_v26  ;;  %v5178_v4 = vpop.xlane.xlu1 %5177 }
0x1846   : > { %7225 = vrcp.f32 %v5178_v4  ;;  %v5175_v31 = vpop.xlane.xlu0 %5174 }
0x1847   : > { %7227 = vrcp.f32 %v5175_v31  ;;  %6674 = vmatmul.msk.bf16.vlgmr.msra.gmra.mxu0 %vm1756_vm8, %v5195_v3 }
0x184c   : > { %v7226_v5 = vpop.eup %7225 }
0x184d   : > { %v7228_v6 = vpop.eup %7227  ;;  %v5190_v7 = vmul.f32 %v7226_v5, %v8609_v48 }
0x184e   : > { %v5189_v12 = vmul.f32 %v7228_v6, %v8611_v35  ;;  %v5184_v13 = vpop.xlane.xlu0 %5183 }
0x184f   : > { %v5194_v15 = vpack.c.bf16 %v5190_v7, %v5190_v7  ;;  %7229 = vrcp.f32 %v5184_v13 }
0x1850   : > { %v5193_v19 = vpack.c.bf16 %v5189_v12, %v5189_v12 }
0x1851   : > { %6673 = vmatmul.msk.bf16.vlgmr.msrb.gmra.mxu3 %vm1756_vm8, %v5194_v15 }
0x1852   : > { %6672 = vmatmul.msk.bf16.vlgmr.msra.gmra.mxu2 %vm1756_vm8, %v5193_v19 }
0x1855   : > { %v7230_v43 = vpop.eup %7229 }
0x1856   : > { %v5192_v20 = vmul.f32 %v7230_v43, %v8617_v51 }
0x1858   : > { %v5196_v23 = vpack.c.bf16 %v5192_v20, %v5192_v20 }
0x185a   : > { %6675 = vmatmul.msk.bf16.vlgmr.msra.gmra.mxu1 %vm1756_vm8, %v5196_v23 }
0x18c4   : > { %v5254_v21 = vpop.f32.mrf.mxu0 }
0x18c5   : > { %v5277_v29 = vrot.slane %v5254_v21, 4 }
0x18cc   : > { %v5256_v22 = vpop.f32.mrf.mxu0 }
0x18d4   : > { %v5235_v48 = vpop.f32.mrf.mxu3 }
0x18d5   : > { %v5216_v27 = vpop.f32.mrf.mxu2  ;;  %v5291_v35 = vrot.slane %v5235_v48, 4 }
0x18d6   : > { %v5278_v28 = vsel %vm1306_vm5, %v5277_v29, %v5216_v27  ;;  %v5279_v30 = vrot.slane %v5216_v27, 4 }
0x18d7   : > { %v5284_v32 = vperm.slane %v5278_v28, %v7622_v9  ;;  %v5273_v40 = vpop.f32.mrf.mxu1 }
0x18d8   : > { %v5280_v33 = vsel %vm1306_vm5, %v5254_v21, %v5279_v30  ;;  %v5289_v61 = vrot.slane %v5273_v40, 4  ;;  %v5292_v51 = vsel %vm1306_vm5, %v5273_v40, %v5291_v35  ;;  %v6976_v40 = vld [vmem:[%s8945_s9 + $0x38] sm:$0xff] }
0x18d9   : > { %v5288_v17 = vperm.slane %v5280_v33, %v7622_v9  ;;  %v5300_v37 = vperm.slane %v5292_v51, %v7622_v9  ;;  %v5303_v38 = vrot.slane %v5284_v32, 4  ;;  %5437 = vmatpush.bf16.msrb.mxu2 %v6976_v40  ;;  %v6974_v33 = vld [vmem:[%s8945_s9 + $0x28] sm:$0xff] }
0x18da   : > { %v5290_v36 = vsel %vm1306_vm5, %v5289_v61, %v5235_v48  ;;  %v6973_v61 = vld [vmem:[%s8945_s9 + $0x20] sm:$0xff] }
0x18db   : > { %v5315_v39 = vrot.slane %v5288_v17, 4  ;;  %v5296_v56 = vperm.slane %v5290_v36, %v7622_v9  ;;  %v5313_v16 = vrot.slane %v5300_v37, 4 }
0x18dc   : > { %v5237_v44 = vpop.f32.mrf.mxu3 }
0x18dd   : > { %v5301_v45 = vrot.slane %v5296_v56, 4  ;;  %v5304_v46 = vsel %vm1306_vm5, %v5296_v56, %v5303_v38  ;;  %v5314_v47 = vsel %vm1306_vm5, %v5313_v16, %v5288_v17  ;;  %v5316_v49 = vsel %vm1306_vm5, %v5300_v37, %v5315_v39  ;;  %v5218_v50 = vpop.f32.mrf.mxu2  ;;  %v7141_v16 = vld [vmem:[%s8946_s23 + $0x1] ss:$0 sm:$0xff]  ;;  %s8953_s23 = sld [smem:[#allocation30_spill]] }
0x18de   : > { %v5312_v0 = vperm.slane %v5304_v46, %v7632_v24  ;;  %v5320_v34 = vperm.slane %v5314_v47, %v7632_v24  ;;  %v5324_v52 = vperm.slane %v5316_v49, %v7632_v24 }
0x18df   : > { %v5302_v11 = vsel %vm1306_vm5, %v5301_v45, %v5284_v32  ;;  %v5275_v53 = vpop.f32.mrf.mxu1 }
0x18e0   : > { %v5308_v2 = vperm.slane %v5302_v11, %v7632_v24  ;;  %v5327_v55 = vrot.slane %v5312_v0, 4  ;;  %v5329_v14 = vrot.slane %v5320_v34, 4  ;;  %v5331_v58 = vrot.slane %v5324_v52, 4  ;;  %v6984_v53 = vld [vmem:[%s8934_s27 + $0x74] sm:$0xf0] }
0x18e2   : > { %v5325_v10 = vrot.slane %v5308_v2, 4  ;;  %v5328_v59 = vsel %vm1306_vm5, 0.0, %v5327_v55  ;;  %v5332_v60 = vsel %vm1306_vm5, 0.0, %v5331_v58  ;;  %v5344_v18 = vsel %vm1306_vm5, %v5331_v58, %v5320_v34 }
0x18e3   : > { %v5338_v54 = vrot.slane %v5328_v59, 4  ;;  %v5349_v62 = vrot.slane %v5332_v60, 4  ;;  %v5333_v63 = vsel %vm1306_vm5, %v5327_v55, %v5308_v2  ;;  %v5330_v1 = vsel %vm1306_vm5, 0.0, %v5329_v14  ;;  %v6983_v2 = vld [vmem:[%s8934_s27 + $0x74] sm:$0xf] }
0x18e4   : > { %v5326_v57 = vsel %vm1306_vm5, 0.0, %v5325_v10  ;;  %v5337_v42 = vperm.slane %v5333_v63, %v7622_v9  ;;  %v5348_v41 = vperm.slane %v5344_v18, %v7622_v9  ;;  %v6721_v14 = vld [vmem:[%s8934_s27 + $0x78] sm:$0xf0]  ;;  %v6711_v10 = vld [vmem:[%s8934_s27 + $0x60] sm:$0xf] }
0x18e5   : > { %v5339_v26 = vsel %vm1306_vm5, %v5338_v54, %v5326_v57  ;;  %v5350_v3 = vsel %vm1306_vm5, %v5349_v62, %v5330_v1  ;;  %v6724_v58 = vor.u32 %v6983_v2, %v6721_v14  ;;  %v6982_v59 = vld [vmem:[%s8934_s27 + $0x64] sm:$0xf0]  ;;  %v6981_v60 = vld [vmem:[%s8934_s27 + $0x64] sm:$0xf]  ;;  %v6713_v18 = vld [vmem:[%s8934_s27 + $0x68] sm:$0xf0] }
0x18e6   : > { %v5343_v4 = vperm.slane %v5339_v26, %v7622_v9  ;;  %v5354_v31 = vperm.slane %v5350_v3, %v7622_v9  ;;  %v5357_v5 = vrot.slane %v5337_v42, 4  ;;  %v5369_v6 = vrot.slane %v5348_v41, 4  ;;  %v6703_v63 = vld [vmem:[%s8934_s27 + $0x50] sm:$0xf]  ;;  %v6980_v1 = vld [vmem:[%s8934_s27 + $0x54] sm:$0xf0] }
0x18e7   : > { %5543 = vmatpush.bf16.msrb.mxu0 %v6724_v58  ;;  %v6712_v54 = vor.u32 %v6982_v59, %v6711_v10  ;;  %v6716_v62 = vor.u32 %v6981_v60, %v6713_v18  ;;  %v6979_v57 = vld [vmem:[%s8934_s27 + $0x54] sm:$0xf]  ;;  %v6695_v3 = vld [vmem:[%s8934_s27 + $0x40] sm:$0xf] }
0x18e8   : > { %v5358_v7 = vsel %vm1306_vm5, %v5343_v4, %v5357_v5  ;;  %v5370_v12 = vsel %vm1306_vm5, %v5354_v31, %v5369_v6  ;;  %v5355_v13 = vrot.slane %v5343_v4, 4  ;;  %v5367_v15 = vrot.slane %v5354_v31, 4  ;;  %v6978_v4 = vld [vmem:[%s8934_s27 + $0x44] sm:$0xf0]  ;;  %v6977_v31 = vld [vmem:[%s8934_s27 + $0x44] sm:$0xf] }
0x18e9   : > { %v5366_v19 = vperm.slane %v5358_v7, %v7632_v24  ;;  %v5378_v43 = vperm.slane %v5370_v12, %v7632_v24  ;;  %v6696_v5 = vor.u32 %v6978_v4, %v6695_v3  ;;  %v6697_v6 = vld [vmem:[%s8934_s27 + $0x48] sm:$0xf0]  ;;  %v7000_v12 = vld [vmem:[%s8936_s0 + $0xf8] sm:$0xff] }
0x18ea   : > { %v5356_v20 = vsel %vm1306_vm5, %v5355_v13, %v5337_v42  ;;  %v5368_v23 = vsel %vm1306_vm5, %v5367_v15, %v5348_v41  ;;  %v6704_v42 = vor.u32 %v6980_v1, %v6703_v63  ;;  %v6705_v41 = vld [vmem:[%s8934_s27 + $0x58] sm:$0xf0]  ;;  %v6700_v7 = vor.u32 %v6977_v31, %v6697_v6 }
0x18eb   : > { %v5385_v21 = vrot.slane %v5366_v19, 4  ;;  %v5383_v9 = vrot.slane %v5378_v43, 4  ;;  %v5362_v22 = vperm.slane %v5356_v20, %v7632_v24  ;;  %v5374_v29 = vperm.slane %v5368_v23, %v7632_v24  ;;  %v6975_v24 = vld [vmem:[%s8945_s9 + $0x30] sm:$0xff]  ;;  %5544 = vmatpush.bf16.msrb.mxu0 %v6716_v62 }
0x18ec   : > { %5438 = vmatpush.bf16.msrb.mxu2 %v6975_v24  ;;  %v6708_v26 = vor.u32 %v6979_v57, %v6705_v41  ;;  %v6992_v24 = vld [vmem:[%s8936_s0 + $0xb8] sm:$0xff] }
0x18ed   : > { %v5386_v48 = vsel %vm1306_vm5, %v5378_v43, %v5385_v21  ;;  %v5384_v27 = vsel %vm1306_vm5, %v5383_v9, %v5366_v19  ;;  %v5379_v35 = vrot.slane %v5374_v29, 4  ;;  %v5381_v28 = vrot.slane %v5362_v22, 4  ;;  %v6999_v19 = vld [vmem:[%s8936_s0 + $0xf0] sm:$0xff]  ;;  %5671 = vmatpush.bf16.msrb.mxu1 %v6992_v24  ;;  %v7006_v24 = vld [vmem:[%s7512_s13 + $0x48] sm:$0xff] }
0x18ee   : > { %5396 = vrot.lane.b32.xlu0 %v5386_v48, %s8930_s1  ;;  %5392 = vrot.lane.b32.xlu1 %v5384_v27, %s8931_s7  ;;  %s8947_s7 = sld [smem:[#allocation20_spill]] }
0x18ef   : > { %v5382_v30 = vsel %vm1306_vm5, %v5374_v29, %v5381_v28  ;;  %v5380_v32 = vsel %vm1306_vm5, %v5379_v35, %v5362_v22  ;;  %5545 = vmatpush.bf16.msrb.mxu0 %v6708_v26  ;;  %s8949_s1 = sld [smem:[#allocation23_spill]] }
0x18f0   : > { %5388 = vrot.lane.b32.xlu2 %v5382_v30, %s8932_s15  ;;  %5439 = vmatpush.bf16.msrb.mxu2 %v6974_v33  ;;  %s8948_s15 = sld [smem:[#allocation21_spill]]  ;;  %v6998_v33 = vld [vmem:[%s8936_s0 + $0xe8] sm:$0xff] }
0x18f3   : > { %5546 = vmatpush.bf16.msrb.mxu0 %v6700_v7 }
0x18f4   : > { %5440 = vmatpush.bf16.msrb.mxu2 %v6973_v61  ;;  %v7142_v48 = vld [vmem:[%s8947_s7 + $0x1] ss:$0 sm:$0xff]  ;;  %v6991_v61 = vld [vmem:[%s8936_s0 + $0xb0] sm:$0xff]  ;;  %s8954_s7 = sld [smem:[#allocation33_spill]] }
0x18f5   : > { %5672 = vmatpush.bf16.msrb.mxu1 %v6991_v61  ;;  %v7145_v61 = vld [vmem:[%s8900_s12 + $0x1] ss:$0 sm:$0xff] }
0x18f6   : > { %v7143_v35 = vld [vmem:[%s8948_s15 + $0x1] ss:$0 sm:$0xff]  ;;  %s8955_s15 = sld [smem:[#allocation28_spill]] }
0x18f8   : > { %5684 = vmatpush.bf16.msra.mxu2 %v7000_v12 }
0x18fa   : > { %s6858_s3 = sshll.u32 %s8954_s7, 3 }
0x18fc   : > { %5685 = vmatpush.bf16.msra.mxu2 %v6999_v19  ;;  %v7012_v19 = vld [vmem:[%s7512_s13 + $0x78] sm:$0xff]  ;;  %s5910_s5 = scalar_lea.hbm %s8955_s15, %s6858_s3 }
0x18fd   : > { %5803 = vmatpush.bf16.msra.mxu0 %v7012_v19  ;;  %s5914_s9 = sshll.u32 %s5910_s5, 4  ;;  %s5915_s9 = int_to_ptr.hbm [resolvable:$true] %s5914_s9 }
0x1900   : > { %5686 = vmatpush.bf16.msra.mxu2 %v6998_v33  ;;  %v7005_v33 = vld [vmem:[%s7512_s13 + $0x40] sm:$0xff] }
0x194a   : > { %v5389_v51 = vpop.permute.xlu2 %5388 }
0x194b   : > { %v5399_v17 = vsel %vm1666_vm6, %v5380_v32, %v5389_v51  ;;  %v6997_v51 = vld [vmem:[%s8936_s0 + $0xe0] sm:$0xff] }
0x194c   : > { %5687 = vmatpush.bf16.msra.mxu2 %v6997_v51 }
0x1960   : > { %v5397_v37 = vpop.permute.xlu0 %5396  ;;  %v5393_v36 = vpop.permute.xlu1 %5392 }
0x1961   : > { %v5400_v38 = vsel %vm2009_vm10, %v5399_v17, %v5393_v36  ;;  %v6990_v17 = vld [vmem:[%s8936_s0 + $0xa8] sm:$0xff]  ;;  %v6989_v36 = vld [vmem:[%s8936_s0 + $0xa0] sm:$0xff] }
0x1962   : > { %v5401_v39 = vsel %vm2011_vm11, %v5400_v38, %v5397_v37  ;;  %5673 = vmatpush.bf16.msrb.mxu1 %v6990_v17  ;;  %v6996_v37 = vld [vmem:[%s8936_s0 + $0xd8] sm:$0xff]  ;;  %v6995_v38 = vld [vmem:[%s8936_s0 + $0xd0] sm:$0xff] }
0x1963   : > { %v5402_v56 = vpack.c.bf16 %v5401_v39, %v5401_v39  ;;  %5688 = vmatpush.bf16.msra.mxu2 %v6996_v37  ;;  %v6988_v39 = vld [vmem:[%s8936_s0 + $0x98] sm:$0xff] }
0x1965   : > { %6692 = vmatmul.msk.bf16.vlgmr.msrb.gmra.mxu2 %vm1182_vm0, %v5402_v56  ;;  %v6994_v56 = vld [vmem:[%s8936_s0 + $0xc8] sm:$0xff] }
0x1966   : > { %5674 = vmatpush.bf16.msrb.mxu1 %v6989_v36 }
0x1967   : > { %5689 = vmatpush.bf16.msra.mxu2 %v6995_v38 }
0x196a   : > { %5675 = vmatpush.bf16.msrb.mxu1 %v6988_v39 }
0x196b   : > { %5690 = vmatpush.bf16.msra.mxu2 %v6994_v56 }
0x19e8   : > { %v5442_v44 = vpop.f32.mrf.mxu2 }
0x19e9   : > { %v5443_v45 = vadd.f32 %v7141_v16, %v5442_v44  ;;  %v6987_v16 = vld [vmem:[%s8936_s0 + $0x90] sm:$0xff]  ;;  %v6993_v44 = vld [vmem:[%s8936_s0 + $0xc0] sm:$0xff] }
0x19ea   : > { %5676 = vmatpush.bf16.msrb.mxu1 %v6987_v16  ;;  %5691 = vmatpush.bf16.msra.mxu2 %v6993_v44 }
0x19eb   : > { %v8726_v46 = vadd.f32 %v5443_v45, %v8491_v25  ;;  %v6719_v25 = vld [vmem:[%s8934_s27 + $0x70] sm:$0xf]  ;;  %v6986_v45 = vld [vmem:[%s8936_s0 + $0x88] sm:$0xff] }
0x19ec   : > { %v6720_v55 = vor.u32 %v6984_v53, %v6719_v25 }
0x19ed   : > { %v5447_v47 = vsel %vm1182_vm0, %v8726_v46, 0.0 }
0x19ee   : > { %5448 = vadd.xlane.f32.xlu2 %v5447_v47  ;;  %5530 = vmatpush.bf16.msra.mxu3 %v6720_v55  ;;  %v6449_v47 = vld [vmem:[%s8949_s1 + $0x2] sm:$0x3]  ;;  %s8956_s1 = smov %s8955_s15 }
0x19ef   : > { %5677 = vmatpush.bf16.msrb.mxu1 %v6986_v45  ;;  %v5479_v53 = vperm.slane %v6449_v47, 0 }
0x19f0   : > { %v5444_v49 = vpop.f32.mrf.mxu2 }
0x19f1   : > { %v6985_v49 = vld [vmem:[%s8936_s0 + $0x80] sm:$0xff]  ;;  %s1016_s0 = sand.u32 1, %s8953_s23   ;;  %s7262_s23 = scalar_lea.hbm %s8956_s1, 16 }
0x19f2   : > { %5531 = vmatpush.bf16.msra.mxu3 %v6712_v54  ;;  %s6023_s4 = sshll.u32 %s1016_s0, 3 }
0x19f3   : > { %5678 = vmatpush.bf16.msrb.mxu1 %v6985_v49  ;;  %s1018_s6 = scalar_lea.vmem [#allocation2], %s6023_s4 }
0x19f4   : > { %s5912_s8 = sshll.u32 %s1018_s6, 4  ;;  %s5913_s8 = int_to_ptr.vmem [resolvable:$true] %s5912_s8 }
0x19f6   : > { %5532 = vmatpush.bf16.msra.mxu3 %v6704_v42 }
0x19fa   : > { %5533 = vmatpush.bf16.msra.mxu3 %v6696_v5 }
0x1a61   : > { %v5449_v50 = vpop.xlane.xlu2 %5448 }
0x1a62   : > { %v5450_v0 = vmul.f32 %v5449_v50, %v7584_v8  ;;  %v5480_v50 = vperm.slane %v6449_v47, 1 }
0x1a64   : > { %v5451_v34 = vsub.f32 %v8726_v46, %v5450_v0 }
0x1a66   : > { %v5452_v52 = vmul.f32 %v5451_v34, %v5451_v34 }
0x1a68   : > { %v5453_v11 = vsel %vm1182_vm0, %v5452_v52, 0.0 }
0x1a69   : > { %5454 = vadd.xlane.f32.xlu0 %v5453_v11  ;;  %v7003_v11 = vld [vmem:[%s8941_s28 + $0x30] sm:$0xff] }
0x1adc   : > { %v5455_v13 = vpop.xlane.xlu0 %5454 }
0x1add   : > { %v5456_v15 = vmul.f32 %v5455_v13, %v7584_v8  ;;  %v7002_v13 = vld [vmem:[%s8941_s28 + $0x28] sm:$0xff] }
0x1adf   : > { %v5457_v43 = vadd.f32 1e-05, %v5456_v15  ;;  %v7001_v15 = vld [vmem:[%s8941_s28 + $0x20] sm:$0xff] }
0x1ae1   : > { %7231 = vrsqrt.f32 %v5457_v43  ;;  %vm5464_vm4 = vweird.f32 %v5457_v43 }
0x1ae7   : > { %v7232_v20 = vpop.eup %7231 }
0x1ae8   : > { %v5459_v23 = vmul.f32 %v7232_v20, %v5457_v43  ;;  %vm5465_vm3 = vweird.f32 %v7232_v20  ;;  %v7011_v43 = vld [vmem:[%s7512_s13 + $0x70] sm:$0xff] }
0x1ae9   : > { %vm5466_vm5 = vmor %vm5464_vm4, %vm5465_vm3  ;;  %5804 = vmatpush.bf16.msra.mxu0 %v7011_v43 }
0x1aea   : > { %v5460_v21 = vmul.f32 %v7232_v20, %v5459_v23 }
0x1aec   : > { %v5461_v9 = vmul.f32 0.5, %v5460_v21 }
0x1aee   : > { %v5462_v22 = vsub.f32 1.5, %v5461_v9 }
0x1af0   : > { %v5463_v29 = vmul.f32 %v7232_v20, %v5462_v22 }
0x1af2   : > { %v5467_v27 = vsel %vm5466_vm5, %v7232_v20, %v5463_v29  ;;  %v7144_v20 = vld [vmem:[%s8943_s18 + $0x1] ss:$0 sm:$0xff] }
0x1af3   : > { %v5468_v28 = vmul.f32 %v5467_v27, %v5451_v34  ;;  %v7004_v34 = vld [vmem:[%s8941_s28 + $0x38] sm:$0xff] }
0x1af4   : > { %5733 = vmatpush.bf16.msrb.mxu3 %v7004_v34 }
0x1af5   : > { %v5472_v30 = vmul.f32 %v7142_v48, %v5468_v28  ;;  %v7010_v28 = vld [vmem:[%s7512_s13 + $0x68] sm:$0xff] }
0x1af6   : > { %5805 = vmatpush.bf16.msra.mxu0 %v7010_v28 }
0x1af7   : > { %v5476_v32 = vadd.f32 %v7143_v35, %v5472_v30  ;;  %v7009_v30 = vld [vmem:[%s7512_s13 + $0x60] sm:$0xff] }
0x1af8   : > { %5734 = vmatpush.bf16.msrb.mxu3 %v7003_v11 }
0x1af9   : > { %v5477_v40 = vpack.c.bf16 %v5476_v32, %v5476_v32  ;;  %v7008_v32 = vld [vmem:[%s7512_s13 + $0x58] sm:$0xff] }
0x1afa   : > { %5806 = vmatpush.bf16.msra.mxu0 %v7009_v30 }
0x1afb   : > { %6725 = vmatmul.msk.bf16.vlgmr.msra.gmra.mxu3 %vm1182_vm0, %v5477_v40  ;;  %6726 = vmatmul.msk.bf16.vlgmr.msrb.gmra.mxu0 %vm1182_vm0, %v5477_v40  ;;  %v7007_v40 = vld [vmem:[%s7512_s13 + $0x50] sm:$0xff] }
0x1afc   : > { %5735 = vmatpush.bf16.msrb.mxu3 %v7002_v13 }
0x1afe   : > { %5807 = vmatpush.bf16.msra.mxu0 %v7008_v32 }
0x1b00   : > { %5736 = vmatpush.bf16.msrb.mxu3 %v7001_v15 }
0x1b02   : > { %5808 = vmatpush.bf16.msra.mxu0 %v7007_v40 }
0x1b06   : > { %5809 = vmatpush.bf16.msra.mxu0 %v7006_v24 }
0x1b0a   : > { %5810 = vmatpush.bf16.msra.mxu0 %v7005_v33 }
0x1b78   : > { %v5548_v0 = vpop.f32.mrf.mxu0 }
0x1b79   : > { %v5549_v52 = vadd.f32 %v5548_v0, %v5480_v50  ;;  %v7146_v50 = vld [vmem:[%s7517_s21 + $0x1] ss:$0 sm:$0xff] }
0x1b7b   : > { %v5555_v25 = vmul.f32 0.044715, %v5549_v52  ;;  %v5553_v41 = vmul.f32 0.5, %v5549_v52 }
0x1b7d   : > { %v5557_v2 = vmul.f32 %v5555_v25, %v5549_v52 }
0x1b7e   : > { %v5535_v55 = vpop.f32.mrf.mxu3 }
0x1b7f   : > { %v5559_v14 = vmul.f32 %v5557_v2, %v5549_v52  ;;  %v5536_v58 = vadd.f32 %v5535_v55, %v5479_v53 }
0x1b80   : > { %v5550_v10 = vpop.f32.mrf.mxu0 }
0x1b81   : > { %v5561_v59 = vadd.f32 %v5559_v14, %v5549_v52  ;;  %v5554_v60 = vmul.f32 0.044715, %v5536_v58  ;;  %v5552_v5 = vmul.f32 0.5, %v5536_v58  ;;  %v7016_v10 = vld [vmem:[%s8950_s22 + $0x18] sm:$0xff] }
0x1b82   : > { %5889 = vmatpush.bf16.msra.mxu3 %v7016_v10 }
0x1b83   : > { %v5563_v54 = vmul.f32 0.7978846, %v5561_v59  ;;  %v5556_v18 = vmul.f32 %v5554_v60, %v5536_v58  ;;  %v7015_v59 = vld [vmem:[%s8950_s22 + $0x10] sm:$0xff]  ;;  %v7014_v60 = vld [vmem:[%s8950_s22 + $0x8] sm:$0xff] }
0x1b85   : > { %7233 = vtanh.f32 %v5563_v54  ;;  %v5558_v62 = vmul.f32 %v5556_v18, %v5536_v58  ;;  %v7013_v54 = vld [vmem:[%s8950_s22] sm:$0xff] }
0x1b86   : > { %v5537_v63 = vpop.f32.mrf.mxu3  ;;  %5890 = vmatpush.bf16.msra.mxu3 %v7015_v59 }
0x1b87   : > { %v5560_v1 = vadd.f32 %v5558_v62, %v5536_v58 }
0x1b89   : > { %v5562_v57 = vmul.f32 0.7978846, %v5560_v1 }
0x1b8a   : > { %5891 = vmatpush.bf16.msra.mxu3 %v7014_v60 }
0x1b8b   : > { %v7234_v42 = vpop.eup %7233  ;;  %7235 = vtanh.f32 %v5562_v57 }
0x1b8c   : > { %v5567_v26 = vadd.f32 1.0, %v7234_v42 }
0x1b8e   : > { %v5569_v3 = vmul.f32 %v5567_v26, %v5553_v41  ;;  %5892 = vmatpush.bf16.msra.mxu3 %v7013_v54 }
0x1b90   : > { %v5571_v4 = vpack.c.bf16 %v5569_v3, %v5569_v3 }
0x1b91   : > { %v7236_v31 = vpop.eup %7235 }
0x1b92   : > { %5692 = vmatmul.bf16.vlgmr.msra.gmra.mxu2 %v5571_v4  ;;  %v5566_v6 = vadd.f32 1.0, %v7236_v31  ;;  %v7147_v4 = vld [vmem:[%s8951_s10] ss:$0 sm:$0xff]  ;;  %s5900_s10 = scalar_lea.sflag [#allocation3], %s1016_s0 }
0x1b94   : > { %v5568_v7 = vmul.f32 %v5566_v6, %v5552_v5  ;;  %v7148_v5 = vld [vmem:[%s8952_s11] ss:$0 sm:$0xff]  ;;  %s7256_s11 = sshra.s32 %s5915_s9, 4  ;;  %s7257_s11 = int_to_ptr.hbm [resolvable:$true] %s7256_s11 }
0x1b95   : > { %s7258_s12 = scalar_lea.hbm %s7257_s11, 8  ;;  %p7263_p0 = scmp.lt.s32.totalorder %s7257_s11, %s8956_s1 }
0x1b96   : > { %v5570_v12 = vpack.c.bf16 %v5568_v7, %v5568_v7  ;;  %p7259_p11 = scmp.ne.s32.totalorder %s7257_s11, %s7258_s12  ;;  %p7264_p1 = scmp.lt.s32.totalorder %s7262_s23, %s7258_s12 }
0x1b98   : > { %5679 = vmatmul.bf16.vlgmr.msrb.gmra.mxu1 %v5570_v12  ;;  %p7260_p12 = pnand %p7259_p11, %p7562_p5  ;;  %p7265_p2 = por %p7264_p1, %p7263_p0 }
0x1b9a   : > { %p7261_p13 = pneg %p7260_p12 }
0x1b9c   : > { %p7266_p3 = pnand %p7265_p2, %p7261_p13 }
0x1c15   : > { %v5680_v23 = vpop.f32.mrf.mxu1  ;;  %v5693_v21 = vpop.f32.mrf.mxu2 }
0x1c16   : > { %v5681_v9 = vadd.f32 %v7144_v20, %v5680_v23 }
0x1c18   : > { %v5694_v22 = vadd.f32 %v5693_v21, %v5681_v9 }
0x1c1a   : > { %v5697_v29 = vadd.f32 %v5694_v22, %v8726_v46 }
0x1c1c   : > { %v5698_v48 = vpack.c.bf16 %v5697_v29, %v5697_v29 }
0x1c1d   : > { %v5682_v27 = vpop.f32.mrf.mxu1  ;;  %v5695_v35 = vpop.f32.mrf.mxu2 }
0x1c1e   : > { %6807 = vmatmul.msk.bf16.vlgmr.msrb.gmra.mxu3 %vm1182_vm0, %v5698_v48 }
0x1ca1   : > { %v5738_v46 = vpop.f32.mrf.mxu3 }
0x1ca2   : > { %v5739_v51 = vadd.f32 %v7145_v61, %v5738_v46 }
0x1ca4   : > { %v5743_v17 = vmul.f32 0.044715, %v5739_v51  ;;  %v5742_v44 = vmul.f32 0.5, %v5739_v51 }
0x1ca6   : > { %v5744_v37 = vmul.f32 %v5743_v17, %v5739_v51 }
0x1ca8   : > { %v5745_v36 = vmul.f32 %v5744_v37, %v5739_v51 }
0x1ca9   : > { %v5740_v38 = vpop.f32.mrf.mxu3 }
0x1caa   : > { %v5746_v39 = vadd.f32 %v5745_v36, %v5739_v51 }
0x1cac   : > { %v5747_v56 = vmul.f32 0.7978846, %v5746_v39 }
0x1cae   : > { %7237 = vtanh.f32 %v5747_v56 }
0x1cb4   : > { %v7238_v16 = vpop.eup %7237 }
0x1cb5   : > { %v5749_v45 = vadd.f32 1.0, %v7238_v16 }
0x1cb7   : > { %v5750_v47 = vmul.f32 %v5749_v45, %v5742_v44 }
0x1cb9   : > { %v5751_v49 = vpack.c.bf16 %v5750_v47, %v5750_v47 }
0x1cbb   : > { %5811 = vmatmul.bf16.vlgmr.msra.gmra.mxu0 %v5751_v49 }
0x1d38   : > { %v5812_v0 = vpop.f32.mrf.mxu0 }
0x1d39   : > { %v5813_v34 = vadd.f32 %v7146_v50, %v5812_v0 }
0x1d3b   : > { %v5816_v52 = vadd.f32 %v5813_v34, %v5697_v29 }
0x1d3d   : > { %v5819_v11 = vsel %vm1182_vm0, %v5816_v52, 0.0 }
0x1d3e   : > { %5820 = vadd.xlane.f32.xlu1 %v5819_v11 }
0x1d40   : > { %v5814_v25 = vpop.f32.mrf.mxu0 }
0x1db1   : > { %v5821_v53 = vpop.xlane.xlu1 %5820 }
0x1db2   : > { %v5822_v2 = vmul.f32 %v5821_v53, %v7584_v8 }
0x1db4   : > { %v5823_v55 = vsub.f32 %v5816_v52, %v5822_v2 }
0x1db6   : > { %v5824_v14 = vmul.f32 %v5823_v55, %v5823_v55 }
0x1db8   : > { %v5825_v58 = vsel %vm1182_vm0, %v5824_v14, 0.0 }
0x1db9   : > { %5826 = vadd.xlane.f32.xlu2 %v5825_v58 }
0x1e2c   : > { %v5827_v18 = vpop.xlane.xlu2 %5826 }
0x1e2d   : > { %v5828_v62 = vmul.f32 %v5827_v18, %v7584_v8 }
0x1e2f   : > { %v5829_v63 = vadd.f32 1e-05, %v5828_v62 }
0x1e31   : > { %7239 = vrsqrt.f32 %v5829_v63  ;;  %vm5836_vm7 = vweird.f32 %v5829_v63 }
0x1e37   : > { %v7240_v1 = vpop.eup %7239 }
0x1e38   : > { %v5831_v57 = vmul.f32 %v7240_v1, %v5829_v63  ;;  %vm5837_vm6 = vweird.f32 %v7240_v1 }
0x1e39   : > { %vm5838_vm8 = vmor %vm5836_vm7, %vm5837_vm6 }
0x1e3a   : > { %v5832_v42 = vmul.f32 %v7240_v1, %v5831_v57 }
0x1e3c   : > { %v5833_v41 = vmul.f32 0.5, %v5832_v42 }
0x1e3e   : > { %v5834_v26 = vsub.f32 1.5, %v5833_v41 }
0x1e40   : > { %v5835_v3 = vmul.f32 %v7240_v1, %v5834_v26 }
0x1e42   : > { %v5839_v31 = vsel %vm5838_vm8, %v7240_v1, %v5835_v3 }
0x1e43   : > { %v5840_v6 = vmul.f32 %v5839_v31, %v5823_v55 }
0x1e45   : > { %v5844_v7 = vmul.f32 %v7147_v4, %v5840_v6 }
0x1e47   : > { %v5848_v8 = vadd.f32 %v7148_v5, %v5844_v7 }
0x1e49   : > { %v5857_v12 = vpack.c.bf16 %v5848_v8, %v5848_v8 }
0x1e4b   : > { %6856 = vmatmul.msk.bf16.vlgmr.msra.gmra.mxu3 %vm1182_vm0, %v5857_v12 }
0x1ece   : > { %v5894_v13 = vpop.f32.mrf.mxu3 }
0x1ecf   : > { %5898 = vst [vmem:[%s1018_s6] sm:$0xff] %v5894_v13 }
0x1ed0   : > { %7269 = shalt.err (!%p7266_p3)
}
0x1ed1   : > { %7017 = dma.vmem_to_hbm [thread:$0]  (%p7562_p5), %s5913_s8, 128, %s5915_s9, %s5900_s10  }
0x1ed6   : > { %v5896_v15 = vpop.f32.mrf.mxu3 }
0x1ed7 PF: > { %s8958_s5 = sld [smem:[#allocation32_spill]] }
0x1ed8   : > { %s8959_s3 = sld [smem:[#allocation29_spill]] }
0x1edd   : > { %p7023_p4 = scmp.ge.s32.totalorder %s8958_s5, 2 }
0x1ede   : > { %s5926_s4 = sand.u32 1, %s8959_s3  }
0x1edf   : > { %p7020_p7 = pnand %p7023_p4, %p7566_p6  ;;  %s5927_s0 = scalar_lea.sflag [#allocation3], %s5926_s4 }
0x1ee1   : > { %p7021_p8 = pneg %p7020_p7 }
0x1ee3   : > { %7287 = dma.done.wait (%p7021_p8), %s5927_s0, 128  }
0x1ee4   : > { %7289 = vsyncadd (%p7021_p8), %s5927_s0, 4294967168  ;;  %s8961_s15 = sld [smem:[#allocation34_spill]] }
0x1ee5   : > { %s8962_s7 = sld [smem:[#allocation30_spill]] }
0x1ee6   : > { %s8963_s10 = sld [smem:[#allocation31_spill]] }
0x1ee7   : > { %s8964_s11 = sld [smem:[#allocation35_spill]] }
0x1eea   : > { %p77_p9 = scmp.ge.s32.totalorder %s8961_s15, 4  }
0x1eec   :  { %79 = sbr.rel (!%p77_p9) target bundleno = 70 (0x46), region = 251 }
0x1ef1   :  { %5933 = vsyncpa [#allocation3], 1 }
0x1ef2   :  { %5935 = vsyncpa [#allocation3 + $0x1], 1 }

</bundles_post_ra>
